<compile_context>
chip_gen: v5e
topology: v5e:2x2
jax: 0.10.0
libtpu: 0.0.40
codegen_flags: <defaults>
</compile_context>

<pallas_src>
import functools

import jax
import jax.numpy as jnp
from jax.experimental import pallas as pl
from jax.experimental.pallas import tpu as pltpu

EPS = 1e-5


def _pick_bm(M, K=0, G=0, max_bm=512):
    """Largest multiple-of-8 divisor of M that (a) leaves >= 2 grid blocks when
    possible (v7x has 2 TensorCores) and (b) keeps the bf16 A tile + f32 epilogue
    tile comfortably inside VMEM (v7x has half the VMEM of v5e/v6e)."""
    if K + G > 0:
        budget = (4 << 20) // (4 * (K + G))
        max_bm = max(8, min(max_bm, budget))
    limit = min(M // 2 if M >= 16 else M, max_bm)
    best = None
    bm = 8
    while bm <= limit:
        if M % bm == 0:
            best = bm
        bm += 8
    if best is None:
        best = M  # full-extent block (legal even if not 8-aligned)
    return best


# ----------------------------------------------------------------------------
# Pallas kernels
# ----------------------------------------------------------------------------
def _conv_stats_kernel(a_ref, b_ref, o_ref, stats_ref):
    """Single-shot bf16 matmul (f32 accumulate) for one M tile, emitting the
    bf16 product plus a full (8, G) stats block: row 0 = per-column sum,
    row 1 = per-column sum of squares, rows 2..7 = 0."""
    y = jnp.dot(a_ref[...], b_ref[...], preferred_element_type=jnp.float32)
    o_ref[...] = y.astype(o_ref.dtype)
    s = jnp.sum(y, axis=0, keepdims=True)          # (1, G)
    sq = jnp.sum(y * y, axis=0, keepdims=True)     # (1, G)
    rows = jax.lax.broadcasted_iota(jnp.int32, stats_ref.shape, 0)
    stats_ref[...] = jnp.where(rows == 0, s, 0.0) + jnp.where(rows == 1, sq, 0.0)


def _conv_bias_act_kernel(a_ref, b_ref, bias_ref, o_ref, *, act):
    """bf16 matmul + bias + optional relu/tanh epilogue (f32 math)."""
    y = jnp.dot(a_ref[...], b_ref[...], preferred_element_type=jnp.float32)
    y = y + bias_ref[...]
    if act == "relu":
        y = jnp.maximum(y, 0.0)
    elif act == "tanh":
        y = jnp.tanh(y)
    o_ref[...] = y.astype(o_ref.dtype)


def _norm_act_kernel(x_ref, scale_ref, shift_ref, o_ref, *, relu):
    y = x_ref[...].astype(jnp.float32) * scale_ref[...] + shift_ref[...]
    if relu:
        y = jnp.maximum(y, 0.0)
    o_ref[...] = y.astype(o_ref.dtype)


def _norm_res_kernel(x_ref, scale_ref, shift_ref, res_ref, o_ref, *, relu):
    y = (x_ref[...].astype(jnp.float32) * scale_ref[...] + shift_ref[...]
         + res_ref[...].astype(jnp.float32))
    if relu:
        y = jnp.maximum(y, 0.0)
    o_ref[...] = y.astype(o_ref.dtype)


# ----------------------------------------------------------------------------
# Pallas wrappers
# ----------------------------------------------------------------------------
def pallas_conv_stats(a, b):
    """(M, K) @ (K, G) with bf16 operands / f32 accumulation, no M/K/G padding.

    Returns the bf16 (M, G) product and an (M//bm * 8, G) f32 stats array whose
    rows 8*i / 8*i+1 hold the per-column sum / sum-of-squares of M-tile i."""
    M, K = a.shape
    _, G = b.shape
    bm = _pick_bm(M, K, G)
    gm = M // bm
    y, stats = pl.pallas_call(
        _conv_stats_kernel,
        out_shape=(jax.ShapeDtypeStruct((M, G), jnp.bfloat16),
                   jax.ShapeDtypeStruct((gm * 8, G), jnp.float32)),
        grid_spec=pltpu.PrefetchScalarGridSpec(
            num_scalar_prefetch=0,
            grid=(gm,),
            in_specs=[
                pl.BlockSpec((bm, K), lambda i: (i, 0)),   # full-K ragged block
                pl.BlockSpec((K, G), lambda i: (0, 0)),    # full weight, resident
            ],
            out_specs=(
                pl.BlockSpec((bm, G), lambda i: (i, 0)),
                pl.BlockSpec((8, G), lambda i: (i, 0)),    # per-tile partial stats
            ),
        ),
        compiler_params=pltpu.CompilerParams(
            dimension_semantics=("parallel",)),
    )(a.astype(jnp.bfloat16), b.astype(jnp.bfloat16))
    return y, stats


def pallas_conv_bias(a, b, bias, act="none", out_dtype=jnp.float32):
    """(M, K) @ (K, G) + bias[G] with fused activation.  bf16 operands, f32 math."""
    M, K = a.shape
    _, G = b.shape
    bm = _pick_bm(M, K, G)
    return pl.pallas_call(
        functools.partial(_conv_bias_act_kernel, act=act),
        out_shape=jax.ShapeDtypeStruct((M, G), out_dtype),
        grid_spec=pltpu.PrefetchScalarGridSpec(
            num_scalar_prefetch=0,
            grid=(M // bm,),
            in_specs=[
                pl.BlockSpec((bm, K), lambda i: (i, 0)),
                pl.BlockSpec((K, G), lambda i: (0, 0)),
                pl.BlockSpec((1, G), lambda i: (0, 0)),
            ],
            out_specs=pl.BlockSpec((bm, G), lambda i: (i, 0)),
        ),
        compiler_params=pltpu.CompilerParams(
            dimension_semantics=("parallel",)),
    )(a.astype(jnp.bfloat16), b.astype(jnp.bfloat16),
      bias.reshape(1, G).astype(jnp.float32))


def pallas_norm_act(x2d, scale, shift, relu, res2d=None, out_dtype=jnp.bfloat16):
    """y = x * scale + shift [+ res] [then ReLU], per-column scale/shift.
    Streams the unpadded bf16 conv output directly; emits bf16."""
    M, G = x2d.shape
    bm = _pick_bm(M, 0, G)
    scale2 = scale.reshape(1, G).astype(jnp.float32)
    shift2 = shift.reshape(1, G).astype(jnp.float32)
    in_specs = [
        pl.BlockSpec((bm, G), lambda i: (i, 0)),
        pl.BlockSpec((1, G), lambda i: (0, 0)),
        pl.BlockSpec((1, G), lambda i: (0, 0)),
    ]
    args = [x2d, scale2, shift2]
    if res2d is None:
        kernel = functools.partial(_norm_act_kernel, relu=relu)
    else:
        in_specs.append(pl.BlockSpec((bm, G), lambda i: (i, 0)))
        args.append(res2d)
        kernel = functools.partial(_norm_res_kernel, relu=relu)
    return pl.pallas_call(
        kernel,
        out_shape=jax.ShapeDtypeStruct((M, G), out_dtype),
        grid_spec=pltpu.PrefetchScalarGridSpec(
            num_scalar_prefetch=0,
            grid=(M // bm,),
            in_specs=in_specs,
            out_specs=pl.BlockSpec((bm, G), lambda i: (i, 0)),
        ),
        compiler_params=pltpu.CompilerParams(
            dimension_semantics=("parallel",)),
    )(*args)


# ----------------------------------------------------------------------------
# Conv / norm helpers (spatial glue in plain JAX, compute in Pallas)
# ----------------------------------------------------------------------------
def _im2col(x, kh, kw, stride):
    N, H, W, C = x.shape
    Ho = (H - kh) // stride + 1
    Wo = (W - kw) // stride + 1
    cols = []
    for i in range(kh):
        for j in range(kw):
            cols.append(x[:, i:i + stride * Ho:stride,
                          j:j + stride * Wo:stride, :])
    patches = jnp.stack(cols, axis=3)                      # [N, Ho, Wo, kh*kw, C]
    return patches.reshape(N * Ho * Wo, kh * kw * C), (N, Ho, Wo)


def batch_norm_apply(y2d, stats, gamma, beta, relu, M, phases, res2d=None):
    """Training-mode BatchNorm2d from fused partial sum/sumsq stats."""
    G = y2d.shape[1]
    C = G // phases
    s = stats[0::8].sum(axis=0).reshape(phases, C).sum(axis=0)
    sq = stats[1::8].sum(axis=0).reshape(phases, C).sum(axis=0)
    cnt = M * phases
    mean = s / cnt
    var = jnp.maximum(sq / cnt - mean * mean, 0.0)   # clamp f32 cancellation
    invstd = jax.lax.rsqrt(var + EPS)
    scale = gamma * invstd
    shift = beta - mean * scale
    if phases > 1:
        scale = jnp.tile(scale, (phases,))
        shift = jnp.tile(shift, (phases,))
    return pallas_norm_act(y2d, scale, shift, relu, res2d=res2d)


def conv2d_bn(x, w, gamma, beta, relu, stride=1, res2d=None, phases=1):
    """Conv (no bias) + BatchNorm(+ReLU)(+residual).  x: NHWC bf16 (already
    spatially padded); w: [Cout*phases, Cin, kh, kw] (PyTorch Conv2d layout).
    Returns the (M, Cout*phases) bf16 slab and (N, Ho, Wo)."""
    G, Cin, kh, kw = w.shape
    patches, (N, Ho, Wo) = _im2col(x, kh, kw, stride)
    w_mat = jnp.transpose(w, (2, 3, 1, 0)).reshape(kh * kw * Cin, G)
    y2d, stats = pallas_conv_stats(patches, w_mat)
    M = N * Ho * Wo
    out2d = batch_norm_apply(y2d, stats, gamma, beta, relu, M, phases, res2d=res2d)
    return out2d, (N, Ho, Wo)


def reflect_pad(x, p):
    return jnp.pad(x, ((0, 0), (p, p), (p, p), (0, 0)), mode="reflect")


def zero_pad(x, p):
    return jnp.pad(x, ((0, 0), (p, p), (p, p), (0, 0)))


def _convtranspose_phase_weight(wt):
    """ConvTranspose2d(k=3, s=2, p=1, op=1) as a 2x2 stride-1 conv producing 4
    phase-packed output channel groups (sub-pixel decomposition).
    wt: [Cin, Cout, 3, 3] (PyTorch ConvTranspose2d layout).
    Returns Conv2d-layout weight [4*Cout, Cin, 2, 2]; group g = a*2 + b writes
    output pixel (2*h + a, 2*w + b)."""
    cin, cout = wt.shape[0], wt.shape[1]
    wc = jnp.zeros((4 * cout, cin, 2, 2), wt.dtype)
    for a in range(2):
        for b in range(2):
            g = a * 2 + b
            for i in range(2):
                kh = 1 + a - 2 * i
                if not 0 <= kh <= 2:
                    continue
                for j in range(2):
                    kw = 1 + b - 2 * j
                    if not 0 <= kw <= 2:
                        continue
                    wc = wc.at[g * cout:(g + 1) * cout, :, i, j].set(
                        jnp.transpose(wt[:, :, kh, kw], (1, 0)))
    return wc


def _interleave_phases(out2d, N, H, W):
    """(N*H*W, 4*C) phase-packed slab -> (N, 2H, 2W, C) NHWC."""
    C = out2d.shape[1] // 4
    y = out2d.reshape(N, H, W, 2, 2, C)
    y = jnp.transpose(y, (0, 1, 3, 2, 4, 5))
    return y.reshape(N, 2 * H, 2 * W, C)


# ----------------------------------------------------------------------------
# ResnetGenerator parameters + forward
# ----------------------------------------------------------------------------
def init_params(key, input_nc=3, output_nc=3, ngf=8, n_blocks=2):
    keys = iter(jax.random.split(key, 64))

    def conv_w(cout, cin, k):
        return 0.05 * jax.random.normal(next(keys), (cout, cin, k, k), jnp.float32)

    def bn(c):
        return (jnp.ones((c,), jnp.float32), jnp.zeros((c,), jnp.float32))

    params = {}
    params["c0_w"] = conv_w(ngf, input_nc, 7)           # 7x7 conv, bias=False (BN)
    params["c0_bn"] = bn(ngf)
    params["down"] = []
    for i in range(2):
        mult = 2 ** i
        params["down"].append(
            dict(w=conv_w(ngf * mult * 2, ngf * mult, 3), bn=bn(ngf * mult * 2)))
    dim = ngf * 4
    params["blocks"] = []
    for _ in range(n_blocks):
        params["blocks"].append(dict(w1=conv_w(dim, dim, 3), bn1=bn(dim),
                                     w2=conv_w(dim, dim, 3), bn2=bn(dim)))
    params["up"] = []
    for i in range(2):
        mult = 2 ** (2 - i)
        cin, cout = ngf * mult, ngf * mult // 2
        wt = 0.05 * jax.random.normal(next(keys), (cin, cout, 3, 3), jnp.float32)
        params["up"].append(dict(w=wt, bn=bn(cout)))
    params["cf_w"] = conv_w(output_nc, ngf, 7)
    params["cf_b"] = 0.05 * jax.random.normal(next(keys), (output_nc,), jnp.float32)
    return params


def resnet_generator_forward(x_nchw, params):
    # NCHW -> NHWC, bf16 activations (all matmuls accumulate in f32).
    x = jnp.transpose(x_nchw, (0, 2, 3, 1)).astype(jnp.bfloat16)

    # initial: ReflectionPad2d(3) -> Conv 7x7 -> BN -> ReLU
    out2d, (N, H, W) = conv2d_bn(reflect_pad(x, 3), params["c0_w"],
                                 *params["c0_bn"], relu=True)
    h = out2d.reshape(N, H, W, -1)

    # downsampling: Conv 3x3 s2 p1 -> BN -> ReLU
    for layer in params["down"]:
        out2d, (N, H, W) = conv2d_bn(zero_pad(h, 1), layer["w"], *layer["bn"],
                                     relu=True, stride=2)
        h = out2d.reshape(N, H, W, -1)

    # ResnetBlocks (reflect padding; Dropout(p=0) == identity)
    for blk in params["blocks"]:
        res2d = h.reshape(-1, h.shape[-1])
        t2d, (N, H, W) = conv2d_bn(reflect_pad(h, 1), blk["w1"], *blk["bn1"],
                                   relu=True)
        t = t2d.reshape(N, H, W, -1)
        o2d, (N, H, W) = conv2d_bn(reflect_pad(t, 1), blk["w2"], *blk["bn2"],
                                   relu=False, res2d=res2d)
        h = o2d.reshape(N, H, W, -1)

    # upsampling: ConvTranspose 3x3 s2 p1 op1 -> BN -> ReLU  (4-phase sub-pixel)
    for layer in params["up"]:
        wc = _convtranspose_phase_weight(layer["w"])
        xp = jnp.pad(h, ((0, 0), (0, 1), (0, 1), (0, 0)))   # bottom/right zero row/col
        out2d, (N, Ho, Wo) = conv2d_bn(xp, wc, *layer["bn"], relu=True, phases=4)
        h = _interleave_phases(out2d, N, Ho, Wo)

    # final: ReflectionPad2d(3) -> Conv 7x7 (bias) -> Tanh (fused epilogue)
    hp = reflect_pad(h, 3)
    Cin = h.shape[-1]
    patches, (N, Ho, Wo) = _im2col(hp, 7, 7, 1)
    w_mat = jnp.transpose(params["cf_w"], (2, 3, 1, 0)).reshape(49 * Cin, -1)
    y2d = pallas_conv_bias(patches, w_mat, params["cf_b"], act="tanh")
    out = y2d.reshape(N, Ho, Wo, -1)
    return jnp.transpose(out, (0, 3, 1, 2)).astype(jnp.float32)  # NHWC -> NCHW


if __name__ == "__main__":
    key = jax.random.PRNGKey(0)
    pkey, xkey = jax.random.split(key)
    # Small config: input_nc=3, output_nc=3, ngf=8, n_blocks=2, 16x16 images, batch=2.
    params = init_params(pkey, input_nc=3, output_nc=3, ngf=8, n_blocks=2)
    x = jax.random.normal(xkey, (2, 3, 16, 16), jnp.float32)

    fwd = jax.jit(resnet_generator_forward)
    out = jax.block_until_ready(fwd(x, params))

    assert out.shape == (2, 3, 16, 16), out.shape
    assert bool(jnp.all(jnp.isfinite(out)))
    assert bool(jnp.all(jnp.abs(out) <= 1.0))  # tanh output range
    print("KERNEL_OK")
</pallas_src>

<mosaic_0001>
module attributes {stable_mosaic.version = 11 : i64} {
  func.func @_norm_act_kernel(%arg0: i32, %arg1: memref<256x8xbf16, #tpu.memory_space<vmem>>, %arg2: memref<1x8xf32, #tpu.memory_space<vmem>>, %arg3: memref<1x8xf32, #tpu.memory_space<vmem>>, %arg4: memref<256x8xbf16, #tpu.memory_space<vmem>>) attributes {dimension_semantics = [#tpu.dimension_semantics<parallel>], iteration_bounds = array<i64: 2>, scalar_prefetch = 0 : i64, scratch_operands = 0 : i64, tpu.core_type = #tpu.core_type<tc>, window_params = [{transform_indices = @transform_0, window_bounds = array<i64: 256, 8>}, {pipeline_mode = #tpu.pipeline_mode<synchronous>, transform_indices = @transform_1, window_bounds = array<i64: 1, 8>}, {pipeline_mode = #tpu.pipeline_mode<synchronous>, transform_indices = @transform_2, window_bounds = array<i64: 1, 8>}, {transform_indices = @transform_3, window_bounds = array<i64: 256, 8>}]} {
    %c0 = arith.constant 0 : index
    %c0_0 = arith.constant 0 : index
    %0 = vector.load %arg1[%c0, %c0_0] : memref<256x8xbf16, #tpu.memory_space<vmem>>, vector<256x8xbf16>
    %1 = arith.extf %0 : vector<256x8xbf16> to vector<256x8xf32>
    %c0_1 = arith.constant 0 : index
    %c0_2 = arith.constant 0 : index
    %2 = vector.load %arg2[%c0_1, %c0_2] : memref<1x8xf32, #tpu.memory_space<vmem>>, vector<1x8xf32>
    %3 = vector.broadcast %2 : vector<1x8xf32> to vector<256x8xf32>
    %4 = arith.mulf %1, %3 : vector<256x8xf32>
    %c0_3 = arith.constant 0 : index
    %c0_4 = arith.constant 0 : index
    %5 = vector.load %arg3[%c0_3, %c0_4] : memref<1x8xf32, #tpu.memory_space<vmem>>, vector<1x8xf32>
    %6 = vector.broadcast %5 : vector<1x8xf32> to vector<256x8xf32>
    %7 = arith.addf %4, %6 : vector<256x8xf32>
    %cst = arith.constant 0.000000e+00 : f32
    %8 = vector.broadcast %cst : f32 to vector<256x8xf32>
    %9 = arith.maximumf %7, %8 : vector<256x8xf32>
    %10 = arith.truncf %9 : vector<256x8xf32> to vector<256x8xbf16>
    %c0_5 = arith.constant 0 : index
    %c0_6 = arith.constant 0 : index
    %11 = vector.load %arg4[%c0_5, %c0_6] : memref<256x8xbf16, #tpu.memory_space<vmem>>, vector<256x8xbf16>
    tpu.vector_store %arg4[%c0_5, %c0_6], %10 {strides = array<i32>} : memref<256x8xbf16, #tpu.memory_space<vmem>>, vector<256x8xbf16>,
    return
  }
  func.func @transform_0(%arg0: i32) -> (i32, i32) {
    %c0_i32 = arith.constant 0 : i32
    %c0_i32_0 = arith.constant 0 : i32
    return %arg0, %c0_i32 : i32, i32
  }
  func.func @transform_1(%arg0: i32) -> (i32, i32) {
    %c0_i32 = arith.constant 0 : i32
    %c0_i32_0 = arith.constant 0 : i32
    %c0_i32_1 = arith.constant 0 : i32
    return %c0_i32, %c0_i32_0 : i32, i32
  }
  func.func @transform_2(%arg0: i32) -> (i32, i32) {
    %c0_i32 = arith.constant 0 : i32
    %c0_i32_0 = arith.constant 0 : i32
    %c0_i32_1 = arith.constant 0 : i32
    return %c0_i32, %c0_i32_0 : i32, i32
  }
  func.func @transform_3(%arg0: i32) -> (i32, i32) {
    %c0_i32 = arith.constant 0 : i32
    %c0_i32_0 = arith.constant 0 : i32
    return %arg0, %c0_i32 : i32, i32
  }
}

module attributes {stable_mosaic.version = 11 : i64} {
  func.func @_conv_stats_kernel(%arg0: i32, %arg1: memref<256x147xbf16, #tpu.memory_space<vmem>>, %arg2: memref<147x8xbf16, #tpu.memory_space<vmem>>, %arg3: memref<256x8xbf16, #tpu.memory_space<vmem>>, %arg4: memref<8x8xf32, #tpu.memory_space<vmem>>) attributes {dimension_semantics = [#tpu.dimension_semantics<parallel>], iteration_bounds = array<i64: 2>, scalar_prefetch = 0 : i64, scratch_operands = 0 : i64, tpu.core_type = #tpu.core_type<tc>, window_params = [{transform_indices = @transform_0, window_bounds = array<i64: 256, 147>}, {pipeline_mode = #tpu.pipeline_mode<synchronous>, transform_indices = @transform_1, window_bounds = array<i64: 147, 8>}, {transform_indices = @transform_2, window_bounds = array<i64: 256, 8>}, {transform_indices = @transform_3, window_bounds = array<i64: 8, 8>}]} {
    %c0 = arith.constant 0 : index
    %c0_0 = arith.constant 0 : index
    %0 = vector.load %arg1[%c0, %c0_0] : memref<256x147xbf16, #tpu.memory_space<vmem>>, vector<256x147xbf16>
    %c0_1 = arith.constant 0 : index
    %c0_2 = arith.constant 0 : index
    %1 = vector.load %arg2[%c0_1, %c0_2] : memref<147x8xbf16, #tpu.memory_space<vmem>>, vector<147x8xbf16>
    %cst = arith.constant dense<0.000000e+00> : vector<256x8xf32>
    %2 = tpu.matmul %0, %1, %cst {dimension_numbers = #tpu.dot_dimension_numbers<[1], [0], [0], [1], [0, 0, 1, 1], [], []>} : vector<256x147xbf16>, vector<147x8xbf16>, vector<256x8xf32> -> vector<256x8xf32>
    %3 = arith.truncf %2 : vector<256x8xf32> to vector<256x8xbf16>
    %c0_3 = arith.constant 0 : index
    %c0_4 = arith.constant 0 : index
    %4 = vector.load %arg3[%c0_3, %c0_4] : memref<256x8xbf16, #tpu.memory_space<vmem>>, vector<256x8xbf16>
    tpu.vector_store %arg3[%c0_3, %c0_4], %3 {strides = array<i32>} : memref<256x8xbf16, #tpu.memory_space<vmem>>, vector<256x8xbf16>,
    %cst_5 = arith.constant dense<0.000000e+00> : vector<8xf32>
    %5 = vector.multi_reduction <add>, %2, %cst_5 [0] : vector<256x8xf32> to vector<8xf32>
    %6 = vector.shape_cast %5 : vector<8xf32> to vector<1x8xf32>
    %7 = arith.mulf %2, %2 : vector<256x8xf32>
    %cst_6 = arith.constant dense<0.000000e+00> : vector<8xf32>
    %8 = vector.multi_reduction <add>, %7, %cst_6 [0] : vector<256x8xf32> to vector<8xf32>
    %9 = vector.shape_cast %8 : vector<8xf32> to vector<1x8xf32>
    %10 = tpu.iota {dimensions = array<i32: 0>} : vector<8x8xi32>
    %c0_i32 = arith.constant 0 : i32
    %11 = vector.broadcast %c0_i32 : i32 to vector<8x8xi32>
    %12 = arith.cmpi eq, %10, %11 : vector<8x8xi32>
    %cst_7 = arith.constant 0.000000e+00 : f32
    %13 = vector.shape_cast %6 : vector<1x8xf32> to vector<1x8xf32>
    %14 = vector.broadcast %13 : vector<1x8xf32> to vector<8x8xf32>
    %15 = vector.broadcast %cst_7 : f32 to vector<8x8xf32>
    %16 = arith.select %12, %14, %15 : vector<8x8xi1>, vector<8x8xf32>
    %c1_i32 = arith.constant 1 : i32
    %17 = vector.broadcast %c1_i32 : i32 to vector<8x8xi32>
    %18 = arith.cmpi eq, %10, %17 : vector<8x8xi32>
    %cst_8 = arith.constant 0.000000e+00 : f32
    %19 = vector.shape_cast %9 : vector<1x8xf32> to vector<1x8xf32>
    %20 = vector.broadcast %19 : vector<1x8xf32> to vector<8x8xf32>
    %21 = vector.broadcast %cst_8 : f32 to vector<8x8xf32>
    %22 = arith.select %18, %20, %21 : vector<8x8xi1>, vector<8x8xf32>
    %23 = arith.addf %16, %22 : vector<8x8xf32>
    %c0_9 = arith.constant 0 : index
    %c0_10 = arith.constant 0 : index
    %24 = vector.load %arg4[%c0_9, %c0_10] : memref<8x8xf32, #tpu.memory_space<vmem>>, vector<8x8xf32>
    tpu.vector_store %arg4[%c0_9, %c0_10], %23 {strides = array<i32>} : memref<8x8xf32, #tpu.memory_space<vmem>>, vector<8x8xf32>,
    return
  }
  func.func @transform_0(%arg0: i32) -> (i32, i32) {
    %c0_i32 = arith.constant 0 : i32
    %c0_i32_0 = arith.constant 0 : i32
    return %arg0, %c0_i32 : i32, i32
  }
  func.func @transform_1(%arg0: i32) -> (i32, i32) {
    %c0_i32 = arith.constant 0 : i32
    %c0_i32_0 = arith.constant 0 : i32
    %c0_i32_1 = arith.constant 0 : i32
    return %c0_i32, %c0_i32_0 : i32, i32
  }
  func.func @transform_2(%arg0: i32) -> (i32, i32) {
    %c0_i32 = arith.constant 0 : i32
    %c0_i32_0 = arith.constant 0 : i32
    return %arg0, %c0_i32 : i32, i32
  }
  func.func @transform_3(%arg0: i32) -> (i32, i32) {
    %c0_i32 = arith.constant 0 : i32
    %c0_i32_0 = arith.constant 0 : i32
    return %arg0, %c0_i32 : i32, i32
  }
}

module attributes {stable_mosaic.version = 11 : i64} {
  func.func @_conv_stats_kernel(%arg0: i32, %arg1: memref<64x72xbf16, #tpu.memory_space<vmem>>, %arg2: memref<72x16xbf16, #tpu.memory_space<vmem>>, %arg3: memref<64x16xbf16, #tpu.memory_space<vmem>>, %arg4: memref<8x16xf32, #tpu.memory_space<vmem>>) attributes {dimension_semantics = [#tpu.dimension_semantics<parallel>], iteration_bounds = array<i64: 2>, scalar_prefetch = 0 : i64, scratch_operands = 0 : i64, tpu.core_type = #tpu.core_type<tc>, window_params = [{transform_indices = @transform_0, window_bounds = array<i64: 64, 72>}, {pipeline_mode = #tpu.pipeline_mode<synchronous>, transform_indices = @transform_1, window_bounds = array<i64: 72, 16>}, {transform_indices = @transform_2, window_bounds = array<i64: 64, 16>}, {transform_indices = @transform_3, window_bounds = array<i64: 8, 16>}]} {
    %c0 = arith.constant 0 : index
    %c0_0 = arith.constant 0 : index
    %0 = vector.load %arg1[%c0, %c0_0] : memref<64x72xbf16, #tpu.memory_space<vmem>>, vector<64x72xbf16>
    %c0_1 = arith.constant 0 : index
    %c0_2 = arith.constant 0 : index
    %1 = vector.load %arg2[%c0_1, %c0_2] : memref<72x16xbf16, #tpu.memory_space<vmem>>, vector<72x16xbf16>
    %cst = arith.constant dense<0.000000e+00> : vector<64x16xf32>
    %2 = tpu.matmul %0, %1, %cst {dimension_numbers = #tpu.dot_dimension_numbers<[1], [0], [0], [1], [0, 0, 1, 1], [], []>} : vector<64x72xbf16>, vector<72x16xbf16>, vector<64x16xf32> -> vector<64x16xf32>
    %3 = arith.truncf %2 : vector<64x16xf32> to vector<64x16xbf16>
    %c0_3 = arith.constant 0 : index
    %c0_4 = arith.constant 0 : index
    %4 = vector.load %arg3[%c0_3, %c0_4] : memref<64x16xbf16, #tpu.memory_space<vmem>>, vector<64x16xbf16>
    tpu.vector_store %arg3[%c0_3, %c0_4], %3 {strides = array<i32>} : memref<64x16xbf16, #tpu.memory_space<vmem>>, vector<64x16xbf16>,
    %cst_5 = arith.constant dense<0.000000e+00> : vector<16xf32>
    %5 = vector.multi_reduction <add>, %2, %cst_5 [0] : vector<64x16xf32> to vector<16xf32>
    %6 = vector.shape_cast %5 : vector<16xf32> to vector<1x16xf32>
    %7 = arith.mulf %2, %2 : vector<64x16xf32>
    %cst_6 = arith.constant dense<0.000000e+00> : vector<16xf32>
    %8 = vector.multi_reduction <add>, %7, %cst_6 [0] : vector<64x16xf32> to vector<16xf32>
    %9 = vector.shape_cast %8 : vector<16xf32> to vector<1x16xf32>
    %10 = tpu.iota {dimensions = array<i32: 0>} : vector<8x16xi32>
    %c0_i32 = arith.constant 0 : i32
    %11 = vector.broadcast %c0_i32 : i32 to vector<8x16xi32>
    %12 = arith.cmpi eq, %10, %11 : vector<8x16xi32>
    %cst_7 = arith.constant 0.000000e+00 : f32
    %13 = vector.shape_cast %6 : vector<1x16xf32> to vector<1x16xf32>
    %14 = vector.broadcast %13 : vector<1x16xf32> to vector<8x16xf32>
    %15 = vector.broadcast %cst_7 : f32 to vector<8x16xf32>
    %16 = arith.select %12, %14, %15 : vector<8x16xi1>, vector<8x16xf32>
    %c1_i32 = arith.constant 1 : i32
    %17 = vector.broadcast %c1_i32 : i32 to vector<8x16xi32>
    %18 = arith.cmpi eq, %10, %17 : vector<8x16xi32>
    %cst_8 = arith.constant 0.000000e+00 : f32
    %19 = vector.shape_cast %9 : vector<1x16xf32> to vector<1x16xf32>
    %20 = vector.broadcast %19 : vector<1x16xf32> to vector<8x16xf32>
    %21 = vector.broadcast %cst_8 : f32 to vector<8x16xf32>
    %22 = arith.select %18, %20, %21 : vector<8x16xi1>, vector<8x16xf32>
    %23 = arith.addf %16, %22 : vector<8x16xf32>
    %c0_9 = arith.constant 0 : index
    %c0_10 = arith.constant 0 : index
    %24 = vector.load %arg4[%c0_9, %c0_10] : memref<8x16xf32, #tpu.memory_space<vmem>>, vector<8x16xf32>
    tpu.vector_store %arg4[%c0_9, %c0_10], %23 {strides = array<i32>} : memref<8x16xf32, #tpu.memory_space<vmem>>, vector<8x16xf32>,
    return
  }
  func.func @transform_0(%arg0: i32) -> (i32, i32) {
    %c0_i32 = arith.constant 0 : i32
    %c0_i32_0 = arith.constant 0 : i32
    return %arg0, %c0_i32 : i32, i32
  }
  func.func @transform_1(%arg0: i32) -> (i32, i32) {
    %c0_i32 = arith.constant 0 : i32
    %c0_i32_0 = arith.constant 0 : i32
    %c0_i32_1 = arith.constant 0 : i32
    return %c0_i32, %c0_i32_0 : i32, i32
  }
  func.func @transform_2(%arg0: i32) -> (i32, i32) {
    %c0_i32 = arith.constant 0 : i32
    %c0_i32_0 = arith.constant 0 : i32
    return %arg0, %c0_i32 : i32, i32
  }
  func.func @transform_3(%arg0: i32) -> (i32, i32) {
    %c0_i32 = arith.constant 0 : i32
    %c0_i32_0 = arith.constant 0 : i32
    return %arg0, %c0_i32 : i32, i32
  }
}

module attributes {stable_mosaic.version = 11 : i64} {
  func.func @_norm_act_kernel(%arg0: i32, %arg1: memref<64x16xbf16, #tpu.memory_space<vmem>>, %arg2: memref<1x16xf32, #tpu.memory_space<vmem>>, %arg3: memref<1x16xf32, #tpu.memory_space<vmem>>, %arg4: memref<64x16xbf16, #tpu.memory_space<vmem>>) attributes {dimension_semantics = [#tpu.dimension_semantics<parallel>], iteration_bounds = array<i64: 2>, scalar_prefetch = 0 : i64, scratch_operands = 0 : i64, tpu.core_type = #tpu.core_type<tc>, window_params = [{transform_indices = @transform_0, window_bounds = array<i64: 64, 16>}, {pipeline_mode = #tpu.pipeline_mode<synchronous>, transform_indices = @transform_1, window_bounds = array<i64: 1, 16>}, {pipeline_mode = #tpu.pipeline_mode<synchronous>, transform_indices = @transform_2, window_bounds = array<i64: 1, 16>}, {transform_indices = @transform_3, window_bounds = array<i64: 64, 16>}]} {
    %c0 = arith.constant 0 : index
    %c0_0 = arith.constant 0 : index
    %0 = vector.load %arg1[%c0, %c0_0] : memref<64x16xbf16, #tpu.memory_space<vmem>>, vector<64x16xbf16>
    %1 = arith.extf %0 : vector<64x16xbf16> to vector<64x16xf32>
    %c0_1 = arith.constant 0 : index
    %c0_2 = arith.constant 0 : index
    %2 = vector.load %arg2[%c0_1, %c0_2] : memref<1x16xf32, #tpu.memory_space<vmem>>, vector<1x16xf32>
    %3 = vector.broadcast %2 : vector<1x16xf32> to vector<64x16xf32>
    %4 = arith.mulf %1, %3 : vector<64x16xf32>
    %c0_3 = arith.constant 0 : index
    %c0_4 = arith.constant 0 : index
    %5 = vector.load %arg3[%c0_3, %c0_4] : memref<1x16xf32, #tpu.memory_space<vmem>>, vector<1x16xf32>
    %6 = vector.broadcast %5 : vector<1x16xf32> to vector<64x16xf32>
    %7 = arith.addf %4, %6 : vector<64x16xf32>
    %cst = arith.constant 0.000000e+00 : f32
    %8 = vector.broadcast %cst : f32 to vector<64x16xf32>
    %9 = arith.maximumf %7, %8 : vector<64x16xf32>
    %10 = arith.truncf %9 : vector<64x16xf32> to vector<64x16xbf16>
    %c0_5 = arith.constant 0 : index
    %c0_6 = arith.constant 0 : index
    %11 = vector.load %arg4[%c0_5, %c0_6] : memref<64x16xbf16, #tpu.memory_space<vmem>>, vector<64x16xbf16>
    tpu.vector_store %arg4[%c0_5, %c0_6], %10 {strides = array<i32>} : memref<64x16xbf16, #tpu.memory_space<vmem>>, vector<64x16xbf16>,
    return
  }
  func.func @transform_0(%arg0: i32) -> (i32, i32) {
    %c0_i32 = arith.constant 0 : i32
    %c0_i32_0 = arith.constant 0 : i32
    return %arg0, %c0_i32 : i32, i32
  }
  func.func @transform_1(%arg0: i32) -> (i32, i32) {
    %c0_i32 = arith.constant 0 : i32
    %c0_i32_0 = arith.constant 0 : i32
    %c0_i32_1 = arith.constant 0 : i32
    return %c0_i32, %c0_i32_0 : i32, i32
  }
  func.func @transform_2(%arg0: i32) -> (i32, i32) {
    %c0_i32 = arith.constant 0 : i32
    %c0_i32_0 = arith.constant 0 : i32
    %c0_i32_1 = arith.constant 0 : i32
    return %c0_i32, %c0_i32_0 : i32, i32
  }
  func.func @transform_3(%arg0: i32) -> (i32, i32) {
    %c0_i32 = arith.constant 0 : i32
    %c0_i32_0 = arith.constant 0 : i32
    return %arg0, %c0_i32 : i32, i32
  }
}

module attributes {stable_mosaic.version = 11 : i64} {
  func.func @_conv_stats_kernel(%arg0: i32, %arg1: memref<16x144xbf16, #tpu.memory_space<vmem>>, %arg2: memref<144x32xbf16, #tpu.memory_space<vmem>>, %arg3: memref<16x32xbf16, #tpu.memory_space<vmem>>, %arg4: memref<8x32xf32, #tpu.memory_space<vmem>>) attributes {dimension_semantics = [#tpu.dimension_semantics<parallel>], iteration_bounds = array<i64: 2>, scalar_prefetch = 0 : i64, scratch_operands = 0 : i64, tpu.core_type = #tpu.core_type<tc>, window_params = [{transform_indices = @transform_0, window_bounds = array<i64: 16, 144>}, {pipeline_mode = #tpu.pipeline_mode<synchronous>, transform_indices = @transform_1, window_bounds = array<i64: 144, 32>}, {transform_indices = @transform_2, window_bounds = array<i64: 16, 32>}, {transform_indices = @transform_3, window_bounds = array<i64: 8, 32>}]} {
    %c0 = arith.constant 0 : index
    %c0_0 = arith.constant 0 : index
    %0 = vector.load %arg1[%c0, %c0_0] : memref<16x144xbf16, #tpu.memory_space<vmem>>, vector<16x144xbf16>
    %c0_1 = arith.constant 0 : index
    %c0_2 = arith.constant 0 : index
    %1 = vector.load %arg2[%c0_1, %c0_2] : memref<144x32xbf16, #tpu.memory_space<vmem>>, vector<144x32xbf16>
    %cst = arith.constant dense<0.000000e+00> : vector<16x32xf32>
    %2 = tpu.matmul %0, %1, %cst {dimension_numbers = #tpu.dot_dimension_numbers<[1], [0], [0], [1], [0, 0, 1, 1], [], []>} : vector<16x144xbf16>, vector<144x32xbf16>, vector<16x32xf32> -> vector<16x32xf32>
    %3 = arith.truncf %2 : vector<16x32xf32> to vector<16x32xbf16>
    %c0_3 = arith.constant 0 : index
    %c0_4 = arith.constant 0 : index
    %4 = vector.load %arg3[%c0_3, %c0_4] : memref<16x32xbf16, #tpu.memory_space<vmem>>, vector<16x32xbf16>
    tpu.vector_store %arg3[%c0_3, %c0_4], %3 {strides = array<i32>} : memref<16x32xbf16, #tpu.memory_space<vmem>>, vector<16x32xbf16>,
    %cst_5 = arith.constant dense<0.000000e+00> : vector<32xf32>
    %5 = vector.multi_reduction <add>, %2, %cst_5 [0] : vector<16x32xf32> to vector<32xf32>
    %6 = vector.shape_cast %5 : vector<32xf32> to vector<1x32xf32>
    %7 = arith.mulf %2, %2 : vector<16x32xf32>
    %cst_6 = arith.constant dense<0.000000e+00> : vector<32xf32>
    %8 = vector.multi_reduction <add>, %7, %cst_6 [0] : vector<16x32xf32> to vector<32xf32>
    %9 = vector.shape_cast %8 : vector<32xf32> to vector<1x32xf32>
    %10 = tpu.iota {dimensions = array<i32: 0>} : vector<8x32xi32>
    %c0_i32 = arith.constant 0 : i32
    %11 = vector.broadcast %c0_i32 : i32 to vector<8x32xi32>
    %12 = arith.cmpi eq, %10, %11 : vector<8x32xi32>
    %cst_7 = arith.constant 0.000000e+00 : f32
    %13 = vector.shape_cast %6 : vector<1x32xf32> to vector<1x32xf32>
    %14 = vector.broadcast %13 : vector<1x32xf32> to vector<8x32xf32>
    %15 = vector.broadcast %cst_7 : f32 to vector<8x32xf32>
    %16 = arith.select %12, %14, %15 : vector<8x32xi1>, vector<8x32xf32>
    %c1_i32 = arith.constant 1 : i32
    %17 = vector.broadcast %c1_i32 : i32 to vector<8x32xi32>
    %18 = arith.cmpi eq, %10, %17 : vector<8x32xi32>
    %cst_8 = arith.constant 0.000000e+00 : f32
    %19 = vector.shape_cast %9 : vector<1x32xf32> to vector<1x32xf32>
    %20 = vector.broadcast %19 : vector<1x32xf32> to vector<8x32xf32>
    %21 = vector.broadcast %cst_8 : f32 to vector<8x32xf32>
    %22 = arith.select %18, %20, %21 : vector<8x32xi1>, vector<8x32xf32>
    %23 = arith.addf %16, %22 : vector<8x32xf32>
    %c0_9 = arith.constant 0 : index
    %c0_10 = arith.constant 0 : index
    %24 = vector.load %arg4[%c0_9, %c0_10] : memref<8x32xf32, #tpu.memory_space<vmem>>, vector<8x32xf32>
    tpu.vector_store %arg4[%c0_9, %c0_10], %23 {strides = array<i32>} : memref<8x32xf32, #tpu.memory_space<vmem>>, vector<8x32xf32>,
    return
  }
  func.func @transform_0(%arg0: i32) -> (i32, i32) {
    %c0_i32 = arith.constant 0 : i32
    %c0_i32_0 = arith.constant 0 : i32
    return %arg0, %c0_i32 : i32, i32
  }
  func.func @transform_1(%arg0: i32) -> (i32, i32) {
    %c0_i32 = arith.constant 0 : i32
    %c0_i32_0 = arith.constant 0 : i32
    %c0_i32_1 = arith.constant 0 : i32
    return %c0_i32, %c0_i32_0 : i32, i32
  }
  func.func @transform_2(%arg0: i32) -> (i32, i32) {
    %c0_i32 = arith.constant 0 : i32
    %c0_i32_0 = arith.constant 0 : i32
    return %arg0, %c0_i32 : i32, i32
  }
  func.func @transform_3(%arg0: i32) -> (i32, i32) {
    %c0_i32 = arith.constant 0 : i32
    %c0_i32_0 = arith.constant 0 : i32
    return %arg0, %c0_i32 : i32, i32
  }
}

module attributes {stable_mosaic.version = 11 : i64} {
  func.func @_norm_act_kernel(%arg0: i32, %arg1: memref<16x32xbf16, #tpu.memory_space<vmem>>, %arg2: memref<1x32xf32, #tpu.memory_space<vmem>>, %arg3: memref<1x32xf32, #tpu.memory_space<vmem>>, %arg4: memref<16x32xbf16, #tpu.memory_space<vmem>>) attributes {dimension_semantics = [#tpu.dimension_semantics<parallel>], iteration_bounds = array<i64: 2>, scalar_prefetch = 0 : i64, scratch_operands = 0 : i64, tpu.core_type = #tpu.core_type<tc>, window_params = [{transform_indices = @transform_0, window_bounds = array<i64: 16, 32>}, {pipeline_mode = #tpu.pipeline_mode<synchronous>, transform_indices = @transform_1, window_bounds = array<i64: 1, 32>}, {pipeline_mode = #tpu.pipeline_mode<synchronous>, transform_indices = @transform_2, window_bounds = array<i64: 1, 32>}, {transform_indices = @transform_3, window_bounds = array<i64: 16, 32>}]} {
    %c0 = arith.constant 0 : index
    %c0_0 = arith.constant 0 : index
    %0 = vector.load %arg1[%c0, %c0_0] : memref<16x32xbf16, #tpu.memory_space<vmem>>, vector<16x32xbf16>
    %1 = arith.extf %0 : vector<16x32xbf16> to vector<16x32xf32>
    %c0_1 = arith.constant 0 : index
    %c0_2 = arith.constant 0 : index
    %2 = vector.load %arg2[%c0_1, %c0_2] : memref<1x32xf32, #tpu.memory_space<vmem>>, vector<1x32xf32>
    %3 = vector.broadcast %2 : vector<1x32xf32> to vector<16x32xf32>
    %4 = arith.mulf %1, %3 : vector<16x32xf32>
    %c0_3 = arith.constant 0 : index
    %c0_4 = arith.constant 0 : index
    %5 = vector.load %arg3[%c0_3, %c0_4] : memref<1x32xf32, #tpu.memory_space<vmem>>, vector<1x32xf32>
    %6 = vector.broadcast %5 : vector<1x32xf32> to vector<16x32xf32>
    %7 = arith.addf %4, %6 : vector<16x32xf32>
    %cst = arith.constant 0.000000e+00 : f32
    %8 = vector.broadcast %cst : f32 to vector<16x32xf32>
    %9 = arith.maximumf %7, %8 : vector<16x32xf32>
    %10 = arith.truncf %9 : vector<16x32xf32> to vector<16x32xbf16>
    %c0_5 = arith.constant 0 : index
    %c0_6 = arith.constant 0 : index
    %11 = vector.load %arg4[%c0_5, %c0_6] : memref<16x32xbf16, #tpu.memory_space<vmem>>, vector<16x32xbf16>
    tpu.vector_store %arg4[%c0_5, %c0_6], %10 {strides = array<i32>} : memref<16x32xbf16, #tpu.memory_space<vmem>>, vector<16x32xbf16>,
    return
  }
  func.func @transform_0(%arg0: i32) -> (i32, i32) {
    %c0_i32 = arith.constant 0 : i32
    %c0_i32_0 = arith.constant 0 : i32
    return %arg0, %c0_i32 : i32, i32
  }
  func.func @transform_1(%arg0: i32) -> (i32, i32) {
    %c0_i32 = arith.constant 0 : i32
    %c0_i32_0 = arith.constant 0 : i32
    %c0_i32_1 = arith.constant 0 : i32
    return %c0_i32, %c0_i32_0 : i32, i32
  }
  func.func @transform_2(%arg0: i32) -> (i32, i32) {
    %c0_i32 = arith.constant 0 : i32
    %c0_i32_0 = arith.constant 0 : i32
    %c0_i32_1 = arith.constant 0 : i32
    return %c0_i32, %c0_i32_0 : i32, i32
  }
  func.func @transform_3(%arg0: i32) -> (i32, i32) {
    %c0_i32 = arith.constant 0 : i32
    %c0_i32_0 = arith.constant 0 : i32
    return %arg0, %c0_i32 : i32, i32
  }
}

module attributes {stable_mosaic.version = 11 : i64} {
  func.func @_norm_res_kernel(%arg0: i32, %arg1: memref<16x32xbf16, #tpu.memory_space<vmem>>, %arg2: memref<1x32xf32, #tpu.memory_space<vmem>>, %arg3: memref<1x32xf32, #tpu.memory_space<vmem>>, %arg4: memref<16x32xbf16, #tpu.memory_space<vmem>>, %arg5: memref<16x32xbf16, #tpu.memory_space<vmem>>) attributes {dimension_semantics = [#tpu.dimension_semantics<parallel>], iteration_bounds = array<i64: 2>, scalar_prefetch = 0 : i64, scratch_operands = 0 : i64, tpu.core_type = #tpu.core_type<tc>, window_params = [{transform_indices = @transform_0, window_bounds = array<i64: 16, 32>}, {pipeline_mode = #tpu.pipeline_mode<synchronous>, transform_indices = @transform_1, window_bounds = array<i64: 1, 32>}, {pipeline_mode = #tpu.pipeline_mode<synchronous>, transform_indices = @transform_2, window_bounds = array<i64: 1, 32>}, {transform_indices = @transform_3, window_bounds = array<i64: 16, 32>}, {transform_indices = @transform_4, window_bounds = array<i64: 16, 32>}]} {
    %c0 = arith.constant 0 : index
    %c0_0 = arith.constant 0 : index
    %0 = vector.load %arg1[%c0, %c0_0] : memref<16x32xbf16, #tpu.memory_space<vmem>>, vector<16x32xbf16>
    %1 = arith.extf %0 : vector<16x32xbf16> to vector<16x32xf32>
    %c0_1 = arith.constant 0 : index
    %c0_2 = arith.constant 0 : index
    %2 = vector.load %arg2[%c0_1, %c0_2] : memref<1x32xf32, #tpu.memory_space<vmem>>, vector<1x32xf32>
    %3 = vector.broadcast %2 : vector<1x32xf32> to vector<16x32xf32>
    %4 = arith.mulf %1, %3 : vector<16x32xf32>
    %c0_3 = arith.constant 0 : index
    %c0_4 = arith.constant 0 : index
    %5 = vector.load %arg3[%c0_3, %c0_4] : memref<1x32xf32, #tpu.memory_space<vmem>>, vector<1x32xf32>
    %6 = vector.broadcast %5 : vector<1x32xf32> to vector<16x32xf32>
    %7 = arith.addf %4, %6 : vector<16x32xf32>
    %c0_5 = arith.constant 0 : index
    %c0_6 = arith.constant 0 : index
    %8 = vector.load %arg4[%c0_5, %c0_6] : memref<16x32xbf16, #tpu.memory_space<vmem>>, vector<16x32xbf16>
    %9 = arith.extf %8 : vector<16x32xbf16> to vector<16x32xf32>
    %10 = arith.addf %7, %9 : vector<16x32xf32>
    %11 = arith.truncf %10 : vector<16x32xf32> to vector<16x32xbf16>
    %c0_7 = arith.constant 0 : index
    %c0_8 = arith.constant 0 : index
    %12 = vector.load %arg5[%c0_7, %c0_8] : memref<16x32xbf16, #tpu.memory_space<vmem>>, vector<16x32xbf16>
    tpu.vector_store %arg5[%c0_7, %c0_8], %11 {strides = array<i32>} : memref<16x32xbf16, #tpu.memory_space<vmem>>, vector<16x32xbf16>,
    return
  }
  func.func @transform_0(%arg0: i32) -> (i32, i32) {
    %c0_i32 = arith.constant 0 : i32
    %c0_i32_0 = arith.constant 0 : i32
    return %arg0, %c0_i32 : i32, i32
  }
  func.func @transform_1(%arg0: i32) -> (i32, i32) {
    %c0_i32 = arith.constant 0 : i32
    %c0_i32_0 = arith.constant 0 : i32
    %c0_i32_1 = arith.constant 0 : i32
    return %c0_i32, %c0_i32_0 : i32, i32
  }
  func.func @transform_2(%arg0: i32) -> (i32, i32) {
    %c0_i32 = arith.constant 0 : i32
    %c0_i32_0 = arith.constant 0 : i32
    %c0_i32_1 = arith.constant 0 : i32
    return %c0_i32, %c0_i32_0 : i32, i32
  }
  func.func @transform_3(%arg0: i32) -> (i32, i32) {
    %c0_i32 = arith.constant 0 : i32
    %c0_i32_0 = arith.constant 0 : i32
    return %arg0, %c0_i32 : i32, i32
  }
  func.func @transform_4(%arg0: i32) -> (i32, i32) {
    %c0_i32 = arith.constant 0 : i32
    %c0_i32_0 = arith.constant 0 : i32
    return %arg0, %c0_i32 : i32, i32
  }
}

module attributes {stable_mosaic.version = 11 : i64} {
  func.func @_conv_stats_kernel(%arg0: i32, %arg1: memref<16x288xbf16, #tpu.memory_space<vmem>>, %arg2: memref<288x32xbf16, #tpu.memory_space<vmem>>, %arg3: memref<16x32xbf16, #tpu.memory_space<vmem>>, %arg4: memref<8x32xf32, #tpu.memory_space<vmem>>) attributes {dimension_semantics = [#tpu.dimension_semantics<parallel>], iteration_bounds = array<i64: 2>, scalar_prefetch = 0 : i64, scratch_operands = 0 : i64, tpu.core_type = #tpu.core_type<tc>, window_params = [{transform_indices = @transform_0, window_bounds = array<i64: 16, 288>}, {pipeline_mode = #tpu.pipeline_mode<synchronous>, transform_indices = @transform_1, window_bounds = array<i64: 288, 32>}, {transform_indices = @transform_2, window_bounds = array<i64: 16, 32>}, {transform_indices = @transform_3, window_bounds = array<i64: 8, 32>}]} {
    %c0 = arith.constant 0 : index
    %c0_0 = arith.constant 0 : index
    %0 = vector.load %arg1[%c0, %c0_0] : memref<16x288xbf16, #tpu.memory_space<vmem>>, vector<16x288xbf16>
    %c0_1 = arith.constant 0 : index
    %c0_2 = arith.constant 0 : index
    %1 = vector.load %arg2[%c0_1, %c0_2] : memref<288x32xbf16, #tpu.memory_space<vmem>>, vector<288x32xbf16>
    %cst = arith.constant dense<0.000000e+00> : vector<16x32xf32>
    %2 = tpu.matmul %0, %1, %cst {dimension_numbers = #tpu.dot_dimension_numbers<[1], [0], [0], [1], [0, 0, 1, 1], [], []>} : vector<16x288xbf16>, vector<288x32xbf16>, vector<16x32xf32> -> vector<16x32xf32>
    %3 = arith.truncf %2 : vector<16x32xf32> to vector<16x32xbf16>
    %c0_3 = arith.constant 0 : index
    %c0_4 = arith.constant 0 : index
    %4 = vector.load %arg3[%c0_3, %c0_4] : memref<16x32xbf16, #tpu.memory_space<vmem>>, vector<16x32xbf16>
    tpu.vector_store %arg3[%c0_3, %c0_4], %3 {strides = array<i32>} : memref<16x32xbf16, #tpu.memory_space<vmem>>, vector<16x32xbf16>,
    %cst_5 = arith.constant dense<0.000000e+00> : vector<32xf32>
    %5 = vector.multi_reduction <add>, %2, %cst_5 [0] : vector<16x32xf32> to vector<32xf32>
    %6 = vector.shape_cast %5 : vector<32xf32> to vector<1x32xf32>
    %7 = arith.mulf %2, %2 : vector<16x32xf32>
    %cst_6 = arith.constant dense<0.000000e+00> : vector<32xf32>
    %8 = vector.multi_reduction <add>, %7, %cst_6 [0] : vector<16x32xf32> to vector<32xf32>
    %9 = vector.shape_cast %8 : vector<32xf32> to vector<1x32xf32>
    %10 = tpu.iota {dimensions = array<i32: 0>} : vector<8x32xi32>
    %c0_i32 = arith.constant 0 : i32
    %11 = vector.broadcast %c0_i32 : i32 to vector<8x32xi32>
    %12 = arith.cmpi eq, %10, %11 : vector<8x32xi32>
    %cst_7 = arith.constant 0.000000e+00 : f32
    %13 = vector.shape_cast %6 : vector<1x32xf32> to vector<1x32xf32>
    %14 = vector.broadcast %13 : vector<1x32xf32> to vector<8x32xf32>
    %15 = vector.broadcast %cst_7 : f32 to vector<8x32xf32>
    %16 = arith.select %12, %14, %15 : vector<8x32xi1>, vector<8x32xf32>
    %c1_i32 = arith.constant 1 : i32
    %17 = vector.broadcast %c1_i32 : i32 to vector<8x32xi32>
    %18 = arith.cmpi eq, %10, %17 : vector<8x32xi32>
    %cst_8 = arith.constant 0.000000e+00 : f32
    %19 = vector.shape_cast %9 : vector<1x32xf32> to vector<1x32xf32>
    %20 = vector.broadcast %19 : vector<1x32xf32> to vector<8x32xf32>
    %21 = vector.broadcast %cst_8 : f32 to vector<8x32xf32>
    %22 = arith.select %18, %20, %21 : vector<8x32xi1>, vector<8x32xf32>
    %23 = arith.addf %16, %22 : vector<8x32xf32>
    %c0_9 = arith.constant 0 : index
    %c0_10 = arith.constant 0 : index
    %24 = vector.load %arg4[%c0_9, %c0_10] : memref<8x32xf32, #tpu.memory_space<vmem>>, vector<8x32xf32>
    tpu.vector_store %arg4[%c0_9, %c0_10], %23 {strides = array<i32>} : memref<8x32xf32, #tpu.memory_space<vmem>>, vector<8x32xf32>,
    return
  }
  func.func @transform_0(%arg0: i32) -> (i32, i32) {
    %c0_i32 = arith.constant 0 : i32
    %c0_i32_0 = arith.constant 0 : i32
    return %arg0, %c0_i32 : i32, i32
  }
  func.func @transform_1(%arg0: i32) -> (i32, i32) {
    %c0_i32 = arith.constant 0 : i32
    %c0_i32_0 = arith.constant 0 : i32
    %c0_i32_1 = arith.constant 0 : i32
    return %c0_i32, %c0_i32_0 : i32, i32
  }
  func.func @transform_2(%arg0: i32) -> (i32, i32) {
    %c0_i32 = arith.constant 0 : i32
    %c0_i32_0 = arith.constant 0 : i32
    return %arg0, %c0_i32 : i32, i32
  }
  func.func @transform_3(%arg0: i32) -> (i32, i32) {
    %c0_i32 = arith.constant 0 : i32
    %c0_i32_0 = arith.constant 0 : i32
    return %arg0, %c0_i32 : i32, i32
  }
}

module attributes {stable_mosaic.version = 11 : i64} {
  func.func @_conv_stats_kernel(%arg0: i32, %arg1: memref<16x128xbf16, #tpu.memory_space<vmem>>, %arg2: memref<128x64xbf16, #tpu.memory_space<vmem>>, %arg3: memref<16x64xbf16, #tpu.memory_space<vmem>>, %arg4: memref<8x64xf32, #tpu.memory_space<vmem>>) attributes {dimension_semantics = [#tpu.dimension_semantics<parallel>], iteration_bounds = array<i64: 2>, scalar_prefetch = 0 : i64, scratch_operands = 0 : i64, tpu.core_type = #tpu.core_type<tc>, window_params = [{transform_indices = @transform_0, window_bounds = array<i64: 16, 128>}, {pipeline_mode = #tpu.pipeline_mode<synchronous>, transform_indices = @transform_1, window_bounds = array<i64: 128, 64>}, {transform_indices = @transform_2, window_bounds = array<i64: 16, 64>}, {transform_indices = @transform_3, window_bounds = array<i64: 8, 64>}]} {
    %c0 = arith.constant 0 : index
    %c0_0 = arith.constant 0 : index
    %0 = vector.load %arg1[%c0, %c0_0] : memref<16x128xbf16, #tpu.memory_space<vmem>>, vector<16x128xbf16>
    %c0_1 = arith.constant 0 : index
    %c0_2 = arith.constant 0 : index
    %1 = vector.load %arg2[%c0_1, %c0_2] : memref<128x64xbf16, #tpu.memory_space<vmem>>, vector<128x64xbf16>
    %cst = arith.constant dense<0.000000e+00> : vector<16x64xf32>
    %2 = tpu.matmul %0, %1, %cst {dimension_numbers = #tpu.dot_dimension_numbers<[1], [0], [0], [1], [0, 0, 1, 1], [], []>} : vector<16x128xbf16>, vector<128x64xbf16>, vector<16x64xf32> -> vector<16x64xf32>
    %3 = arith.truncf %2 : vector<16x64xf32> to vector<16x64xbf16>
    %c0_3 = arith.constant 0 : index
    %c0_4 = arith.constant 0 : index
    %4 = vector.load %arg3[%c0_3, %c0_4] : memref<16x64xbf16, #tpu.memory_space<vmem>>, vector<16x64xbf16>
    tpu.vector_store %arg3[%c0_3, %c0_4], %3 {strides = array<i32>} : memref<16x64xbf16, #tpu.memory_space<vmem>>, vector<16x64xbf16>,
    %cst_5 = arith.constant dense<0.000000e+00> : vector<64xf32>
    %5 = vector.multi_reduction <add>, %2, %cst_5 [0] : vector<16x64xf32> to vector<64xf32>
    %6 = vector.shape_cast %5 : vector<64xf32> to vector<1x64xf32>
    %7 = arith.mulf %2, %2 : vector<16x64xf32>
    %cst_6 = arith.constant dense<0.000000e+00> : vector<64xf32>
    %8 = vector.multi_reduction <add>, %7, %cst_6 [0] : vector<16x64xf32> to vector<64xf32>
    %9 = vector.shape_cast %8 : vector<64xf32> to vector<1x64xf32>
    %10 = tpu.iota {dimensions = array<i32: 0>} : vector<8x64xi32>
    %c0_i32 = arith.constant 0 : i32
    %11 = vector.broadcast %c0_i32 : i32 to vector<8x64xi32>
    %12 = arith.cmpi eq, %10, %11 : vector<8x64xi32>
    %cst_7 = arith.constant 0.000000e+00 : f32
    %13 = vector.shape_cast %6 : vector<1x64xf32> to vector<1x64xf32>
    %14 = vector.broadcast %13 : vector<1x64xf32> to vector<8x64xf32>
    %15 = vector.broadcast %cst_7 : f32 to vector<8x64xf32>
    %16 = arith.select %12, %14, %15 : vector<8x64xi1>, vector<8x64xf32>
    %c1_i32 = arith.constant 1 : i32
    %17 = vector.broadcast %c1_i32 : i32 to vector<8x64xi32>
    %18 = arith.cmpi eq, %10, %17 : vector<8x64xi32>
    %cst_8 = arith.constant 0.000000e+00 : f32
    %19 = vector.shape_cast %9 : vector<1x64xf32> to vector<1x64xf32>
    %20 = vector.broadcast %19 : vector<1x64xf32> to vector<8x64xf32>
    %21 = vector.broadcast %cst_8 : f32 to vector<8x64xf32>
    %22 = arith.select %18, %20, %21 : vector<8x64xi1>, vector<8x64xf32>
    %23 = arith.addf %16, %22 : vector<8x64xf32>
    %c0_9 = arith.constant 0 : index
    %c0_10 = arith.constant 0 : index
    %24 = vector.load %arg4[%c0_9, %c0_10] : memref<8x64xf32, #tpu.memory_space<vmem>>, vector<8x64xf32>
    tpu.vector_store %arg4[%c0_9, %c0_10], %23 {strides = array<i32>} : memref<8x64xf32, #tpu.memory_space<vmem>>, vector<8x64xf32>,
    return
  }
  func.func @transform_0(%arg0: i32) -> (i32, i32) {
    %c0_i32 = arith.constant 0 : i32
    %c0_i32_0 = arith.constant 0 : i32
    return %arg0, %c0_i32 : i32, i32
  }
  func.func @transform_1(%arg0: i32) -> (i32, i32) {
    %c0_i32 = arith.constant 0 : i32
    %c0_i32_0 = arith.constant 0 : i32
    %c0_i32_1 = arith.constant 0 : i32
    return %c0_i32, %c0_i32_0 : i32, i32
  }
  func.func @transform_2(%arg0: i32) -> (i32, i32) {
    %c0_i32 = arith.constant 0 : i32
    %c0_i32_0 = arith.constant 0 : i32
    return %arg0, %c0_i32 : i32, i32
  }
  func.func @transform_3(%arg0: i32) -> (i32, i32) {
    %c0_i32 = arith.constant 0 : i32
    %c0_i32_0 = arith.constant 0 : i32
    return %arg0, %c0_i32 : i32, i32
  }
}

module attributes {stable_mosaic.version = 11 : i64} {
  func.func @_norm_act_kernel(%arg0: i32, %arg1: memref<16x64xbf16, #tpu.memory_space<vmem>>, %arg2: memref<1x64xf32, #tpu.memory_space<vmem>>, %arg3: memref<1x64xf32, #tpu.memory_space<vmem>>, %arg4: memref<16x64xbf16, #tpu.memory_space<vmem>>) attributes {dimension_semantics = [#tpu.dimension_semantics<parallel>], iteration_bounds = array<i64: 2>, scalar_prefetch = 0 : i64, scratch_operands = 0 : i64, tpu.core_type = #tpu.core_type<tc>, window_params = [{transform_indices = @transform_0, window_bounds = array<i64: 16, 64>}, {pipeline_mode = #tpu.pipeline_mode<synchronous>, transform_indices = @transform_1, window_bounds = array<i64: 1, 64>}, {pipeline_mode = #tpu.pipeline_mode<synchronous>, transform_indices = @transform_2, window_bounds = array<i64: 1, 64>}, {transform_indices = @transform_3, window_bounds = array<i64: 16, 64>}]} {
    %c0 = arith.constant 0 : index
    %c0_0 = arith.constant 0 : index
    %0 = vector.load %arg1[%c0, %c0_0] : memref<16x64xbf16, #tpu.memory_space<vmem>>, vector<16x64xbf16>
    %1 = arith.extf %0 : vector<16x64xbf16> to vector<16x64xf32>
    %c0_1 = arith.constant 0 : index
    %c0_2 = arith.constant 0 : index
    %2 = vector.load %arg2[%c0_1, %c0_2] : memref<1x64xf32, #tpu.memory_space<vmem>>, vector<1x64xf32>
    %3 = vector.broadcast %2 : vector<1x64xf32> to vector<16x64xf32>
    %4 = arith.mulf %1, %3 : vector<16x64xf32>
    %c0_3 = arith.constant 0 : index
    %c0_4 = arith.constant 0 : index
    %5 = vector.load %arg3[%c0_3, %c0_4] : memref<1x64xf32, #tpu.memory_space<vmem>>, vector<1x64xf32>
    %6 = vector.broadcast %5 : vector<1x64xf32> to vector<16x64xf32>
    %7 = arith.addf %4, %6 : vector<16x64xf32>
    %cst = arith.constant 0.000000e+00 : f32
    %8 = vector.broadcast %cst : f32 to vector<16x64xf32>
    %9 = arith.maximumf %7, %8 : vector<16x64xf32>
    %10 = arith.truncf %9 : vector<16x64xf32> to vector<16x64xbf16>
    %c0_5 = arith.constant 0 : index
    %c0_6 = arith.constant 0 : index
    %11 = vector.load %arg4[%c0_5, %c0_6] : memref<16x64xbf16, #tpu.memory_space<vmem>>, vector<16x64xbf16>
    tpu.vector_store %arg4[%c0_5, %c0_6], %10 {strides = array<i32>} : memref<16x64xbf16, #tpu.memory_space<vmem>>, vector<16x64xbf16>,
    return
  }
  func.func @transform_0(%arg0: i32) -> (i32, i32) {
    %c0_i32 = arith.constant 0 : i32
    %c0_i32_0 = arith.constant 0 : i32
    return %arg0, %c0_i32 : i32, i32
  }
  func.func @transform_1(%arg0: i32) -> (i32, i32) {
    %c0_i32 = arith.constant 0 : i32
    %c0_i32_0 = arith.constant 0 : i32
    %c0_i32_1 = arith.constant 0 : i32
    return %c0_i32, %c0_i32_0 : i32, i32
  }
  func.func @transform_2(%arg0: i32) -> (i32, i32) {
    %c0_i32 = arith.constant 0 : i32
    %c0_i32_0 = arith.constant 0 : i32
    %c0_i32_1 = arith.constant 0 : i32
    return %c0_i32, %c0_i32_0 : i32, i32
  }
  func.func @transform_3(%arg0: i32) -> (i32, i32) {
    %c0_i32 = arith.constant 0 : i32
    %c0_i32_0 = arith.constant 0 : i32
    return %arg0, %c0_i32 : i32, i32
  }
}

module attributes {stable_mosaic.version = 11 : i64} {
  func.func @_conv_stats_kernel(%arg0: i32, %arg1: memref<64x64xbf16, #tpu.memory_space<vmem>>, %arg2: memref<64x32xbf16, #tpu.memory_space<vmem>>, %arg3: memref<64x32xbf16, #tpu.memory_space<vmem>>, %arg4: memref<8x32xf32, #tpu.memory_space<vmem>>) attributes {dimension_semantics = [#tpu.dimension_semantics<parallel>], iteration_bounds = array<i64: 2>, scalar_prefetch = 0 : i64, scratch_operands = 0 : i64, tpu.core_type = #tpu.core_type<tc>, window_params = [{transform_indices = @transform_0, window_bounds = array<i64: 64, 64>}, {pipeline_mode = #tpu.pipeline_mode<synchronous>, transform_indices = @transform_1, window_bounds = array<i64: 64, 32>}, {transform_indices = @transform_2, window_bounds = array<i64: 64, 32>}, {transform_indices = @transform_3, window_bounds = array<i64: 8, 32>}]} {
    %c0 = arith.constant 0 : index
    %c0_0 = arith.constant 0 : index
    %0 = vector.load %arg1[%c0, %c0_0] : memref<64x64xbf16, #tpu.memory_space<vmem>>, vector<64x64xbf16>
    %c0_1 = arith.constant 0 : index
    %c0_2 = arith.constant 0 : index
    %1 = vector.load %arg2[%c0_1, %c0_2] : memref<64x32xbf16, #tpu.memory_space<vmem>>, vector<64x32xbf16>
    %cst = arith.constant dense<0.000000e+00> : vector<64x32xf32>
    %2 = tpu.matmul %0, %1, %cst {dimension_numbers = #tpu.dot_dimension_numbers<[1], [0], [0], [1], [0, 0, 1, 1], [], []>} : vector<64x64xbf16>, vector<64x32xbf16>, vector<64x32xf32> -> vector<64x32xf32>
    %3 = arith.truncf %2 : vector<64x32xf32> to vector<64x32xbf16>
    %c0_3 = arith.constant 0 : index
    %c0_4 = arith.constant 0 : index
    %4 = vector.load %arg3[%c0_3, %c0_4] : memref<64x32xbf16, #tpu.memory_space<vmem>>, vector<64x32xbf16>
    tpu.vector_store %arg3[%c0_3, %c0_4], %3 {strides = array<i32>} : memref<64x32xbf16, #tpu.memory_space<vmem>>, vector<64x32xbf16>,
    %cst_5 = arith.constant dense<0.000000e+00> : vector<32xf32>
    %5 = vector.multi_reduction <add>, %2, %cst_5 [0] : vector<64x32xf32> to vector<32xf32>
    %6 = vector.shape_cast %5 : vector<32xf32> to vector<1x32xf32>
    %7 = arith.mulf %2, %2 : vector<64x32xf32>
    %cst_6 = arith.constant dense<0.000000e+00> : vector<32xf32>
    %8 = vector.multi_reduction <add>, %7, %cst_6 [0] : vector<64x32xf32> to vector<32xf32>
    %9 = vector.shape_cast %8 : vector<32xf32> to vector<1x32xf32>
    %10 = tpu.iota {dimensions = array<i32: 0>} : vector<8x32xi32>
    %c0_i32 = arith.constant 0 : i32
    %11 = vector.broadcast %c0_i32 : i32 to vector<8x32xi32>
    %12 = arith.cmpi eq, %10, %11 : vector<8x32xi32>
    %cst_7 = arith.constant 0.000000e+00 : f32
    %13 = vector.shape_cast %6 : vector<1x32xf32> to vector<1x32xf32>
    %14 = vector.broadcast %13 : vector<1x32xf32> to vector<8x32xf32>
    %15 = vector.broadcast %cst_7 : f32 to vector<8x32xf32>
    %16 = arith.select %12, %14, %15 : vector<8x32xi1>, vector<8x32xf32>
    %c1_i32 = arith.constant 1 : i32
    %17 = vector.broadcast %c1_i32 : i32 to vector<8x32xi32>
    %18 = arith.cmpi eq, %10, %17 : vector<8x32xi32>
    %cst_8 = arith.constant 0.000000e+00 : f32
    %19 = vector.shape_cast %9 : vector<1x32xf32> to vector<1x32xf32>
    %20 = vector.broadcast %19 : vector<1x32xf32> to vector<8x32xf32>
    %21 = vector.broadcast %cst_8 : f32 to vector<8x32xf32>
    %22 = arith.select %18, %20, %21 : vector<8x32xi1>, vector<8x32xf32>
    %23 = arith.addf %16, %22 : vector<8x32xf32>
    %c0_9 = arith.constant 0 : index
    %c0_10 = arith.constant 0 : index
    %24 = vector.load %arg4[%c0_9, %c0_10] : memref<8x32xf32, #tpu.memory_space<vmem>>, vector<8x32xf32>
    tpu.vector_store %arg4[%c0_9, %c0_10], %23 {strides = array<i32>} : memref<8x32xf32, #tpu.memory_space<vmem>>, vector<8x32xf32>,
    return
  }
  func.func @transform_0(%arg0: i32) -> (i32, i32) {
    %c0_i32 = arith.constant 0 : i32
    %c0_i32_0 = arith.constant 0 : i32
    return %arg0, %c0_i32 : i32, i32
  }
  func.func @transform_1(%arg0: i32) -> (i32, i32) {
    %c0_i32 = arith.constant 0 : i32
    %c0_i32_0 = arith.constant 0 : i32
    %c0_i32_1 = arith.constant 0 : i32
    return %c0_i32, %c0_i32_0 : i32, i32
  }
  func.func @transform_2(%arg0: i32) -> (i32, i32) {
    %c0_i32 = arith.constant 0 : i32
    %c0_i32_0 = arith.constant 0 : i32
    return %arg0, %c0_i32 : i32, i32
  }
  func.func @transform_3(%arg0: i32) -> (i32, i32) {
    %c0_i32 = arith.constant 0 : i32
    %c0_i32_0 = arith.constant 0 : i32
    return %arg0, %c0_i32 : i32, i32
  }
}

module attributes {stable_mosaic.version = 11 : i64} {
  func.func @_norm_act_kernel(%arg0: i32, %arg1: memref<64x32xbf16, #tpu.memory_space<vmem>>, %arg2: memref<1x32xf32, #tpu.memory_space<vmem>>, %arg3: memref<1x32xf32, #tpu.memory_space<vmem>>, %arg4: memref<64x32xbf16, #tpu.memory_space<vmem>>) attributes {dimension_semantics = [#tpu.dimension_semantics<parallel>], iteration_bounds = array<i64: 2>, scalar_prefetch = 0 : i64, scratch_operands = 0 : i64, tpu.core_type = #tpu.core_type<tc>, window_params = [{transform_indices = @transform_0, window_bounds = array<i64: 64, 32>}, {pipeline_mode = #tpu.pipeline_mode<synchronous>, transform_indices = @transform_1, window_bounds = array<i64: 1, 32>}, {pipeline_mode = #tpu.pipeline_mode<synchronous>, transform_indices = @transform_2, window_bounds = array<i64: 1, 32>}, {transform_indices = @transform_3, window_bounds = array<i64: 64, 32>}]} {
    %c0 = arith.constant 0 : index
    %c0_0 = arith.constant 0 : index
    %0 = vector.load %arg1[%c0, %c0_0] : memref<64x32xbf16, #tpu.memory_space<vmem>>, vector<64x32xbf16>
    %1 = arith.extf %0 : vector<64x32xbf16> to vector<64x32xf32>
    %c0_1 = arith.constant 0 : index
    %c0_2 = arith.constant 0 : index
    %2 = vector.load %arg2[%c0_1, %c0_2] : memref<1x32xf32, #tpu.memory_space<vmem>>, vector<1x32xf32>
    %3 = vector.broadcast %2 : vector<1x32xf32> to vector<64x32xf32>
    %4 = arith.mulf %1, %3 : vector<64x32xf32>
    %c0_3 = arith.constant 0 : index
    %c0_4 = arith.constant 0 : index
    %5 = vector.load %arg3[%c0_3, %c0_4] : memref<1x32xf32, #tpu.memory_space<vmem>>, vector<1x32xf32>
    %6 = vector.broadcast %5 : vector<1x32xf32> to vector<64x32xf32>
    %7 = arith.addf %4, %6 : vector<64x32xf32>
    %cst = arith.constant 0.000000e+00 : f32
    %8 = vector.broadcast %cst : f32 to vector<64x32xf32>
    %9 = arith.maximumf %7, %8 : vector<64x32xf32>
    %10 = arith.truncf %9 : vector<64x32xf32> to vector<64x32xbf16>
    %c0_5 = arith.constant 0 : index
    %c0_6 = arith.constant 0 : index
    %11 = vector.load %arg4[%c0_5, %c0_6] : memref<64x32xbf16, #tpu.memory_space<vmem>>, vector<64x32xbf16>
    tpu.vector_store %arg4[%c0_5, %c0_6], %10 {strides = array<i32>} : memref<64x32xbf16, #tpu.memory_space<vmem>>, vector<64x32xbf16>,
    return
  }
  func.func @transform_0(%arg0: i32) -> (i32, i32) {
    %c0_i32 = arith.constant 0 : i32
    %c0_i32_0 = arith.constant 0 : i32
    return %arg0, %c0_i32 : i32, i32
  }
  func.func @transform_1(%arg0: i32) -> (i32, i32) {
    %c0_i32 = arith.constant 0 : i32
    %c0_i32_0 = arith.constant 0 : i32
    %c0_i32_1 = arith.constant 0 : i32
    return %c0_i32, %c0_i32_0 : i32, i32
  }
  func.func @transform_2(%arg0: i32) -> (i32, i32) {
    %c0_i32 = arith.constant 0 : i32
    %c0_i32_0 = arith.constant 0 : i32
    %c0_i32_1 = arith.constant 0 : i32
    return %c0_i32, %c0_i32_0 : i32, i32
  }
  func.func @transform_3(%arg0: i32) -> (i32, i32) {
    %c0_i32 = arith.constant 0 : i32
    %c0_i32_0 = arith.constant 0 : i32
    return %arg0, %c0_i32 : i32, i32
  }
}

module attributes {stable_mosaic.version = 11 : i64} {
  func.func @_conv_bias_act_kernel(%arg0: i32, %arg1: memref<256x392xbf16, #tpu.memory_space<vmem>>, %arg2: memref<392x3xbf16, #tpu.memory_space<vmem>>, %arg3: memref<1x3xf32, #tpu.memory_space<vmem>>, %arg4: memref<256x3xf32, #tpu.memory_space<vmem>>) attributes {dimension_semantics = [#tpu.dimension_semantics<parallel>], iteration_bounds = array<i64: 2>, scalar_prefetch = 0 : i64, scratch_operands = 0 : i64, tpu.core_type = #tpu.core_type<tc>, window_params = [{transform_indices = @transform_0, window_bounds = array<i64: 256, 392>}, {pipeline_mode = #tpu.pipeline_mode<synchronous>, transform_indices = @transform_1, window_bounds = array<i64: 392, 3>}, {pipeline_mode = #tpu.pipeline_mode<synchronous>, transform_indices = @transform_2, window_bounds = array<i64: 1, 3>}, {transform_indices = @transform_3, window_bounds = array<i64: 256, 3>}]} {
    %c0 = arith.constant 0 : index
    %c0_0 = arith.constant 0 : index
    %0 = vector.load %arg1[%c0, %c0_0] : memref<256x392xbf16, #tpu.memory_space<vmem>>, vector<256x392xbf16>
    %c0_1 = arith.constant 0 : index
    %c0_2 = arith.constant 0 : index
    %1 = vector.load %arg2[%c0_1, %c0_2] : memref<392x3xbf16, #tpu.memory_space<vmem>>, vector<392x3xbf16>
    %cst = arith.constant dense<0.000000e+00> : vector<256x3xf32>
    %2 = tpu.matmul %0, %1, %cst {dimension_numbers = #tpu.dot_dimension_numbers<[1], [0], [0], [1], [0, 0, 1, 1], [], []>} : vector<256x392xbf16>, vector<392x3xbf16>, vector<256x3xf32> -> vector<256x3xf32>
    %c0_3 = arith.constant 0 : index
    %c0_4 = arith.constant 0 : index
    %3 = vector.load %arg3[%c0_3, %c0_4] : memref<1x3xf32, #tpu.memory_space<vmem>>, vector<1x3xf32>
    %4 = vector.broadcast %3 : vector<1x3xf32> to vector<256x3xf32>
    %5 = arith.addf %2, %4 : vector<256x3xf32>
    %6 = math.tanh %5 : vector<256x3xf32>
    %c0_5 = arith.constant 0 : index
    %c0_6 = arith.constant 0 : index
    %7 = vector.load %arg4[%c0_5, %c0_6] : memref<256x3xf32, #tpu.memory_space<vmem>>, vector<256x3xf32>
    tpu.vector_store %arg4[%c0_5, %c0_6], %6 {strides = array<i32>} : memref<256x3xf32, #tpu.memory_space<vmem>>, vector<256x3xf32>,
    return
  }
  func.func @transform_0(%arg0: i32) -> (i32, i32) {
    %c0_i32 = arith.constant 0 : i32
    %c0_i32_0 = arith.constant 0 : i32
    return %arg0, %c0_i32 : i32, i32
  }
  func.func @transform_1(%arg0: i32) -> (i32, i32) {
    %c0_i32 = arith.constant 0 : i32
    %c0_i32_0 = arith.constant 0 : i32
    %c0_i32_1 = arith.constant 0 : i32
    return %c0_i32, %c0_i32_0 : i32, i32
  }
  func.func @transform_2(%arg0: i32) -> (i32, i32) {
    %c0_i32 = arith.constant 0 : i32
    %c0_i32_0 = arith.constant 0 : i32
    %c0_i32_1 = arith.constant 0 : i32
    return %c0_i32, %c0_i32_0 : i32, i32
  }
  func.func @transform_3(%arg0: i32) -> (i32, i32) {
    %c0_i32 = arith.constant 0 : i32
    %c0_i32_0 = arith.constant 0 : i32
    return %arg0, %c0_i32 : i32, i32
  }
}

</mosaic_0001>

<bundles_post_ra>
// kernel: resnet_generator_forward.20
= control target key start
LH: loop header
LB: loop body
LE: loop exit
PB: predicated region body
PF: predicated region fallthrough
CT: control target
= control target key end

     0   :  { %s591_s12 = smov 0   ;;  %s773_s0 = inlined_call_operand.vmem [shape: bf16[512,8], index: 0, kind: input, shape index: {}]   ;;  %s774_s1 = inlined_call_operand.vmem [shape: f32[1,8], index: 1, kind: input, shape index: {}]   ;;  %s775_s2 = inlined_call_operand.vmem [shape: f32[1,8], index: 2, kind: input, shape index: {}]   ;;  %s776_s3 = inlined_call_operand.vmem [shape: bf16[512,8], index: 3, kind: output, shape index: {}]  }
   0x1 LB: > { %s463_s13 = sadd.s32 4294967295, %s569_s12   ;;  %p467_p0 = scmp.ge.s32.totalorder %s569_s12, 1  ;;  %s569_s12 = sphi %s591_s12, %s13_s12  }
   0x2   : > { %p138_p1 = scmp.lt.s32.totalorder %s569_s12, 3 }
   0x4   : > { %p139_p2 = pnand %p467_p0, %p138_p1 }
   0x5   : > { %s468_s14 = sshll.u32 (!%p139_p2), %s463_s13, 5 }
   0x6   : > { %142 = sbr.rel (%p139_p2) target bundleno = 63 (0x3f), region = 32  ;;  %p163_p3 = scmp.lt.s32.totalorder (!%p139_p2), %s468_s14, 63 }
   0xb   : > { %s778_s14 = smov (!%p163_p3, %s468_s14), 63  ;;  %v612_v0 = vld [vmem:[%s774_s1] ss:$0 sm:$0xff]  ;;  %vm374_vm0 = vcmask 60416  }
   0xc   : > { %s469_s15 = sshll.u32 %s778_s14, 2  ;;  %v620_v5 = vld [vmem:[%s775_s2] ss:$0 sm:$0xff] }
   0xd   : > { %s607_s18 = scalar_lea.vmem %s773_s0, %s469_s15  ;;  %s644_s25 = scalar_lea.vmem %s776_s3, %s469_s15 }
   0xe   : > { %v475_v1 = vld [vmem:[%s607_s18] sm:$0xff]   ;;  %v538_v2 = vld [vmem:[%s607_s18 + $0x8] sm:$0xff]   ;;  %v539_v3 = vld [vmem:[%s607_s18 + $0x10] sm:$0xff]  }
   0xf   : > { %v476_v4 = vunpack.c.l.bf16 %v475_v1  ;;  %v477_v6 = vunpack.c.h.bf16 %v475_v1  ;;  %v480_v7 = vunpack.c.l.bf16 %v538_v2  ;;  %v481_v8 = vunpack.c.h.bf16 %v538_v2  ;;  %v540_v9 = vld [vmem:[%s607_s18 + $0x18] sm:$0xff]   ;;  %v541_v38 = vld [vmem:[%s607_s18 + $0x20] sm:$0xff]   ;;  %v542_v39 = vld [vmem:[%s607_s18 + $0x28] sm:$0xff]  }
  0x10   : > { %v484_v10 = vunpack.c.l.bf16 %v539_v3  ;;  %v485_v11 = vunpack.c.h.bf16 %v539_v3  ;;  %v488_v12 = vunpack.c.l.bf16 %v540_v9  ;;  %v489_v13 = vunpack.c.h.bf16 %v540_v9  ;;  %v543_v44 = vld [vmem:[%s607_s18 + $0x30] sm:$0xff]   ;;  %v544_v45 = vld [vmem:[%s607_s18 + $0x38] sm:$0xff]  }
  0x11   : > { %v242_v14 = vmul.f32 %v612_v0, %v476_v4  ;;  %v243_v15 = vmul.f32 %v612_v0, %v477_v6  ;;  %v244_v16 = vmul.f32 %v612_v0, %v480_v7  ;;  %v245_v17 = vmul.f32 %v612_v0, %v481_v8 }
  0x12   : > { %v246_v18 = vmul.f32 %v612_v0, %v484_v10  ;;  %v247_v19 = vmul.f32 %v612_v0, %v485_v11  ;;  %v248_v20 = vmul.f32 %v612_v0, %v488_v12  ;;  %v249_v21 = vmul.f32 %v612_v0, %v489_v13  ;;  %v545_v12 = vld [vmem:[%s607_s18 + $0x40] sm:$0xff]   ;;  %v546_v13 = vld [vmem:[%s607_s18 + $0x48] sm:$0xff]  }
  0x13   : > { %v278_v22 = vadd.f32 %v620_v5, %v242_v14  ;;  %v279_v23 = vadd.f32 %v620_v5, %v243_v15  ;;  %v280_v24 = vadd.f32 %v620_v5, %v244_v16  ;;  %v281_v25 = vadd.f32 %v620_v5, %v245_v17 }
  0x14   : > { %v282_v26 = vadd.f32 %v620_v5, %v246_v18  ;;  %v283_v27 = vadd.f32 %v620_v5, %v247_v19  ;;  %v284_v28 = vadd.f32 %v620_v5, %v248_v20  ;;  %v285_v29 = vadd.f32 %v620_v5, %v249_v21 }
  0x15   : > { %v310_v30 = vmax.f32 %v278_v22, 0.0  ;;  %v311_v31 = vmax.f32 %v279_v23, 0.0  ;;  %v312_v32 = vmax.f32 %v280_v24, 0.0  ;;  %v313_v33 = vmax.f32 %v281_v25, 0.0 }
  0x16   : > { %v314_v34 = vmax.f32 %v282_v26, 0.0  ;;  %v315_v35 = vmax.f32 %v283_v27, 0.0  ;;  %v316_v36 = vmax.f32 %v284_v28, 0.0  ;;  %v317_v37 = vmax.f32 %v285_v29, 0.0  ;;  %v547_v26 = vld [vmem:[%s607_s18 + $0x50] sm:$0xff]   ;;  %v548_v27 = vld [vmem:[%s607_s18 + $0x58] sm:$0xff]  }
  0x17   : > { %v342_v40 = vpack.c.bf16 %v310_v30, %v310_v30  ;;  %v343_v41 = vpack.c.bf16 %v311_v31, %v311_v31  ;;  %v344_v42 = vpack.c.bf16 %v312_v32, %v312_v32  ;;  %v345_v43 = vpack.c.bf16 %v313_v33, %v313_v33 }
  0x18   : > { %v346_v46 = vpack.c.bf16 %v314_v34, %v314_v34  ;;  %v347_v47 = vpack.c.bf16 %v315_v35, %v315_v35  ;;  %v348_v48 = vpack.c.bf16 %v316_v36, %v316_v36  ;;  %v349_v49 = vpack.c.bf16 %v317_v37, %v317_v37 }
  0x19   : > { %375 = vst.msk [vmem:[%s644_s25] sm:$0xf] %vm374_vm0, %v342_v40  ;;  %v492_v50 = vunpack.c.l.bf16 %v541_v38  ;;  %v493_v51 = vunpack.c.h.bf16 %v541_v38  ;;  %v496_v52 = vunpack.c.l.bf16 %v542_v39  ;;  %v497_v53 = vunpack.c.h.bf16 %v542_v39 }
  0x1a   : > { %376 = vst.msk [vmem:[%s644_s25 + $0x4] sm:$0xf] %vm374_vm0, %v343_v41  ;;  %v500_v54 = vunpack.c.l.bf16 %v543_v44  ;;  %v501_v55 = vunpack.c.h.bf16 %v543_v44  ;;  %v504_v56 = vunpack.c.l.bf16 %v544_v45  ;;  %v505_v57 = vunpack.c.h.bf16 %v544_v45 }
  0x1b   : > { %377 = vst.msk [vmem:[%s644_s25 + $0x8] sm:$0xf] %vm374_vm0, %v344_v42  ;;  %v250_v58 = vmul.f32 %v612_v0, %v492_v50  ;;  %v251_v59 = vmul.f32 %v612_v0, %v493_v51  ;;  %v252_v60 = vmul.f32 %v612_v0, %v496_v52  ;;  %v253_v61 = vmul.f32 %v612_v0, %v497_v53 }
  0x1c   : > { %378 = vst.msk [vmem:[%s644_s25 + $0xc] sm:$0xf] %vm374_vm0, %v345_v43  ;;  %v254_v62 = vmul.f32 %v612_v0, %v500_v54  ;;  %v255_v63 = vmul.f32 %v612_v0, %v501_v55  ;;  %v256_v1 = vmul.f32 %v612_v0, %v504_v56  ;;  %v257_v2 = vmul.f32 %v612_v0, %v505_v57  ;;  %v549_v56 = vld [vmem:[%s607_s18 + $0x60] sm:$0xff]   ;;  %v550_v57 = vld [vmem:[%s607_s18 + $0x68] sm:$0xff]  }
  0x1d   : > { %379 = vst.msk [vmem:[%s644_s25 + $0x10] sm:$0xf] %vm374_vm0, %v346_v46  ;;  %v286_v3 = vadd.f32 %v620_v5, %v250_v58  ;;  %v287_v4 = vadd.f32 %v620_v5, %v251_v59  ;;  %v288_v6 = vadd.f32 %v620_v5, %v252_v60  ;;  %v289_v7 = vadd.f32 %v620_v5, %v253_v61 }
  0x1e   : > { %380 = vst.msk [vmem:[%s644_s25 + $0x14] sm:$0xf] %vm374_vm0, %v347_v47  ;;  %v290_v8 = vadd.f32 %v620_v5, %v254_v62  ;;  %v291_v9 = vadd.f32 %v620_v5, %v255_v63  ;;  %v292_v10 = vadd.f32 %v620_v5, %v256_v1  ;;  %v293_v11 = vadd.f32 %v620_v5, %v257_v2 }
  0x1f   : > { %381 = vst.msk [vmem:[%s644_s25 + $0x18] sm:$0xf] %vm374_vm0, %v348_v48  ;;  %v318_v14 = vmax.f32 %v286_v3, 0.0  ;;  %v319_v15 = vmax.f32 %v287_v4, 0.0  ;;  %v320_v16 = vmax.f32 %v288_v6, 0.0  ;;  %v321_v17 = vmax.f32 %v289_v7, 0.0 }
  0x20   : > { %382 = vst.msk [vmem:[%s644_s25 + $0x1c] sm:$0xf] %vm374_vm0, %v349_v49  ;;  %v322_v18 = vmax.f32 %v290_v8, 0.0  ;;  %v323_v19 = vmax.f32 %v291_v9, 0.0  ;;  %v324_v20 = vmax.f32 %v292_v10, 0.0  ;;  %v325_v21 = vmax.f32 %v293_v11, 0.0 }
  0x21   : > { %v350_v22 = vpack.c.bf16 %v318_v14, %v318_v14  ;;  %v351_v23 = vpack.c.bf16 %v319_v15, %v319_v15  ;;  %v352_v24 = vpack.c.bf16 %v320_v16, %v320_v16  ;;  %v353_v25 = vpack.c.bf16 %v321_v17, %v321_v17  ;;  %v551_v8 = vld [vmem:[%s607_s18 + $0x70] sm:$0xff]   ;;  %v552_v9 = vld [vmem:[%s607_s18 + $0x78] sm:$0xff]  }
  0x22   : > { %v354_v28 = vpack.c.bf16 %v322_v18, %v322_v18  ;;  %v355_v29 = vpack.c.bf16 %v323_v19, %v323_v19  ;;  %v356_v30 = vpack.c.bf16 %v324_v20, %v324_v20  ;;  %v357_v31 = vpack.c.bf16 %v325_v21, %v325_v21 }
  0x23   : > { %383 = vst.msk [vmem:[%s644_s25 + $0x20] sm:$0xf] %vm374_vm0, %v350_v22  ;;  %v508_v32 = vunpack.c.l.bf16 %v545_v12  ;;  %v509_v33 = vunpack.c.h.bf16 %v545_v12  ;;  %v512_v34 = vunpack.c.l.bf16 %v546_v13  ;;  %v513_v35 = vunpack.c.h.bf16 %v546_v13 }
  0x24   : > { %384 = vst.msk [vmem:[%s644_s25 + $0x24] sm:$0xf] %vm374_vm0, %v351_v23  ;;  %v516_v36 = vunpack.c.l.bf16 %v547_v26  ;;  %v517_v37 = vunpack.c.h.bf16 %v547_v26  ;;  %v520_v38 = vunpack.c.l.bf16 %v548_v27  ;;  %v521_v39 = vunpack.c.h.bf16 %v548_v27 }
  0x25   : > { %385 = vst.msk [vmem:[%s644_s25 + $0x28] sm:$0xf] %vm374_vm0, %v352_v24  ;;  %v258_v40 = vmul.f32 %v612_v0, %v508_v32  ;;  %v259_v41 = vmul.f32 %v612_v0, %v509_v33  ;;  %v260_v42 = vmul.f32 %v612_v0, %v512_v34  ;;  %v261_v43 = vmul.f32 %v612_v0, %v513_v35 }
  0x26   : > { %386 = vst.msk [vmem:[%s644_s25 + $0x2c] sm:$0xf] %vm374_vm0, %v353_v25  ;;  %v262_v44 = vmul.f32 %v612_v0, %v516_v36  ;;  %v263_v45 = vmul.f32 %v612_v0, %v517_v37  ;;  %v264_v46 = vmul.f32 %v612_v0, %v520_v38  ;;  %v265_v47 = vmul.f32 %v612_v0, %v521_v39 }
  0x27   : > { %387 = vst.msk [vmem:[%s644_s25 + $0x30] sm:$0xf] %vm374_vm0, %v354_v28  ;;  %v294_v48 = vadd.f32 %v620_v5, %v258_v40  ;;  %v295_v49 = vadd.f32 %v620_v5, %v259_v41  ;;  %v296_v50 = vadd.f32 %v620_v5, %v260_v42  ;;  %v297_v51 = vadd.f32 %v620_v5, %v261_v43 }
  0x28   : > { %388 = vst.msk [vmem:[%s644_s25 + $0x34] sm:$0xf] %vm374_vm0, %v355_v29  ;;  %v298_v52 = vadd.f32 %v620_v5, %v262_v44  ;;  %v299_v53 = vadd.f32 %v620_v5, %v263_v45  ;;  %v300_v54 = vadd.f32 %v620_v5, %v264_v46  ;;  %v301_v55 = vadd.f32 %v620_v5, %v265_v47 }
  0x29   : > { %389 = vst.msk [vmem:[%s644_s25 + $0x38] sm:$0xf] %vm374_vm0, %v356_v30  ;;  %v326_v58 = vmax.f32 %v294_v48, 0.0  ;;  %v327_v59 = vmax.f32 %v295_v49, 0.0  ;;  %v328_v60 = vmax.f32 %v296_v50, 0.0  ;;  %v329_v61 = vmax.f32 %v297_v51, 0.0 }
  0x2a   : > { %390 = vst.msk [vmem:[%s644_s25 + $0x3c] sm:$0xf] %vm374_vm0, %v357_v31  ;;  %v330_v62 = vmax.f32 %v298_v52, 0.0  ;;  %v331_v63 = vmax.f32 %v299_v53, 0.0  ;;  %v332_v1 = vmax.f32 %v300_v54, 0.0  ;;  %v333_v2 = vmax.f32 %v301_v55, 0.0 }
  0x2b   : > { %v358_v3 = vpack.c.bf16 %v326_v58, %v326_v58  ;;  %v359_v4 = vpack.c.bf16 %v327_v59, %v327_v59  ;;  %v360_v6 = vpack.c.bf16 %v328_v60, %v328_v60  ;;  %v361_v7 = vpack.c.bf16 %v329_v61, %v329_v61 }
  0x2c   : > { %v362_v10 = vpack.c.bf16 %v330_v62, %v330_v62  ;;  %v363_v11 = vpack.c.bf16 %v331_v63, %v331_v63  ;;  %v364_v12 = vpack.c.bf16 %v332_v1, %v332_v1  ;;  %v365_v13 = vpack.c.bf16 %v333_v2, %v333_v2 }
  0x2d   : > { %391 = vst.msk [vmem:[%s644_s25 + $0x40] sm:$0xf] %vm374_vm0, %v358_v3  ;;  %v524_v14 = vunpack.c.l.bf16 %v549_v56  ;;  %v525_v15 = vunpack.c.h.bf16 %v549_v56  ;;  %v528_v16 = vunpack.c.l.bf16 %v550_v57  ;;  %v529_v17 = vunpack.c.h.bf16 %v550_v57 }
  0x2e   : > { %392 = vst.msk [vmem:[%s644_s25 + $0x44] sm:$0xf] %vm374_vm0, %v359_v4  ;;  %v532_v18 = vunpack.c.l.bf16 %v551_v8  ;;  %v533_v19 = vunpack.c.h.bf16 %v551_v8  ;;  %v536_v20 = vunpack.c.l.bf16 %v552_v9  ;;  %v537_v21 = vunpack.c.h.bf16 %v552_v9 }
  0x2f   : > { %393 = vst.msk [vmem:[%s644_s25 + $0x48] sm:$0xf] %vm374_vm0, %v360_v6  ;;  %v266_v22 = vmul.f32 %v612_v0, %v524_v14  ;;  %v267_v23 = vmul.f32 %v612_v0, %v525_v15  ;;  %v268_v24 = vmul.f32 %v612_v0, %v528_v16  ;;  %v269_v25 = vmul.f32 %v612_v0, %v529_v17 }
  0x30   : > { %394 = vst.msk [vmem:[%s644_s25 + $0x4c] sm:$0xf] %vm374_vm0, %v361_v7  ;;  %v270_v26 = vmul.f32 %v612_v0, %v532_v18  ;;  %v271_v27 = vmul.f32 %v612_v0, %v533_v19  ;;  %v272_v28 = vmul.f32 %v612_v0, %v536_v20  ;;  %v273_v29 = vmul.f32 %v612_v0, %v537_v21 }
  0x31   : > { %395 = vst.msk [vmem:[%s644_s25 + $0x50] sm:$0xf] %vm374_vm0, %v362_v10  ;;  %v302_v30 = vadd.f32 %v620_v5, %v266_v22  ;;  %v303_v31 = vadd.f32 %v620_v5, %v267_v23  ;;  %v304_v32 = vadd.f32 %v620_v5, %v268_v24  ;;  %v305_v33 = vadd.f32 %v620_v5, %v269_v25 }
  0x32   : > { %396 = vst.msk [vmem:[%s644_s25 + $0x54] sm:$0xf] %vm374_vm0, %v363_v11  ;;  %v306_v34 = vadd.f32 %v620_v5, %v270_v26  ;;  %v307_v35 = vadd.f32 %v620_v5, %v271_v27  ;;  %v308_v36 = vadd.f32 %v620_v5, %v272_v28  ;;  %v309_v0 = vadd.f32 %v620_v5, %v273_v29 }
  0x33   : > { %397 = vst.msk [vmem:[%s644_s25 + $0x58] sm:$0xf] %vm374_vm0, %v364_v12  ;;  %v334_v37 = vmax.f32 %v302_v30, 0.0  ;;  %v335_v38 = vmax.f32 %v303_v31, 0.0  ;;  %v336_v39 = vmax.f32 %v304_v32, 0.0  ;;  %v337_v40 = vmax.f32 %v305_v33, 0.0 }
  0x34   : > { %398 = vst.msk [vmem:[%s644_s25 + $0x5c] sm:$0xf] %vm374_vm0, %v365_v13  ;;  %v338_v41 = vmax.f32 %v306_v34, 0.0  ;;  %v339_v42 = vmax.f32 %v307_v35, 0.0  ;;  %v340_v45 = vmax.f32 %v308_v36, 0.0  ;;  %v341_v47 = vmax.f32 %v309_v0, 0.0 }
  0x35   : > { %v366_v43 = vpack.c.bf16 %v334_v37, %v334_v37  ;;  %v367_v44 = vpack.c.bf16 %v335_v38, %v335_v38  ;;  %v368_v5 = vpack.c.bf16 %v336_v39, %v336_v39  ;;  %v369_v46 = vpack.c.bf16 %v337_v40, %v337_v40 }
  0x36   : > { %v370_v48 = vpack.c.bf16 %v338_v41, %v338_v41  ;;  %v371_v49 = vpack.c.bf16 %v339_v42, %v339_v42  ;;  %v372_v50 = vpack.c.bf16 %v340_v45, %v340_v45  ;;  %v373_v51 = vpack.c.bf16 %v341_v47, %v341_v47 }
  0x37   : > { %399 = vst.msk [vmem:[%s644_s25 + $0x60] sm:$0xf] %vm374_vm0, %v366_v43 }
  0x38   : > { %400 = vst.msk [vmem:[%s644_s25 + $0x64] sm:$0xf] %vm374_vm0, %v367_v44 }
  0x39   : > { %401 = vst.msk [vmem:[%s644_s25 + $0x68] sm:$0xf] %vm374_vm0, %v368_v5 }
  0x3a   : > { %402 = vst.msk [vmem:[%s644_s25 + $0x6c] sm:$0xf] %vm374_vm0, %v369_v46 }
  0x3b   : > { %403 = vst.msk [vmem:[%s644_s25 + $0x70] sm:$0xf] %vm374_vm0, %v370_v48 }
  0x3c   : > { %404 = vst.msk [vmem:[%s644_s25 + $0x74] sm:$0xf] %vm374_vm0, %v371_v49 }
  0x3d   : > { %405 = vst.msk [vmem:[%s644_s25 + $0x78] sm:$0xf] %vm374_vm0, %v372_v50 }
  0x3e   : > { %406 = vst.msk [vmem:[%s644_s25 + $0x7c] sm:$0xf] %vm374_vm0, %v373_v51 }
  0x3f PF: > { %s13_s12 = sadd.s32 1, %s569_s12  }
  0x40   : > { %p10_p4 = scmp.ge.s32.totalorder %s13_s12, 4  }
  0x42   :  { %12 = sbr.rel (!%p10_p4) target bundleno = 1 (0x1), region = 62 }

// kernel: resnet_generator_forward.19
= control target key start
LH: loop header
LB: loop body
LE: loop exit
PB: predicated region body
PF: predicated region fallthrough
CT: control target
= control target key end

     0   :  { %s1289_s12 = smov 0   ;;  %s1702_s0 = inlined_call_operand.vmem [shape: bf16[512,147], index: 0, kind: input, shape index: {}]   ;;  %s1703_s1 = inlined_call_operand.vmem [shape: bf16[147,8], index: 1, kind: input, shape index: {}]   ;;  %s1704_s2 = inlined_call_operand.vmem [shape: bf16[512,8], index: 2, kind: output, shape index: {0}]   ;;  %s1705_s3 = inlined_call_operand.vmem [shape: f32[16,8], index: 3, kind: output, shape index: {1}]  }
   0x1 LB: > { %s1295_s13 = sadd.s32 4294967295, %s1266_s12   ;;  %p1010_p0 = scmp.ge.s32.totalorder %s1266_s12, 1  ;;  %s1266_s12 = sphi %s1289_s12, %s14_s12  }
   0x2   : > { %p142_p1 = scmp.lt.s32.totalorder %s1266_s12, 3 }
   0x4   : > { %p143_p2 = pnand %p1010_p0, %p142_p1 }
   0x5   : > { %s1011_s18 = sshll.u32 (!%p143_p2), %s1295_s13, 5  ;;  %p184_p4 = scmp.lt.s32.totalorder (!%p143_p2), %s1295_s13, 1 }
   0x6   : > { %146 = sbr.rel (%p143_p2) target bundleno = 344 (0x158), region = 28  ;;  %p172_p3 = scmp.lt.s32.totalorder (!%p143_p2), %s1011_s18, 63 }
   0xb   : > { %v1239_v0 = vld [vmem:[%s1703_s1 + $0x38] sm:$0xff]  ;;  %v239_v1 = vld [vmem:[%s1703_s1 + $0x48] sm:$0x3]  ;;  %vm490_vm0 = vcmask 1040384   ;;  %vm491_vm1 = vcmask 1041408   ;;  %v1238_v3 = vld [vmem:[%s1703_s1 + $0x30] sm:$0xff] }
   0xc   : > { %v421_v2 = vunpack.c.l.b16 %v239_v1  ;;  %497 = vmatpush.bf16.msra.mxu0 %v1239_v0  ;;  %v1268_v4 = vmov 65535   ;;  %1241 = vmatpush.bf16.msra.mxu2 %v1239_v0  ;;  %s1707_s18 = smov (!%p172_p3, %s1011_s18), 63  ;;  %v1237_v9 = vld [vmem:[%s1703_s1 + $0x28] sm:$0xff]  ;;  %v1240_v10 = vld [vmem:[%s1703_s1 + $0x40] sm:$0xff]  ;;  %vm441_vm2 = vcmask 154624   ;;  %v1235_v15 = vld [vmem:[%s1703_s1 + $0x18] sm:$0xff] }
   0xd   : > { %v492_v5 = vsel %vm490_vm0, 4294967295, %v1268_v4  ;;  %s1199_s23 = sshll.u32 %s1707_s18, 3  ;;  %v1236_v14 = vld [vmem:[%s1703_s1 + $0x20] sm:$0xff]  ;;  %v1234_v16 = vld [vmem:[%s1703_s1 + $0x10] sm:$0xff]  ;;  %v1233_v17 = vld [vmem:[%s1703_s1 + $0x8] sm:$0xff]  ;;  %s1015_s14 = sshll.u32 %s1707_s18, 2 }
   0xe   : > { %v431_v6 = vpack.c.b16 %v421_v2, %v421_v2  ;;  %v493_v7 = vsel %vm491_vm1, %v492_v5, 0  ;;  %s1321_s28 = scalar_lea.vmem %s1702_s0, %s1199_s23  ;;  %v1232_v21 = vld [vmem:[%s1703_s1] sm:$0xff]  ;;  %s1422_s17 = scalar_lea.vmem %s1704_s2, %s1015_s14  ;;  %vm707_vm3 = vcmask 60416   ;;  %vm740_vm4 = vcmask 64512  }
   0xf   : > { %v1200_v11 = vld [vmem:[%s1321_s28 + $0x4] sm:$0xf]  ;;  %v1021_v12 = vld [vmem:[%s1321_s28 + $0x8] sm:$0xf0]  ;;  %v1202_v18 = vld [vmem:[%s1321_s28 + $0x14] sm:$0xf] }
  0x10   : > { %v495_v8 = vand.u32 %v493_v7, %v431_v6  ;;  %498 = vmatpush.bf16.msra.mxu0 %v1238_v3  ;;  %1242 = vmatpush.bf16.msra.mxu2 %v1238_v3  ;;  %v1024_v13 = vor.u32 %v1200_v11, %v1021_v12  ;;  %v1029_v19 = vld [vmem:[%s1321_s28 + $0x18] sm:$0xf0]  ;;  %v1019_v22 = vld [vmem:[%s1321_s28] sm:$0xf]  ;;  %v1201_v23 = vld [vmem:[%s1321_s28 + $0x4] sm:$0xf0] }
  0x11   : > { %v1032_v20 = vor.u32 %v1202_v18, %v1029_v19  ;;  %v1083_v24 = vld [vmem:[%s1321_s28 + $0x80] sm:$0xf]  ;;  %v1217_v25 = vld [vmem:[%s1321_s28 + $0x84] sm:$0xf0]  ;;  %v1020_v26 = vor.u32 %v1201_v23, %v1019_v22  ;;  %v1218_v28 = vld [vmem:[%s1321_s28 + $0x94] sm:$0xf] }
  0x12   : > { %592 = vmatpush.bf16.msra.mxu1 %v495_v8  ;;  %1249 = vmatpush.bf16.msra.mxu3 %v495_v8  ;;  %v1084_v27 = vor.u32 %v1217_v25, %v1083_v24  ;;  %v1093_v29 = vld [vmem:[%s1321_s28 + $0x98] sm:$0xf0]  ;;  %v1204_v31 = vld [vmem:[%s1321_s28 + $0x24] sm:$0xf]  ;;  %v1037_v32 = vld [vmem:[%s1321_s28 + $0x28] sm:$0xf0] }
  0x13   : > { %v1096_v30 = vor.u32 %v1218_v28, %v1093_v29  ;;  %v1040_v33 = vor.u32 %v1204_v31, %v1037_v32  ;;  %v1027_v34 = vld [vmem:[%s1321_s28 + $0x10] sm:$0xf]  ;;  %v1203_v35 = vld [vmem:[%s1321_s28 + $0x14] sm:$0xf0]  ;;  %v1220_v40 = vld [vmem:[%s1321_s28 + $0xa4] sm:$0xf] }
  0x14   : > { %499 = vmatpush.bf16.msra.mxu0 %v1237_v9  ;;  %1243 = vmatpush.bf16.msra.mxu2 %v1237_v9  ;;  %v1091_v36 = vld [vmem:[%s1321_s28 + $0x90] sm:$0xf]  ;;  %v1219_v37 = vld [vmem:[%s1321_s28 + $0x94] sm:$0xf0]  ;;  %v1028_v38 = vor.u32 %v1203_v35, %v1027_v34  ;;  %v1101_v41 = vld [vmem:[%s1321_s28 + $0xa8] sm:$0xf0] }
  0x15   : > { %v1092_v39 = vor.u32 %v1219_v37, %v1091_v36  ;;  %v1104_v42 = vor.u32 %v1220_v40, %v1101_v41  ;;  %v1206_v43 = vld [vmem:[%s1321_s28 + $0x34] sm:$0xf]  ;;  %v1045_v44 = vld [vmem:[%s1321_s28 + $0x38] sm:$0xf0]  ;;  %v1035_v46 = vld [vmem:[%s1321_s28 + $0x20] sm:$0xf] }
  0x16   : > { %593 = vmatpush.bf16.msra.mxu1 %v1240_v10  ;;  %1250 = vmatpush.bf16.msra.mxu3 %v1240_v10  ;;  %v1048_v45 = vor.u32 %v1206_v43, %v1045_v44  ;;  %v1205_v47 = vld [vmem:[%s1321_s28 + $0x24] sm:$0xf0]  ;;  %v1099_v48 = vld [vmem:[%s1321_s28 + $0xa0] sm:$0xf]  ;;  %v1222_v52 = vld [vmem:[%s1321_s28 + $0xb4] sm:$0xf] }
  0x17   : > { %v1221_v49 = vld [vmem:[%s1321_s28 + $0xa4] sm:$0xf0]  ;;  %v1036_v50 = vor.u32 %v1205_v47, %v1035_v46  ;;  %v1109_v53 = vld [vmem:[%s1321_s28 + $0xb8] sm:$0xf0]  ;;  %v1208_v55 = vld [vmem:[%s1321_s28 + $0x44] sm:$0xf] }
  0x18   : > { %500 = vmatpush.bf16.msra.mxu0 %v1236_v14  ;;  %1244 = vmatpush.bf16.msra.mxu2 %v1236_v14  ;;  %v1100_v51 = vor.u32 %v1221_v49, %v1099_v48  ;;  %v1112_v54 = vor.u32 %v1222_v52, %v1109_v53  ;;  %v1053_v56 = vld [vmem:[%s1321_s28 + $0x48] sm:$0xf0]  ;;  %v1043_v58 = vld [vmem:[%s1321_s28 + $0x30] sm:$0xf]  ;;  %v1207_v59 = vld [vmem:[%s1321_s28 + $0x34] sm:$0xf0] }
  0x19   : > { %1181 = vmatmul.msk.bf16.vlgmr.msra.gmra.mxu1 %vm441_vm2, %v1024_v13  ;;  %1190 = vmatmul.msk.bf16.vlgmr.msra.gmra.mxu3 %vm441_vm2, %v1096_v30  ;;  %v1056_v57 = vor.u32 %v1208_v55, %v1053_v56  ;;  %v1107_v60 = vld [vmem:[%s1321_s28 + $0xb0] sm:$0xf]  ;;  %v1223_v61 = vld [vmem:[%s1321_s28 + $0xb4] sm:$0xf0]  ;;  %v1044_v62 = vor.u32 %v1207_v59, %v1043_v58  ;;  %v1224_v0 = vld [vmem:[%s1321_s28 + $0xc4] sm:$0xf] }
  0x1a   : > { %v1108_v63 = vor.u32 %v1223_v61, %v1107_v60  ;;  %v1117_v1 = vld [vmem:[%s1321_s28 + $0xc8] sm:$0xf0]  ;;  %v1210_v3 = vld [vmem:[%s1321_s28 + $0x54] sm:$0xf]  ;;  %v1061_v4 = vld [vmem:[%s1321_s28 + $0x58] sm:$0xf0] }
  0x1b   : > { %v1120_v2 = vor.u32 %v1224_v0, %v1117_v1  ;;  %v1064_v5 = vor.u32 %v1210_v3, %v1061_v4  ;;  %v1051_v6 = vld [vmem:[%s1321_s28 + $0x40] sm:$0xf]  ;;  %v1209_v7 = vld [vmem:[%s1321_s28 + $0x44] sm:$0xf0]  ;;  %v1226_v12 = vld [vmem:[%s1321_s28 + $0xd4] sm:$0xf] }
  0x1c   : > { %501 = vmatpush.bf16.msra.mxu0 %v1235_v15  ;;  %1245 = vmatpush.bf16.msra.mxu2 %v1235_v15  ;;  %v1115_v8 = vld [vmem:[%s1321_s28 + $0xc0] sm:$0xf]  ;;  %v1225_v9 = vld [vmem:[%s1321_s28 + $0xc4] sm:$0xf0]  ;;  %v1052_v10 = vor.u32 %v1209_v7, %v1051_v6  ;;  %v1125_v13 = vld [vmem:[%s1321_s28 + $0xd8] sm:$0xf0] }
  0x1d   : > { %v1116_v11 = vor.u32 %v1225_v9, %v1115_v8  ;;  %v1128_v14 = vor.u32 %v1226_v12, %v1125_v13  ;;  %v1212_v15 = vld [vmem:[%s1321_s28 + $0x64] sm:$0xf]  ;;  %v1059_v18 = vld [vmem:[%s1321_s28 + $0x50] sm:$0xf]  ;;  %v1211_v19 = vld [vmem:[%s1321_s28 + $0x54] sm:$0xf0] }
  0x1e   : > { %v1060_v22 = vor.u32 %v1211_v19, %v1059_v18  ;;  %v1228_v24 = vld [vmem:[%s1321_s28 + $0xe4] sm:$0xf]  ;;  %v1133_v25 = vld [vmem:[%s1321_s28 + $0xe8] sm:$0xf0]  ;;  %v1077_v28 = vld [vmem:[%s1321_s28 + $0x78] sm:$0xf0] }
  0x1f   : > { %v1067_v30 = vld [vmem:[%s1321_s28 + $0x60] sm:$0xf]  ;;  %v1213_v31 = vld [vmem:[%s1321_s28 + $0x64] sm:$0xf0]  ;;  %v1230_v36 = vld [vmem:[%s1321_s28 + $0xf4] sm:$0xf] }
  0x20   : > { %502 = vmatpush.bf16.msra.mxu0 %v1234_v16  ;;  %1246 = vmatpush.bf16.msra.mxu2 %v1234_v16  ;;  %v1069_v16 = vld [vmem:[%s1321_s28 + $0x68] sm:$0xf0]  ;;  %v1131_v32 = vld [vmem:[%s1321_s28 + $0xe0] sm:$0xf]  ;;  %v1068_v34 = vor.u32 %v1213_v31, %v1067_v30  ;;  %v1141_v37 = vld [vmem:[%s1321_s28 + $0xf8] sm:$0xf0] }
  0x21   : > { %v1085_v40 = vld [vmem:[%s1321_s28 + $0x88] sm:$0xf0]  ;;  %v1215_v43 = vld [vmem:[%s1321_s28 + $0x74] sm:$0xf0]  ;;  %s1709_s13 = smov (!%p184_p4, %s1295_s13), 1 }
  0x22   : > { %v1231_v46 = vld [vmem:[%s1321_s28 + $0xf4] sm:$0xf0]  ;;  %s1016_s18 = sshll.u32 %s1709_s13, 3 }
  0x23   : > { %s187_s21 = scalar_lea.vmem %s1705_s3, %s1016_s18 }
  0x24   : > { %503 = vmatpush.bf16.msra.mxu0 %v1233_v17  ;;  %1247 = vmatpush.bf16.msra.mxu2 %v1233_v17  ;;  %v1072_v17 = vor.u32 %v1212_v15, %v1069_v16 }
  0x28   : > { %504 = vmatpush.bf16.msra.mxu0 %v1232_v21  ;;  %1248 = vmatpush.bf16.msra.mxu2 %v1232_v21  ;;  %v1227_v21 = vld [vmem:[%s1321_s28 + $0xd4] sm:$0xf0] }
  0x29   : > { %1182 = vmatmul.msk.bf16.gmra.mxu1 %vm441_vm2, %v1032_v20  ;;  %1191 = vmatmul.msk.bf16.gmra.mxu3 %vm441_vm2, %v1104_v42  ;;  %v1123_v20 = vld [vmem:[%s1321_s28 + $0xd0] sm:$0xf] }
  0x2a   : > { %v1124_v23 = vor.u32 %v1227_v21, %v1123_v20  ;;  %v1075_v42 = vld [vmem:[%s1321_s28 + $0x70] sm:$0xf] }
  0x2b   : > { %505 = vmatmul.bf16.vlgmr.msra.gmra.mxu0 %v1020_v26  ;;  %545 = vmatmul.bf16.vlgmr.msra.gmra.mxu2 %v1084_v27  ;;  %v1136_v26 = vor.u32 %v1228_v24, %v1133_v25  ;;  %v1214_v27 = vld [vmem:[%s1321_s28 + $0x74] sm:$0xf]  ;;  %v1076_v47 = vor.u32 %v1215_v43, %v1075_v42 }
  0x2c   : > { %v1080_v29 = vor.u32 %v1214_v27, %v1077_v28 }
  0x39   : > { %1183 = vmatmul.msk.bf16.gmra.mxu1 %vm441_vm2, %v1040_v33  ;;  %1192 = vmatmul.msk.bf16.gmra.mxu3 %vm441_vm2, %v1112_v54  ;;  %v1229_v33 = vld [vmem:[%s1321_s28 + $0xe4] sm:$0xf0] }
  0x3a   : > { %v1132_v35 = vor.u32 %v1229_v33, %v1131_v32 }
  0x3b   : > { %510 = vmatmul.bf16.gmra.mxu0 %v1028_v38  ;;  %550 = vmatmul.bf16.gmra.mxu2 %v1092_v39  ;;  %v1144_v38 = vor.u32 %v1230_v36, %v1141_v37  ;;  %v1216_v39 = vld [vmem:[%s1321_s28 + $0x84] sm:$0xf] }
  0x3c   : > { %v1088_v41 = vor.u32 %v1216_v39, %v1085_v40 }
  0x49   : > { %1184 = vmatmul.msk.bf16.gmra.mxu1 %vm441_vm2, %v1048_v45  ;;  %1193 = vmatmul.msk.bf16.gmra.mxu3 %vm441_vm2, %v1120_v2  ;;  %v1139_v45 = vld [vmem:[%s1321_s28 + $0xf0] sm:$0xf] }
  0x4a   : > { %v1140_v48 = vor.u32 %v1231_v46, %v1139_v45 }
  0x4b   : > { %515 = vmatmul.bf16.gmra.mxu0 %v1036_v50  ;;  %555 = vmatmul.bf16.gmra.mxu2 %v1100_v51 }
  0x59   : > { %1185 = vmatmul.msk.bf16.gmra.mxu1 %vm441_vm2, %v1056_v57  ;;  %1194 = vmatmul.msk.bf16.gmra.mxu3 %vm441_vm2, %v1128_v14 }
  0x5b   : > { %520 = vmatmul.bf16.gmra.mxu0 %v1044_v62  ;;  %560 = vmatmul.bf16.gmra.mxu2 %v1108_v63 }
  0x69   : > { %1186 = vmatmul.msk.bf16.gmra.mxu1 %vm441_vm2, %v1064_v5  ;;  %1195 = vmatmul.msk.bf16.gmra.mxu3 %vm441_vm2, %v1136_v26 }
  0x6b   : > { %525 = vmatmul.bf16.gmra.mxu0 %v1052_v10  ;;  %565 = vmatmul.bf16.gmra.mxu2 %v1116_v11 }
  0x79   : > { %1187 = vmatmul.msk.bf16.gmra.mxu1 %vm441_vm2, %v1072_v17  ;;  %1196 = vmatmul.msk.bf16.gmra.mxu3 %vm441_vm2, %v1144_v38 }
  0x7b   : > { %530 = vmatmul.bf16.gmra.mxu0 %v1060_v22  ;;  %570 = vmatmul.bf16.gmra.mxu2 %v1124_v23 }
  0x89   : > { %1188 = vmatmul.msk.bf16.gmra.mxu1 %vm441_vm2, %v1080_v29 }
  0x8b   : > { %535 = vmatmul.bf16.gmra.mxu0 %v1068_v34  ;;  %575 = vmatmul.bf16.gmra.mxu2 %v1132_v35 }
  0x96   : > { %v595_v44 = vpop.f32.mrf.mxu1 }
  0x99   : > { %1189 = vmatmul.msk.bf16.gmra.mxu1 %vm441_vm2, %v1088_v41 }
  0x9b   : > { %540 = vmatmul.bf16.gmra.mxu0 %v1076_v47  ;;  %580 = vmatmul.bf16.gmra.mxu2 %v1140_v48 }
  0x9c   : > { %v640_v59 = vpop.f32.mrf.mxu3 }
  0x9e   : > { %v597_v49 = vpop.f32.mrf.mxu1 }
  0xa4   : > { %v642_v8 = vpop.f32.mrf.mxu3 }
  0xa6   : > { %v600_v50 = vpop.f32.mrf.mxu1 }
  0xa8   : > { %v506_v51 = vpop.f32.mrf.mxu0 }
  0xa9   : > { %v596_v52 = vadd.f32 %v595_v44, %v506_v51 }
  0xab   : > { %v675_v53 = vpack.c.bf16 %v596_v52, %v596_v52  ;;  %v810_v57 = vmul.f32 %v596_v52, %v596_v52  ;;  %v741_v60 = vsel %vm740_vm4, %v596_v52, 0.0 }
  0xac   : > { %v645_v20 = vpop.f32.mrf.mxu3 }
  0xad   : > { %708 = vst.msk [vmem:[%s1422_s17] sm:$0xf] %vm707_vm3, %v675_v53  ;;  %v842_v1 = vsel %vm740_vm4, %v810_v57, 0.0 }
  0xae   : > { %v602_v54 = vpop.f32.mrf.mxu1  ;;  %v1426_v55 = vpop.f32.mrf.mxu2 }
  0xb0   : > { %v508_v56 = vpop.f32.mrf.mxu0 }
  0xb1   : > { %v598_v58 = vadd.f32 %v597_v49, %v508_v56 }
  0xb3   : > { %v676_v61 = vpack.c.bf16 %v598_v58, %v598_v58  ;;  %v742_v62 = vsel %vm740_vm4, %v598_v58, 0.0  ;;  %v811_v63 = vmul.f32 %v598_v58, %v598_v58 }
  0xb4   : > { %v743_v0 = vadd.f32 %v742_v62, %v741_v60  ;;  %v647_v33 = vpop.f32.mrf.mxu3 }
  0xb5   : > { %709 = vst.msk [vmem:[%s1422_s17 + $0x4] sm:$0xf] %vm707_vm3, %v676_v61  ;;  %v843_v2 = vsel %vm740_vm4, %v811_v63, 0.0 }
  0xb6   : > { %v605_v3 = vpop.f32.mrf.mxu1  ;;  %v844_v4 = vadd.f32 %v843_v2, %v842_v1  ;;  %v1434_v5 = vpop.f32.mrf.mxu2 }
  0xb8   : > { %v511_v6 = vpop.f32.mrf.mxu0 }
  0xb9   : > { %v601_v7 = vadd.f32 %v600_v50, %v511_v6 }
  0xbb   : > { %v677_v9 = vpack.c.bf16 %v601_v7, %v601_v7  ;;  %v744_v10 = vsel %vm740_vm4, %v601_v7, 0.0  ;;  %v812_v11 = vmul.f32 %v601_v7, %v601_v7 }
  0xbc   : > { %v745_v12 = vadd.f32 %v744_v10, %v743_v0  ;;  %v650_v46 = vpop.f32.mrf.mxu3 }
  0xbd   : > { %710 = vst.msk [vmem:[%s1422_s17 + $0x8] sm:$0xf] %vm707_vm3, %v677_v9  ;;  %v845_v13 = vsel %vm740_vm4, %v812_v11, 0.0 }
  0xbe   : > { %v607_v14 = vpop.f32.mrf.mxu1  ;;  %v846_v15 = vadd.f32 %v845_v13, %v844_v4  ;;  %v551_v16 = vpop.f32.mrf.mxu2 }
  0xbf   : > { %v1440_v18 = vadd.f32 %v640_v59, %v551_v16 }
  0xc0   : > { %v513_v17 = vpop.f32.mrf.mxu0 }
  0xc1   : > { %v603_v19 = vadd.f32 %v602_v54, %v513_v17  ;;  %v693_v21 = vpack.c.bf16 %v1440_v18, %v1440_v18 }
  0xc3   : > { %v678_v22 = vpack.c.bf16 %v603_v19, %v603_v19  ;;  %v746_v23 = vsel %vm740_vm4, %v603_v19, 0.0  ;;  %v813_v24 = vmul.f32 %v603_v19, %v603_v19  ;;  %726 = vst.msk [vmem:[%s1422_s17 + $0x48] sm:$0xf] %vm707_vm3, %v693_v21 }
  0xc4   : > { %v747_v25 = vadd.f32 %v746_v23, %v745_v12  ;;  %v652_v54 = vpop.f32.mrf.mxu3 }
  0xc5   : > { %711 = vst.msk [vmem:[%s1422_s17 + $0xc] sm:$0xf] %vm707_vm3, %v678_v22  ;;  %v847_v26 = vsel %vm740_vm4, %v813_v24, 0.0 }
  0xc6   : > { %v610_v27 = vpop.f32.mrf.mxu1  ;;  %v848_v28 = vadd.f32 %v847_v26, %v846_v15  ;;  %v553_v29 = vpop.f32.mrf.mxu2 }
  0xc7   : > { %v1450_v31 = vadd.f32 %v642_v8, %v553_v29 }
  0xc8   : > { %v516_v30 = vpop.f32.mrf.mxu0 }
  0xc9   : > { %v606_v32 = vadd.f32 %v605_v3, %v516_v30  ;;  %v694_v34 = vpack.c.bf16 %v1450_v31, %v1450_v31 }
  0xcb   : > { %v679_v35 = vpack.c.bf16 %v606_v32, %v606_v32  ;;  %v748_v36 = vsel %vm740_vm4, %v606_v32, 0.0  ;;  %v814_v37 = vmul.f32 %v606_v32, %v606_v32  ;;  %727 = vst.msk [vmem:[%s1422_s17 + $0x4c] sm:$0xf] %vm707_vm3, %v694_v34 }
  0xcc   : > { %v1455_v38 = vadd.f32 %v748_v36, %v747_v25  ;;  %v655_v63 = vpop.f32.mrf.mxu3 }
  0xcd   : > { %712 = vst.msk [vmem:[%s1422_s17 + $0x10] sm:$0xf] %vm707_vm3, %v679_v35  ;;  %v849_v39 = vsel %vm740_vm4, %v814_v37, 0.0 }
  0xce   : > { %v612_v40 = vpop.f32.mrf.mxu1  ;;  %v1462_v41 = vadd.f32 %v849_v39, %v848_v28  ;;  %v556_v42 = vpop.f32.mrf.mxu2 }
  0xcf   : > { %v1464_v44 = vadd.f32 %v645_v20, %v556_v42 }
  0xd0   : > { %v518_v43 = vpop.f32.mrf.mxu0 }
  0xd1   : > { %v1466_v45 = vadd.f32 %v607_v14, %v518_v43  ;;  %v695_v47 = vpack.c.bf16 %v1464_v44, %v1464_v44 }
  0xd3   : > { %v680_v48 = vpack.c.bf16 %v1466_v45, %v1466_v45  ;;  %728 = vst.msk [vmem:[%s1422_s17 + $0x50] sm:$0xf] %vm707_vm3, %v695_v47  ;;  %v815_v47 = vmul.f32 %v1466_v45, %v1466_v45 }
  0xd4   : > { %v657_v8 = vpop.f32.mrf.mxu3 }
  0xd5   : > { %713 = vst.msk [vmem:[%s1422_s17 + $0x14] sm:$0xf] %vm707_vm3, %v680_v48 }
  0xd6   : > { %v615_v49 = vpop.f32.mrf.mxu1  ;;  %v558_v50 = vpop.f32.mrf.mxu2 }
  0xd7   : > { %v1476_v52 = vadd.f32 %v647_v33, %v558_v50 }
  0xd8   : > { %v521_v51 = vpop.f32.mrf.mxu0 }
  0xd9   : > { %v1478_v53 = vadd.f32 %v610_v27, %v521_v51  ;;  %v696_v56 = vpack.c.bf16 %v1476_v52, %v1476_v52 }
  0xdb   : > { %v681_v57 = vpack.c.bf16 %v1478_v53, %v1478_v53  ;;  %729 = vst.msk [vmem:[%s1422_s17 + $0x54] sm:$0xf] %vm707_vm3, %v696_v56  ;;  %v816_v50 = vmul.f32 %v1478_v53, %v1478_v53  ;;  %v752_v56 = vsel %vm740_vm4, %v1478_v53, 0.0 }
  0xdc   : > { %v660_v19 = vpop.f32.mrf.mxu3 }
  0xdd   : > { %714 = vst.msk [vmem:[%s1422_s17 + $0x18] sm:$0xf] %vm707_vm3, %v681_v57 }
  0xde   : > { %v617_v58 = vpop.f32.mrf.mxu1  ;;  %v561_v59 = vpop.f32.mrf.mxu2 }
  0xdf   : > { %v1488_v61 = vadd.f32 %v650_v46, %v561_v59 }
  0xe0   : > { %v523_v60 = vpop.f32.mrf.mxu0 }
  0xe1   : > { %v1490_v62 = vadd.f32 %v612_v40, %v523_v60  ;;  %v697_v0 = vpack.c.bf16 %v1488_v61, %v1488_v61 }
  0xe3   : > { %v682_v1 = vpack.c.bf16 %v1490_v62, %v1490_v62  ;;  %730 = vst.msk [vmem:[%s1422_s17 + $0x58] sm:$0xf] %vm707_vm3, %v697_v0  ;;  %v817_v57 = vmul.f32 %v1490_v62, %v1490_v62  ;;  %v754_v0 = vsel %vm740_vm4, %v1490_v62, 0.0 }
  0xe4   : > { %v662_v28 = vpop.f32.mrf.mxu3 }
  0xe5   : > { %715 = vst.msk [vmem:[%s1422_s17 + $0x1c] sm:$0xf] %vm707_vm3, %v682_v1 }
  0xe6   : > { %v620_v2 = vpop.f32.mrf.mxu1  ;;  %v563_v3 = vpop.f32.mrf.mxu2 }
  0xe7   : > { %v1500_v6 = vadd.f32 %v652_v54, %v563_v3  ;;  %v851_v54 = vsel %vm740_vm4, %v815_v47, 0.0 }
  0xe8   : > { %v526_v4 = vpop.f32.mrf.mxu0  ;;  %v852_v3 = vadd.f32 %v851_v54, %v1462_v41 }
  0xe9   : > { %v1502_v7 = vadd.f32 %v615_v49, %v526_v4  ;;  %v698_v9 = vpack.c.bf16 %v1500_v6, %v1500_v6  ;;  %v750_v49 = vsel %vm740_vm4, %v1466_v45, 0.0 }
  0xea   : > { %v751_v59 = vadd.f32 %v750_v49, %v1455_v38 }
  0xeb   : > { %v683_v10 = vpack.c.bf16 %v1502_v7, %v1502_v7  ;;  %731 = vst.msk [vmem:[%s1422_s17 + $0x5c] sm:$0xf] %vm707_vm3, %v698_v9  ;;  %v818_v1 = vmul.f32 %v1502_v7, %v1502_v7  ;;  %v756_v9 = vsel %vm740_vm4, %v1502_v7, 0.0 }
  0xec   : > { %v665_v39 = vpop.f32.mrf.mxu3  ;;  %v753_v4 = vadd.f32 %v752_v56, %v751_v59 }
  0xed   : > { %716 = vst.msk [vmem:[%s1422_s17 + $0x20] sm:$0xf] %vm707_vm3, %v683_v10 }
  0xee   : > { %v622_v11 = vpop.f32.mrf.mxu1  ;;  %v566_v12 = vpop.f32.mrf.mxu2 }
  0xef   : > { %v1512_v14 = vadd.f32 %v655_v63, %v566_v12  ;;  %v853_v63 = vsel %vm740_vm4, %v816_v50, 0.0  ;;  %v755_v12 = vadd.f32 %v754_v0, %v753_v4 }
  0xf0   : > { %v528_v13 = vpop.f32.mrf.mxu0  ;;  %v854_v62 = vadd.f32 %v853_v63, %v852_v3 }
  0xf1   : > { %v618_v15 = vadd.f32 %v617_v58, %v528_v13  ;;  %v699_v16 = vpack.c.bf16 %v1512_v14, %v1512_v14  ;;  %v857_v13 = vsel %vm740_vm4, %v818_v1, 0.0 }
  0xf3   : > { %v684_v17 = vpack.c.bf16 %v618_v15, %v618_v15  ;;  %732 = vst.msk [vmem:[%s1422_s17 + $0x60] sm:$0xf] %vm707_vm3, %v699_v16  ;;  %v819_v10 = vmul.f32 %v618_v15, %v618_v15  ;;  %v758_v16 = vsel %vm740_vm4, %v618_v15, 0.0 }
  0xf5   : > { %717 = vst.msk [vmem:[%s1422_s17 + $0x24] sm:$0xf] %vm707_vm3, %v684_v17  ;;  %v859_v7 = vsel %vm740_vm4, %v819_v10, 0.0 }
  0xf6   : > { %v625_v20 = vpop.f32.mrf.mxu1  ;;  %v568_v21 = vpop.f32.mrf.mxu2 }
  0xf7   : > { %v1520_v23 = vadd.f32 %v657_v8, %v568_v21  ;;  %v855_v8 = vsel %vm740_vm4, %v817_v57, 0.0 }
  0xf8   : > { %v531_v22 = vpop.f32.mrf.mxu0 }
  0xf9   : > { %v621_v24 = vadd.f32 %v620_v2, %v531_v22  ;;  %v700_v25 = vpack.c.bf16 %v1520_v23, %v1520_v23  ;;  %v667_v2 = vpop.f32.mrf.mxu3 }
  0xfb   : > { %v685_v26 = vpack.c.bf16 %v621_v24, %v621_v24  ;;  %733 = vst.msk [vmem:[%s1422_s17 + $0x64] sm:$0xf] %vm707_vm3, %v700_v25  ;;  %v820_v41 = vmul.f32 %v621_v24, %v621_v24  ;;  %v760_v22 = vsel %vm740_vm4, %v621_v24, 0.0 }
  0xfd   : > { %718 = vst.msk [vmem:[%s1422_s17 + $0x28] sm:$0xf] %vm707_vm3, %v685_v26 }
  0xfe   : > { %v627_v27 = vpop.f32.mrf.mxu1  ;;  %v571_v29 = vpop.f32.mrf.mxu2 }
  0xff   : > { %v1528_v32 = vadd.f32 %v660_v19, %v571_v29  ;;  %v856_v19 = vadd.f32 %v855_v8, %v854_v62 }
 0x100   : > { %v533_v30 = vpop.f32.mrf.mxu0 }
 0x101   : > { %v623_v33 = vadd.f32 %v622_v11, %v533_v30  ;;  %v701_v34 = vpack.c.bf16 %v1528_v32, %v1528_v32  ;;  %v670_v50 = vpop.f32.mrf.mxu3 }
 0x103   : > { %v686_v35 = vpack.c.bf16 %v623_v33, %v623_v33  ;;  %734 = vst.msk [vmem:[%s1422_s17 + $0x68] sm:$0xf] %vm707_vm3, %v701_v34  ;;  %v821_v25 = vmul.f32 %v623_v33, %v623_v33  ;;  %v861_v34 = vsel %vm740_vm4, %v820_v41, 0.0 }
 0x105   : > { %719 = vst.msk [vmem:[%s1422_s17 + $0x2c] sm:$0xf] %vm707_vm3, %v686_v35  ;;  %v762_v35 = vsel %vm740_vm4, %v623_v33, 0.0 }
 0x106   : > { %v630_v36 = vpop.f32.mrf.mxu1  ;;  %v573_v37 = vpop.f32.mrf.mxu2 }
 0x107   : > { %v1536_v42 = vadd.f32 %v662_v28, %v573_v37 }
 0x108   : > { %v536_v40 = vpop.f32.mrf.mxu0 }
 0x109   : > { %v626_v43 = vadd.f32 %v625_v20, %v536_v40  ;;  %v702_v46 = vpack.c.bf16 %v1536_v42, %v1536_v42  ;;  %v757_v20 = vadd.f32 %v756_v9, %v755_v12 }
 0x10b   : > { %v687_v48 = vpack.c.bf16 %v626_v43, %v626_v43  ;;  %735 = vst.msk [vmem:[%s1422_s17 + $0x6c] sm:$0xf] %vm707_vm3, %v702_v46  ;;  %v759_v28 = vadd.f32 %v758_v16, %v757_v20  ;;  %v822_v37 = vmul.f32 %v626_v43, %v626_v43  ;;  %v863_v46 = vsel %vm740_vm4, %v821_v25, 0.0 }
 0x10c   : > { %v764_v47 = vsel %vm740_vm4, %v626_v43, 0.0 }
 0x10d   : > { %720 = vst.msk [vmem:[%s1422_s17 + $0x30] sm:$0xf] %vm707_vm3, %v687_v48  ;;  %v761_v40 = vadd.f32 %v760_v22, %v759_v28  ;;  %v865_v33 = vsel %vm740_vm4, %v822_v37, 0.0  ;;  %v829_v37 = vmul.f32 %v1450_v31, %v1450_v31 }
 0x10e   : > { %v1550_v51 = vpop.f32.mrf.mxu1  ;;  %v576_v58 = vpop.f32.mrf.mxu2 }
 0x10f   : > { %v1558_v45 = vadd.f32 %v665_v39, %v576_v58  ;;  %v763_v56 = vadd.f32 %v762_v35, %v761_v40  ;;  %v776_v35 = vsel %vm740_vm4, %v1440_v18, 0.0 }
 0x110   : > { %v538_v60 = vpop.f32.mrf.mxu0 }
 0x111   : > { %v628_v53 = vadd.f32 %v627_v27, %v538_v60  ;;  %v703_v38 = vpack.c.bf16 %v1558_v45, %v1558_v45  ;;  %v858_v27 = vadd.f32 %v857_v13, %v856_v19  ;;  %v765_v60 = vadd.f32 %v764_v47, %v763_v56 }
 0x112   : > { %v778_v47 = vsel %vm740_vm4, %v1450_v31, 0.0  ;;  %v831_v56 = vmul.f32 %v1476_v52, %v1476_v52  ;;  %v782_v31 = vsel %vm740_vm4, %v1476_v52, 0.0  ;;  %v786_v52 = vsel %vm740_vm4, %v1500_v6, 0.0 }
 0x113   : > { %v688_v11 = vpack.c.bf16 %v628_v53, %v628_v53  ;;  %736 = vst.msk [vmem:[%s1422_s17 + $0x70] sm:$0xf] %vm707_vm3, %v703_v38  ;;  %v860_v39 = vadd.f32 %v859_v7, %v858_v27  ;;  %v823_v48 = vmul.f32 %v628_v53, %v628_v53  ;;  %v672_v7 = vpop.f32.mrf.mxu3 }
 0x115   : > { %721 = vst.msk [vmem:[%s1422_s17 + $0x34] sm:$0xf] %vm707_vm3, %v688_v11  ;;  %v862_v54 = vadd.f32 %v861_v34, %v860_v39  ;;  %v867_v63 = vsel %vm740_vm4, %v823_v48, 0.0  ;;  %v830_v48 = vmul.f32 %v1464_v44, %v1464_v44 }
 0x116   : > { %v635_v17 = vpop.f32.mrf.mxu1  ;;  %v578_v26 = vpop.f32.mrf.mxu2 }
 0x117   : > { %v636_v21 = vadd.f32 %v635_v17, %v1426_v55  ;;  %v1580_v15 = vadd.f32 %v667_v2, %v578_v26  ;;  %v864_v59 = vadd.f32 %v863_v46, %v862_v54  ;;  %v828_v26 = vmul.f32 %v1440_v18, %v1440_v18 }
 0x118   : > { %v541_v30 = vpop.f32.mrf.mxu0  ;;  %v780_v54 = vsel %vm740_vm4, %v1464_v44, 0.0  ;;  %v784_v44 = vsel %vm740_vm4, %v1488_v61, 0.0 }
 0x119   : > { %v691_v29 = vpack.c.bf16 %v636_v21, %v636_v21  ;;  %v631_v55 = vadd.f32 %v630_v36, %v541_v30  ;;  %v704_v24 = vpack.c.bf16 %v1580_v15, %v1580_v15  ;;  %v766_v36 = vsel %vm740_vm4, %v628_v53, 0.0 }
 0x11a   : > { %v866_v2 = vadd.f32 %v865_v33, %v864_v59  ;;  %v767_v3 = vadd.f32 %v766_v36, %v765_v60  ;;  %v826_v62 = vmul.f32 %v636_v21, %v636_v21  ;;  %v772_v19 = vsel %vm740_vm4, %v636_v21, 0.0 }
 0x11b   : > { %724 = vst.msk [vmem:[%s1422_s17 + $0x40] sm:$0xf] %vm707_vm3, %v691_v29  ;;  %v689_v49 = vpack.c.bf16 %v631_v55, %v631_v55  ;;  %v824_v57 = vmul.f32 %v631_v55, %v631_v55  ;;  %v768_v0 = vsel %vm740_vm4, %v631_v55, 0.0  ;;  %v877_v46 = vsel %vm740_vm4, %v828_v26, 0.0 }
 0x11c   : > { %737 = vst.msk [vmem:[%s1422_s17 + $0x74] sm:$0xf] %vm707_vm3, %v704_v24  ;;  %v868_v10 = vadd.f32 %v867_v63, %v866_v2  ;;  %v769_v11 = vadd.f32 %v768_v0, %v767_v3  ;;  %v873_v27 = vsel %vm740_vm4, %v826_v62, 0.0  ;;  %v833_v63 = vmul.f32 %v1500_v6, %v1500_v6 }
 0x11d   : > { %722 = vst.msk [vmem:[%s1422_s17 + $0x38] sm:$0xf] %vm707_vm3, %v689_v49  ;;  %v869_v8 = vsel %vm740_vm4, %v824_v57, 0.0  ;;  %v881_v57 = vsel %vm740_vm4, %v830_v48, 0.0  ;;  %v834_v3 = vmul.f32 %v1512_v14, %v1512_v14  ;;  %v790_v6 = vsel %vm740_vm4, %v1520_v23, 0.0 }
 0x11e   : > { %v637_v58 = vpop.f32.mrf.mxu1  ;;  %v581_v1 = vpop.f32.mrf.mxu2  ;;  %v870_v41 = vadd.f32 %v869_v8, %v868_v10  ;;  %v887_v8 = vsel %vm740_vm4, %v833_v63, 0.0  ;;  %v836_v62 = vmul.f32 %v1528_v32, %v1528_v32  ;;  %v839_v26 = vmul.f32 %v1580_v15, %v1580_v15 }
 0x11f   : > { %v638_v43 = vadd.f32 %v637_v58, %v1434_v5  ;;  %v1599_v53 = vadd.f32 %v670_v50, %v581_v1  ;;  %v879_v50 = vsel %vm740_vm4, %v829_v37, 0.0  ;;  %v832_v58 = vmul.f32 %v1488_v61, %v1488_v61 }
 0x120   : > { %v543_v38 = vpop.f32.mrf.mxu0  ;;  %v788_v61 = vsel %vm740_vm4, %v1512_v14, 0.0  ;;  %v792_v14 = vsel %vm740_vm4, %v1528_v32, 0.0  ;;  %v796_v32 = vsel %vm740_vm4, %v1558_v45, 0.0  ;;  %v899_v37 = vsel %vm740_vm4, %v839_v26, 0.0 }
 0x121   : > { %v692_v4 = vpack.c.bf16 %v638_v43, %v638_v43  ;;  %v633_v9 = vadd.f32 %v1550_v51, %v543_v38  ;;  %v705_v5 = vpack.c.bf16 %v1599_v53, %v1599_v53  ;;  %v827_v20 = vmul.f32 %v638_v43, %v638_v43 }
 0x122   : > { %v774_v28 = vsel %vm740_vm4, %v638_v43, 0.0  ;;  %v883_v43 = vsel %vm740_vm4, %v831_v56, 0.0  ;;  %v885_v2 = vsel %vm740_vm4, %v832_v58, 0.0 }
 0x123   : > { %725 = vst.msk [vmem:[%s1422_s17 + $0x44] sm:$0xf] %vm707_vm3, %v692_v4  ;;  %v690_v12 = vpack.c.bf16 %v633_v9, %v633_v9  ;;  %v770_v13 = vsel %vm740_vm4, %v633_v9, 0.0  ;;  %v825_v16 = vmul.f32 %v633_v9, %v633_v9  ;;  %v875_v55 = vsel %vm740_vm4, %v827_v20, 0.0 }
 0x124   : > { %v771_v17 = vadd.f32 %v770_v13, %v769_v11  ;;  %738 = vst.msk [vmem:[%s1422_s17 + $0x78] sm:$0xf] %vm707_vm3, %v705_v5  ;;  %v835_v9 = vmul.f32 %v1520_v23, %v1520_v23  ;;  %v889_v5 = vsel %vm740_vm4, %v834_v3, 0.0  ;;  %v893_v20 = vsel %vm740_vm4, %v836_v62, 0.0 }
 0x125   : > { %723 = vst.msk [vmem:[%s1422_s17 + $0x3c] sm:$0xf] %vm707_vm3, %v690_v12  ;;  %v871_v51 = vsel %vm740_vm4, %v825_v16, 0.0  ;;  %v794_v23 = vsel %vm740_vm4, %v1536_v42, 0.0 }
 0x126   : > { %v773_v22 = vadd.f32 %v772_v19, %v771_v17  ;;  %v872_v25 = vadd.f32 %v871_v51, %v870_v41  ;;  %v583_v29 = vpop.f32.mrf.mxu2  ;;  %v891_v16 = vsel %vm740_vm4, %v835_v9, 0.0  ;;  %v837_v41 = vmul.f32 %v1536_v42, %v1536_v42 }
 0x127   : > { %v1618_v21 = vadd.f32 %v672_v7, %v583_v29  ;;  %v838_v51 = vmul.f32 %v1558_v45, %v1558_v45  ;;  %v798_v42 = vsel %vm740_vm4, %v1580_v15, 0.0  ;;  %v800_v45 = vsel %vm740_vm4, %v1599_v53, 0.0 }
 0x128   : > { %v775_v30 = vadd.f32 %v774_v28, %v773_v22  ;;  %v874_v34 = vadd.f32 %v873_v27, %v872_v25  ;;  %v895_v25 = vsel %vm740_vm4, %v837_v41, 0.0 }
 0x129   : > { %v706_v24 = vpack.c.bf16 %v1618_v21, %v1618_v21  ;;  %v897_v29 = vsel %vm740_vm4, %v838_v51, 0.0  ;;  %v802_v15 = vsel %vm740_vm4, %v1618_v21, 0.0 }
 0x12a   : > { %v777_v39 = vadd.f32 %v776_v35, %v775_v30  ;;  %v876_v40 = vadd.f32 %v875_v55, %v874_v34  ;;  %v840_v30 = vmul.f32 %v1599_v53, %v1599_v53  ;;  %v841_v55 = vmul.f32 %v1618_v21, %v1618_v21 }
 0x12b   : > { %739 = vst.msk [vmem:[%s1422_s17 + $0x7c] sm:$0xf] %vm707_vm3, %v706_v24  ;;  %v911_v53 = vlaneseq }
 0x12c   : > { %v779_v49 = vadd.f32 %v778_v47, %v777_v39  ;;  %v878_v18 = vadd.f32 %v877_v46, %v876_v40  ;;  %v901_v24 = vsel %vm740_vm4, %v840_v30, 0.0  ;;  %v903_v48 = vsel %vm740_vm4, %v841_v55, 0.0 }
 0x12e   : > { %v781_v33 = vadd.f32 %v780_v54, %v779_v49  ;;  %v880_v36 = vadd.f32 %v879_v50, %v878_v18 }
 0x130   : > { %v783_v59 = vadd.f32 %v782_v31, %v781_v33  ;;  %v882_v60 = vadd.f32 %v881_v57, %v880_v36  ;;  %v912_v31 = vshrl.u32 %v911_v53, 7 }
 0x132   : > { %v884_v0 = vadd.f32 %v883_v43, %v882_v60  ;;  %v785_v1 = vadd.f32 %v784_v44, %v783_v59  ;;  %vm913_vm5 = vcmp.eq.s32.totalorder %v912_v31, 0  ;;  %vm915_vm6 = vcmp.eq.s32.totalorder %v912_v31, 1 }
 0x134   : > { %v787_v4 = vadd.f32 %v786_v52, %v785_v1  ;;  %v886_v38 = vadd.f32 %v885_v2, %v884_v0 }
 0x136   : > { %v789_v10 = vadd.f32 %v788_v61, %v787_v4  ;;  %v888_v11 = vadd.f32 %v887_v8, %v886_v38 }
 0x138   : > { %v791_v12 = vadd.f32 %v790_v6, %v789_v10  ;;  %v890_v13 = vadd.f32 %v889_v5, %v888_v11 }
 0x13a   : > { %v793_v17 = vadd.f32 %v792_v14, %v791_v12  ;;  %v892_v19 = vadd.f32 %v891_v16, %v890_v13 }
 0x13c   : > { %v795_v7 = vadd.f32 %v794_v23, %v793_v17  ;;  %v894_v22 = vadd.f32 %v893_v20, %v892_v19 }
 0x13e   : > { %v797_v27 = vadd.f32 %v796_v32, %v795_v7  ;;  %v896_v28 = vadd.f32 %v895_v25, %v894_v22 }
 0x140   : > { %v898_v34 = vadd.f32 %v897_v29, %v896_v28  ;;  %v799_v35 = vadd.f32 %v798_v42, %v797_v27 }
 0x142   : > { %v900_v39 = vadd.f32 %v899_v37, %v898_v34  ;;  %v801_v40 = vadd.f32 %v800_v45, %v799_v35 }
 0x144   : > { %v902_v46 = vadd.f32 %v901_v24, %v900_v39  ;;  %v803_v47 = vadd.f32 %v802_v15, %v801_v40 }
 0x146   : > { %v804_v49 = vrot.slane %v803_v47, 4  ;;  %v904_v18 = vadd.f32 %v903_v48, %v902_v46 }
 0x148   : > { %v805_v50 = vadd.f32 %v804_v49, %v803_v47  ;;  %v905_v54 = vrot.slane %v904_v18, 4 }
 0x14a   : > { %v806_v56 = vrot.slane %v805_v50, 2  ;;  %v906_v33 = vadd.f32 %v905_v54, %v904_v18 }
 0x14c   : > { %v807_v36 = vadd.f32 %v806_v56, %v805_v50  ;;  %v907_v57 = vrot.slane %v906_v33, 2 }
 0x14e   : > { %v808_v58 = vrot.slane %v807_v36, 1  ;;  %v908_v59 = vadd.f32 %v907_v57, %v906_v33 }
 0x150   : > { %v809_v60 = vadd.f32 %v808_v58, %v807_v36  ;;  %v909_v21 = vrot.slane %v908_v59, 1 }
 0x152   : > { %v910_v43 = vadd.f32 %v909_v21, %v908_v59  ;;  %v914_v44 = vsel %vm913_vm5, %v809_v60, 0.0 }
 0x154   : > { %v916_v63 = vsel %vm915_vm6, %v910_v43, 0.0 }
 0x155   : > { %v917_v0 = vadd.f32 %v916_v63, %v914_v44 }
 0x157   : > { %918 = vst.msk [vmem:[%s187_s21] sm:$0xff] %vm740_vm4, %v917_v0 }
 0x158 PF: > { %s14_s12 = sadd.s32 1, %s1266_s12  }
 0x159   : > { %p11_p5 = scmp.ge.s32.totalorder %s14_s12, 4  }
 0x15b   :  { %13 = sbr.rel (!%p11_p5) target bundleno = 1 (0x1), region = 70 }

// kernel: resnet_generator_forward.21
= control target key start
LH: loop header
LB: loop body
LE: loop exit
PB: predicated region body
PF: predicated region fallthrough
CT: control target
= control target key end

     0   :  { %s566_s12 = smov 0   ;;  %s641_s0 = inlined_call_operand.vmem [shape: bf16[128,72], index: 0, kind: input, shape index: {}]   ;;  %s642_s1 = inlined_call_operand.vmem [shape: bf16[72,16], index: 1, kind: input, shape index: {}]   ;;  %s643_s2 = inlined_call_operand.vmem [shape: bf16[128,16], index: 2, kind: output, shape index: {0}]   ;;  %s644_s3 = inlined_call_operand.vmem [shape: f32[16,16], index: 3, kind: output, shape index: {1}]  }
   0x1 LB: > { %s572_s13 = sadd.s32 4294967295, %s544_s12   ;;  %p463_p0 = scmp.ge.s32.totalorder %s544_s12, 1  ;;  %s544_s12 = sphi %s566_s12, %s14_s12  }
   0x2   : > { %p141_p1 = scmp.lt.s32.totalorder %s544_s12, 3 }
   0x4   : > { %p142_p2 = pnand %p463_p0, %p141_p1 }
   0x5   : > { %s464_s16 = sshll.u32 (!%p142_p2), %s572_s13, 3  ;;  %p181_p4 = scmp.lt.s32.totalorder (!%p142_p2), %s572_s13, 1 }
   0x6   : > { %145 = sbr.rel (%p142_p2) target bundleno = 203 (0xcb), region = 28  ;;  %p170_p3 = scmp.lt.s32.totalorder (!%p142_p2), %s464_s16, 15 }
   0xb   : > { %v202_v0 = vld [vmem:[%s642_s1 + $0x20] sm:$0xf]  ;;  %vm263_vm0 = vcmask 1043456   ;;  %v514_v4 = vld [vmem:[%s642_s1 + $0x18] sm:$0xff]  ;;  %v513_v5 = vld [vmem:[%s642_s1 + $0x10] sm:$0xff]  ;;  %s646_s16 = smov (!%p170_p3, %s464_s16), 15 }
   0xc   : > { %v240_v1 = vunpack.c.l.b16 %v202_v0  ;;  %v512_v6 = vld [vmem:[%s642_s1 + $0x8] sm:$0xff]  ;;  %s465_s23 = sshll.u32 %s646_s16, 2  ;;  %v511_v7 = vld [vmem:[%s642_s1] sm:$0xff]  ;;  %vm250_vm1 = vcmask 588800   ;;  %vm304_vm2 = vcmask 125952   ;;  %vm313_vm3 = vcmask 130048  }
   0xd   : > { %s173_s28 = scalar_lea.vmem %s641_s0, %s465_s23  ;;  %s598_s4 = scalar_lea.vmem %s643_s2, %s465_s23 }
   0xe   : > { %v245_v2 = vpack.c.b16 %v240_v1, %v240_v1  ;;  %v507_v8 = vld [vmem:[%s173_s28] sm:$0xff]  ;;  %v508_v9 = vld [vmem:[%s173_s28 + $0x8] sm:$0xff]  ;;  %v509_v10 = vld [vmem:[%s173_s28 + $0x10] sm:$0xff]  ;;  %s648_s13 = smov (!%p181_p4, %s572_s13), 1 }
   0xf   : > { %v510_v11 = vld [vmem:[%s173_s28 + $0x18] sm:$0xff]  ;;  %s468_s5 = sshll.u32 %s648_s13, 3 }
  0x10   : > { %v265_v3 = vsel %vm263_vm0, %v245_v2, 0  ;;  %s184_s8 = scalar_lea.vmem %s644_s3, %s468_s5 }
  0x11   : > { %270 = vmatpush.bf16.msra.mxu0 %v265_v3  ;;  %515 = vmatpush.bf16.msra.mxu1 %v265_v3 }
  0x12   : > { %516 = vmatpush.bf16.msra.mxu2 %v265_v3  ;;  %517 = vmatpush.bf16.msra.mxu3 %v265_v3 }
  0x15   : > { %271 = vmatpush.bf16.msra.mxu0 %v514_v4  ;;  %518 = vmatpush.bf16.msra.mxu1 %v514_v4 }
  0x16   : > { %519 = vmatpush.bf16.msra.mxu2 %v514_v4  ;;  %520 = vmatpush.bf16.msra.mxu3 %v514_v4 }
  0x19   : > { %272 = vmatpush.bf16.msra.mxu0 %v513_v5  ;;  %521 = vmatpush.bf16.msra.mxu1 %v513_v5 }
  0x1a   : > { %522 = vmatpush.bf16.msra.mxu2 %v513_v5  ;;  %523 = vmatpush.bf16.msra.mxu3 %v513_v5 }
  0x1d   : > { %273 = vmatpush.bf16.msra.mxu0 %v512_v6  ;;  %524 = vmatpush.bf16.msra.mxu1 %v512_v6 }
  0x1e   : > { %525 = vmatpush.bf16.msra.mxu2 %v512_v6  ;;  %526 = vmatpush.bf16.msra.mxu3 %v512_v6  ;;  %v364_v6 = vlaneseq }
  0x21   : > { %274 = vmatpush.bf16.msra.mxu0 %v511_v7  ;;  %527 = vmatpush.bf16.msra.mxu1 %v511_v7 }
  0x22   : > { %528 = vmatpush.bf16.msra.mxu2 %v511_v7  ;;  %529 = vmatpush.bf16.msra.mxu3 %v511_v7 }
  0x24   : > { %501 = vmatmul.msk.bf16.vlgmr.msra.gmra.mxu0 %vm250_vm1, %v507_v8  ;;  %502 = vmatmul.msk.bf16.vlgmr.msra.gmra.mxu1 %vm250_vm1, %v508_v9 }
  0x25   : > { %503 = vmatmul.msk.bf16.vlgmr.msra.gmra.mxu2 %vm250_vm1, %v509_v10  ;;  %504 = vmatmul.msk.bf16.vlgmr.msra.gmra.mxu3 %vm250_vm1, %v510_v11  ;;  %v365_v11 = vshrl.u32 %v364_v6, 7 }
  0x27   : > { %vm366_vm4 = vcmp.eq.s32.totalorder %v365_v11, 0  ;;  %vm368_vm5 = vcmp.eq.s32.totalorder %v365_v11, 1 }
  0xa1   : > { %v276_v12 = vpop.f32.mrf.mxu0  ;;  %v281_v13 = vpop.f32.mrf.mxu1 }
  0xa2   : > { %v296_v14 = vpack.c.bf16 %v276_v12, %v276_v12  ;;  %v298_v15 = vpack.c.bf16 %v281_v13, %v281_v13  ;;  %v335_v18 = vmul.f32 %v276_v12, %v276_v12  ;;  %v314_v23 = vsel %vm313_vm3, %v276_v12, 0.0 }
  0xa3   : > { %v337_v26 = vmul.f32 %v281_v13, %v281_v13  ;;  %v317_v30 = vsel %vm313_vm3, %v281_v13, 0.0 }
  0xa4   : > { %305 = vst.msk [vmem:[%s598_s4] sm:$0xf] %vm304_vm2, %v296_v14  ;;  %v343_v31 = vsel %vm313_vm3, %v335_v18, 0.0 }
  0xa5   : > { %307 = vst.msk [vmem:[%s598_s4 + $0x8] sm:$0xf] %vm304_vm2, %v298_v15  ;;  %v346_v37 = vsel %vm313_vm3, %v337_v26, 0.0 }
  0xa8   : > { %v286_v16 = vpop.f32.mrf.mxu2  ;;  %v291_v17 = vpop.f32.mrf.mxu3 }
  0xa9   : > { %v300_v19 = vpack.c.bf16 %v286_v16, %v286_v16  ;;  %v302_v20 = vpack.c.bf16 %v291_v17, %v291_v17  ;;  %v278_v21 = vpop.f32.mrf.mxu0  ;;  %v283_v22 = vpop.f32.mrf.mxu1  ;;  %v339_v38 = vmul.f32 %v286_v16, %v286_v16  ;;  %v321_v40 = vsel %vm313_vm3, %v286_v16, 0.0 }
  0xaa   : > { %v297_v24 = vpack.c.bf16 %v278_v21, %v278_v21  ;;  %v315_v25 = vsel %vm313_vm3, %v278_v21, 0.0  ;;  %v336_v28 = vmul.f32 %v278_v21, %v278_v21  ;;  %v299_v29 = vpack.c.bf16 %v283_v22, %v283_v22 }
  0xab   : > { %309 = vst.msk [vmem:[%s598_s4 + $0x10] sm:$0xf] %vm304_vm2, %v300_v19  ;;  %v316_v27 = vadd.f32 %v315_v25, %v314_v23  ;;  %v338_v34 = vmul.f32 %v283_v22, %v283_v22  ;;  %v319_v36 = vsel %vm313_vm3, %v283_v22, 0.0  ;;  %v350_v51 = vsel %vm313_vm3, %v339_v38, 0.0 }
  0xac   : > { %311 = vst.msk [vmem:[%s598_s4 + $0x18] sm:$0xf] %vm304_vm2, %v302_v20  ;;  %v344_v32 = vsel %vm313_vm3, %v336_v28, 0.0  ;;  %v341_v52 = vmul.f32 %v291_v17, %v291_v17  ;;  %v325_v54 = vsel %vm313_vm3, %v291_v17, 0.0 }
  0xad   : > { %306 = vst.msk [vmem:[%s598_s4 + $0x4] sm:$0xf] %vm304_vm2, %v297_v24  ;;  %v318_v33 = vadd.f32 %v317_v30, %v316_v27  ;;  %v345_v35 = vadd.f32 %v344_v32, %v343_v31  ;;  %v348_v44 = vsel %vm313_vm3, %v338_v34, 0.0 }
  0xae   : > { %308 = vst.msk [vmem:[%s598_s4 + $0xc] sm:$0xf] %vm304_vm2, %v299_v29  ;;  %v354_v61 = vsel %vm313_vm3, %v341_v52, 0.0 }
  0xaf   : > { %v320_v39 = vadd.f32 %v319_v36, %v318_v33  ;;  %v347_v41 = vadd.f32 %v346_v37, %v345_v35 }
  0xb0   : > { %v288_v42 = vpop.f32.mrf.mxu2  ;;  %v293_v43 = vpop.f32.mrf.mxu3 }
  0xb1   : > { %v301_v45 = vpack.c.bf16 %v288_v42, %v288_v42  ;;  %v322_v46 = vadd.f32 %v321_v40, %v320_v39  ;;  %v340_v47 = vmul.f32 %v288_v42, %v288_v42  ;;  %v349_v48 = vadd.f32 %v348_v44, %v347_v41 }
  0xb2   : > { %v323_v49 = vsel %vm313_vm3, %v288_v42, 0.0  ;;  %v303_v50 = vpack.c.bf16 %v293_v43, %v293_v43  ;;  %v342_v58 = vmul.f32 %v293_v43, %v293_v43  ;;  %v327_v60 = vsel %vm313_vm3, %v293_v43, 0.0 }
  0xb3   : > { %310 = vst.msk [vmem:[%s598_s4 + $0x14] sm:$0xf] %vm304_vm2, %v301_v45  ;;  %v324_v53 = vadd.f32 %v323_v49, %v322_v46  ;;  %v351_v55 = vadd.f32 %v350_v51, %v349_v48  ;;  %v352_v56 = vsel %vm313_vm3, %v340_v47, 0.0 }
  0xb4   : > { %312 = vst.msk [vmem:[%s598_s4 + $0x1c] sm:$0xf] %vm304_vm2, %v303_v50  ;;  %v356_v1 = vsel %vm313_vm3, %v342_v58, 0.0 }
  0xb5   : > { %v326_v57 = vadd.f32 %v325_v54, %v324_v53  ;;  %v353_v59 = vadd.f32 %v352_v56, %v351_v55 }
  0xb7   : > { %v328_v62 = vadd.f32 %v327_v60, %v326_v57  ;;  %v355_v63 = vadd.f32 %v354_v61, %v353_v59 }
  0xb9   : > { %v329_v0 = vrot.slane %v328_v62, 4  ;;  %v357_v2 = vadd.f32 %v356_v1, %v355_v63 }
  0xbb   : > { %v330_v3 = vadd.f32 %v329_v0, %v328_v62  ;;  %v358_v4 = vrot.slane %v357_v2, 4 }
  0xbd   : > { %v331_v5 = vrot.slane %v330_v3, 2  ;;  %v359_v7 = vadd.f32 %v358_v4, %v357_v2 }
  0xbf   : > { %v332_v8 = vadd.f32 %v331_v5, %v330_v3  ;;  %v360_v9 = vrot.slane %v359_v7, 2 }
  0xc1   : > { %v333_v10 = vrot.slane %v332_v8, 1  ;;  %v361_v12 = vadd.f32 %v360_v9, %v359_v7 }
  0xc3   : > { %v334_v13 = vadd.f32 %v333_v10, %v332_v8  ;;  %v362_v14 = vrot.slane %v361_v12, 1 }
  0xc5   : > { %v363_v15 = vadd.f32 %v362_v14, %v361_v12  ;;  %v367_v16 = vsel %vm366_vm4, %v334_v13, 0.0 }
  0xc7   : > { %v369_v17 = vsel %vm368_vm5, %v363_v15, 0.0 }
  0xc8   : > { %v370_v18 = vadd.f32 %v369_v17, %v367_v16 }
  0xca   : > { %371 = vst.msk [vmem:[%s184_s8] sm:$0xff] %vm313_vm3, %v370_v18 }
  0xcb PF: > { %s14_s12 = sadd.s32 1, %s544_s12  }
  0xcc   : > { %p11_p5 = scmp.ge.s32.totalorder %s14_s12, 4  }
  0xce   :  { %13 = sbr.rel (!%p11_p5) target bundleno = 1 (0x1), region = 70 }

// kernel: resnet_generator_forward.22
= control target key start
LH: loop header
LB: loop body
LE: loop exit
PB: predicated region body
PF: predicated region fallthrough
CT: control target
= control target key end

     0   :  { %s363_s12 = smov 0   ;;  %s401_s0 = inlined_call_operand.vmem [shape: bf16[128,16], index: 0, kind: input, shape index: {}]   ;;  %s402_s1 = inlined_call_operand.vmem [shape: f32[1,16], index: 1, kind: input, shape index: {}]   ;;  %s403_s2 = inlined_call_operand.vmem [shape: f32[1,16], index: 2, kind: input, shape index: {}]   ;;  %s404_s3 = inlined_call_operand.vmem [shape: bf16[128,16], index: 3, kind: output, shape index: {}]  }
   0x1 LB: > { %s295_s13 = sadd.s32 4294967295, %s341_s12   ;;  %p299_p0 = scmp.ge.s32.totalorder %s341_s12, 1  ;;  %s341_s12 = sphi %s363_s12, %s13_s12  }
   0x2   : > { %p138_p1 = scmp.lt.s32.totalorder %s341_s12, 3 }
   0x4   : > { %p139_p2 = pnand %p299_p0, %p138_p1 }
   0x5   : > { %s300_s14 = sshll.u32 (!%p139_p2), %s295_s13, 3 }
   0x6   : > { %142 = sbr.rel (%p139_p2) target bundleno = 33 (0x21), region = 32  ;;  %p163_p3 = scmp.lt.s32.totalorder (!%p139_p2), %s300_s14, 15 }
   0xb   : > { %s406_s14 = smov (!%p163_p3, %s300_s14), 15  ;;  %v333_v0 = vld [vmem:[%s402_s1] ss:$0 sm:$0xff]  ;;  %vm230_vm0 = vcmask 125952  }
   0xc   : > { %s301_s15 = sshll.u32 %s406_s14, 2  ;;  %v334_v5 = vld [vmem:[%s403_s2] ss:$0 sm:$0xff] }
   0xd   : > { %s166_s18 = scalar_lea.vmem %s401_s0, %s301_s15  ;;  %s172_s25 = scalar_lea.vmem %s404_s3, %s301_s15 }
   0xe   : > { %v307_v1 = vld [vmem:[%s166_s18] sm:$0xff]   ;;  %v322_v2 = vld [vmem:[%s166_s18 + $0x8] sm:$0xff]   ;;  %v323_v3 = vld [vmem:[%s166_s18 + $0x10] sm:$0xff]  }
   0xf   : > { %v308_v4 = vunpack.c.l.bf16 %v307_v1  ;;  %v309_v6 = vunpack.c.h.bf16 %v307_v1  ;;  %v312_v7 = vunpack.c.l.bf16 %v322_v2  ;;  %v313_v8 = vunpack.c.h.bf16 %v322_v2  ;;  %v324_v9 = vld [vmem:[%s166_s18 + $0x18] sm:$0xff]  }
  0x10   : > { %v316_v10 = vunpack.c.l.bf16 %v323_v3  ;;  %v317_v11 = vunpack.c.h.bf16 %v323_v3  ;;  %v320_v12 = vunpack.c.l.bf16 %v324_v9  ;;  %v321_v13 = vunpack.c.h.bf16 %v324_v9 }
  0x11   : > { %v194_v14 = vmul.f32 %v333_v0, %v308_v4  ;;  %v195_v15 = vmul.f32 %v333_v0, %v309_v6  ;;  %v196_v16 = vmul.f32 %v333_v0, %v312_v7  ;;  %v197_v17 = vmul.f32 %v333_v0, %v313_v8 }
  0x12   : > { %v198_v18 = vmul.f32 %v333_v0, %v316_v10  ;;  %v199_v19 = vmul.f32 %v333_v0, %v317_v11  ;;  %v200_v20 = vmul.f32 %v333_v0, %v320_v12  ;;  %v201_v21 = vmul.f32 %v333_v0, %v321_v13 }
  0x13   : > { %v206_v22 = vadd.f32 %v334_v5, %v194_v14  ;;  %v207_v23 = vadd.f32 %v334_v5, %v195_v15  ;;  %v208_v24 = vadd.f32 %v334_v5, %v196_v16  ;;  %v209_v25 = vadd.f32 %v334_v5, %v197_v17 }
  0x14   : > { %v210_v26 = vadd.f32 %v334_v5, %v198_v18  ;;  %v211_v27 = vadd.f32 %v334_v5, %v199_v19  ;;  %v212_v28 = vadd.f32 %v334_v5, %v200_v20  ;;  %v213_v29 = vadd.f32 %v334_v5, %v201_v21 }
  0x15   : > { %v214_v30 = vmax.f32 %v206_v22, 0.0  ;;  %v215_v31 = vmax.f32 %v207_v23, 0.0  ;;  %v216_v32 = vmax.f32 %v208_v24, 0.0  ;;  %v217_v33 = vmax.f32 %v209_v25, 0.0 }
  0x16   : > { %v218_v34 = vmax.f32 %v210_v26, 0.0  ;;  %v219_v35 = vmax.f32 %v211_v27, 0.0  ;;  %v220_v39 = vmax.f32 %v212_v28, 0.0  ;;  %v221_v41 = vmax.f32 %v213_v29, 0.0 }
  0x17   : > { %v222_v36 = vpack.c.bf16 %v214_v30, %v214_v30  ;;  %v223_v37 = vpack.c.bf16 %v215_v31, %v215_v31  ;;  %v224_v38 = vpack.c.bf16 %v216_v32, %v216_v32  ;;  %v225_v40 = vpack.c.bf16 %v217_v33, %v217_v33 }
  0x18   : > { %v226_v42 = vpack.c.bf16 %v218_v34, %v218_v34  ;;  %v227_v43 = vpack.c.bf16 %v219_v35, %v219_v35  ;;  %v228_v44 = vpack.c.bf16 %v220_v39, %v220_v39  ;;  %v229_v45 = vpack.c.bf16 %v221_v41, %v221_v41 }
  0x19   : > { %231 = vst.msk [vmem:[%s172_s25] sm:$0xf] %vm230_vm0, %v222_v36 }
  0x1a   : > { %232 = vst.msk [vmem:[%s172_s25 + $0x4] sm:$0xf] %vm230_vm0, %v223_v37 }
  0x1b   : > { %233 = vst.msk [vmem:[%s172_s25 + $0x8] sm:$0xf] %vm230_vm0, %v224_v38 }
  0x1c   : > { %234 = vst.msk [vmem:[%s172_s25 + $0xc] sm:$0xf] %vm230_vm0, %v225_v40 }
  0x1d   : > { %235 = vst.msk [vmem:[%s172_s25 + $0x10] sm:$0xf] %vm230_vm0, %v226_v42 }
  0x1e   : > { %236 = vst.msk [vmem:[%s172_s25 + $0x14] sm:$0xf] %vm230_vm0, %v227_v43 }
  0x1f   : > { %237 = vst.msk [vmem:[%s172_s25 + $0x18] sm:$0xf] %vm230_vm0, %v228_v44 }
  0x20   : > { %238 = vst.msk [vmem:[%s172_s25 + $0x1c] sm:$0xf] %vm230_vm0, %v229_v45 }
  0x21 PF: > { %s13_s12 = sadd.s32 1, %s341_s12  }
  0x22   : > { %p10_p4 = scmp.ge.s32.totalorder %s13_s12, 4  }
  0x24   :  { %12 = sbr.rel (!%p10_p4) target bundleno = 1 (0x1), region = 62 }

// kernel: resnet_generator_forward.23
= control target key start
LH: loop header
LB: loop body
LE: loop exit
PB: predicated region body
PF: predicated region fallthrough
CT: control target
= control target key end

     0   :  { %s531_s12 = smov 0   ;;  %s592_s0 = inlined_call_operand.vmem [shape: bf16[32,144], index: 0, kind: input, shape index: {}]   ;;  %s593_s1 = inlined_call_operand.vmem [shape: bf16[144,32], index: 1, kind: input, shape index: {}]   ;;  %s594_s2 = inlined_call_operand.vmem [shape: bf16[32,32], index: 2, kind: output, shape index: {0}]   ;;  %s595_s3 = inlined_call_operand.vmem [shape: f32[16,32], index: 3, kind: output, shape index: {1}]  }
   0x1 LB: > { %s537_s13 = sadd.s32 4294967295, %s509_s12   ;;  %p429_p0 = scmp.ge.s32.totalorder %s509_s12, 1  ;;  %s509_s12 = sphi %s531_s12, %s14_s12  }
   0x2   : > { %p142_p1 = scmp.lt.s32.totalorder %s509_s12, 3 }
   0x4   : > { %p143_p2 = pnand %p429_p0, %p142_p1 }
   0x5   : > { %s430_s16 = sshll.u32 (!%p143_p2), %s537_s13, 1  ;;  %p184_p4 = scmp.lt.s32.totalorder (!%p143_p2), %s537_s13, 1 }
   0x6   : > { %146 = sbr.rel (%p143_p2) target bundleno = 200 (0xc8), region = 28  ;;  %p172_p3 = scmp.lt.s32.totalorder (!%p143_p2), %s430_s16, 3 }
   0xb   : > { %v493_v0 = vld [vmem:[%s593_s1 + $0x38] sm:$0xff]  ;;  %v492_v1 = vld [vmem:[%s593_s1 + $0x30] sm:$0xff]  ;;  %v494_v2 = vld [vmem:[%s593_s1 + $0x40] sm:$0xff]  ;;  %s597_s16 = smov (!%p172_p3, %s430_s16), 3  ;;  %vm272_vm0 = vcmask 130048   ;;  %vm306_vm1 = vcmask 257024   ;;  %v330_v34 = vlaneseq }
   0xc   : > { %276 = vmatpush.bf16.msra.mxu0 %v493_v0  ;;  %297 = vmatpush.bf16.msra.mxu1 %v494_v2  ;;  %s483_s21 = sshll.u32 %s597_s16, 3  ;;  %v491_v3 = vld [vmem:[%s593_s1 + $0x28] sm:$0xff]  ;;  %v490_v7 = vld [vmem:[%s593_s1 + $0x20] sm:$0xff]  ;;  %v489_v8 = vld [vmem:[%s593_s1 + $0x18] sm:$0xff]  ;;  %s434_s10 = sshll.u32 %s597_s16, 2  ;;  %vm309_vm2 = vcmask 261120  }
   0xd   : > { %s176_s26 = scalar_lea.vmem %s592_s0, %s483_s21  ;;  %v488_v9 = vld [vmem:[%s593_s1 + $0x10] sm:$0xff]  ;;  %v487_v10 = vld [vmem:[%s593_s1 + $0x8] sm:$0xff]  ;;  %v486_v11 = vld [vmem:[%s593_s1] sm:$0xff]  ;;  %s182_s15 = scalar_lea.vmem %s594_s2, %s434_s10  ;;  %v331_v39 = vshrl.u32 %v330_v34, 7 }
   0xe   : > { %v484_v4 = vld [vmem:[%s176_s26 + $0x4] sm:$0xf]  ;;  %v440_v5 = vld [vmem:[%s176_s26 + $0x8] sm:$0xf0]  ;;  %v438_v12 = vld [vmem:[%s176_s26] sm:$0xf] }
   0xf   : > { %v443_v6 = vor.u32 %v484_v4, %v440_v5  ;;  %v485_v13 = vld [vmem:[%s176_s26 + $0x4] sm:$0xf0]  ;;  %s599_s13 = smov (!%p184_p4, %s537_s13), 1  ;;  %vm332_vm3 = vcmp.eq.s32.totalorder %v331_v39, 0  ;;  %vm334_vm4 = vcmp.eq.s32.totalorder %v331_v39, 1 }
  0x10   : > { %277 = vmatpush.bf16.msra.mxu0 %v492_v1  ;;  %v439_v14 = vor.u32 %v485_v13, %v438_v12  ;;  %s435_s16 = sshll.u32 %s599_s13, 3 }
  0x11   : > { %480 = vmatmul.msk.bf16.vlgmr.msra.gmra.mxu1 %vm272_vm0, %v443_v6  ;;  %s187_s19 = scalar_lea.vmem %s595_s3, %s435_s16 }
  0x14   : > { %278 = vmatpush.bf16.msra.mxu0 %v491_v3 }
  0x18   : > { %279 = vmatpush.bf16.msra.mxu0 %v490_v7 }
  0x1c   : > { %280 = vmatpush.bf16.msra.mxu0 %v489_v8 }
  0x20   : > { %281 = vmatpush.bf16.msra.mxu0 %v488_v9 }
  0x24   : > { %282 = vmatpush.bf16.msra.mxu0 %v487_v10 }
  0x28   : > { %283 = vmatpush.bf16.msra.mxu0 %v486_v11 }
  0x2b   : > { %284 = vmatmul.bf16.vlgmr.msra.gmra.mxu0 %v439_v14 }
  0x8e   : > { %v299_v15 = vpop.f32.mrf.mxu1 }
  0x96   : > { %v301_v19 = vpop.f32.mrf.mxu1 }
  0xa8   : > { %v285_v16 = vpop.f32.mrf.mxu0 }
  0xa9   : > { %v300_v17 = vadd.f32 %v299_v15, %v285_v16 }
  0xab   : > { %v304_v18 = vpack.c.bf16 %v300_v17, %v300_v17  ;;  %v319_v21 = vmul.f32 %v300_v17, %v300_v17  ;;  %v310_v23 = vsel %vm309_vm2, %v300_v17, 0.0 }
  0xad   : > { %307 = vst.msk [vmem:[%s182_s15] sm:$0xf] %vm306_vm1, %v304_v18  ;;  %v321_v28 = vsel %vm309_vm2, %v319_v21, 0.0 }
  0xb0   : > { %v287_v20 = vpop.f32.mrf.mxu0 }
  0xb1   : > { %v302_v22 = vadd.f32 %v301_v19, %v287_v20 }
  0xb3   : > { %v305_v24 = vpack.c.bf16 %v302_v22, %v302_v22  ;;  %v311_v25 = vsel %vm309_vm2, %v302_v22, 0.0  ;;  %v320_v26 = vmul.f32 %v302_v22, %v302_v22 }
  0xb4   : > { %v312_v27 = vadd.f32 %v311_v25, %v310_v23 }
  0xb5   : > { %308 = vst.msk [vmem:[%s182_s15 + $0x4] sm:$0xf] %vm306_vm1, %v305_v24  ;;  %v322_v29 = vsel %vm309_vm2, %v320_v26, 0.0 }
  0xb6   : > { %v313_v30 = vrot.slane %v312_v27, 4  ;;  %v323_v31 = vadd.f32 %v322_v29, %v321_v28 }
  0xb8   : > { %v314_v32 = vadd.f32 %v313_v30, %v312_v27  ;;  %v324_v33 = vrot.slane %v323_v31, 4 }
  0xba   : > { %v315_v35 = vrot.slane %v314_v32, 2  ;;  %v325_v36 = vadd.f32 %v324_v33, %v323_v31 }
  0xbc   : > { %v316_v37 = vadd.f32 %v315_v35, %v314_v32  ;;  %v326_v38 = vrot.slane %v325_v36, 2 }
  0xbe   : > { %v317_v40 = vrot.slane %v316_v37, 1  ;;  %v327_v41 = vadd.f32 %v326_v38, %v325_v36 }
  0xc0   : > { %v318_v42 = vadd.f32 %v317_v40, %v316_v37  ;;  %v328_v43 = vrot.slane %v327_v41, 1 }
  0xc2   : > { %v329_v44 = vadd.f32 %v328_v43, %v327_v41  ;;  %v333_v45 = vsel %vm332_vm3, %v318_v42, 0.0 }
  0xc4   : > { %v335_v46 = vsel %vm334_vm4, %v329_v44, 0.0 }
  0xc5   : > { %v336_v47 = vadd.f32 %v335_v46, %v333_v45 }
  0xc7   : > { %337 = vst.msk [vmem:[%s187_s19] sm:$0xff] %vm309_vm2, %v336_v47 }
  0xc8 PF: > { %s14_s12 = sadd.s32 1, %s509_s12  }
  0xc9   : > { %p11_p5 = scmp.ge.s32.totalorder %s14_s12, 4  }
  0xcb   :  { %13 = sbr.rel (!%p11_p5) target bundleno = 1 (0x1), region = 70 }

// kernel: resnet_generator_forward.24
= control target key start
LH: loop header
LB: loop body
LE: loop exit
PB: predicated region body
PF: predicated region fallthrough
CT: control target
= control target key end

     0   :  { %s306_s12 = smov 0   ;;  %s329_s0 = inlined_call_operand.vmem [shape: bf16[32,32], index: 0, kind: input, shape index: {}]   ;;  %s330_s1 = inlined_call_operand.vmem [shape: f32[1,32], index: 1, kind: input, shape index: {}]   ;;  %s331_s2 = inlined_call_operand.vmem [shape: f32[1,32], index: 2, kind: input, shape index: {}]   ;;  %s332_s3 = inlined_call_operand.vmem [shape: bf16[32,32], index: 3, kind: output, shape index: {}]  }
   0x1 LB: > { %s253_s13 = sadd.s32 4294967295, %s284_s12   ;;  %p257_p0 = scmp.ge.s32.totalorder %s284_s12, 1  ;;  %s284_s12 = sphi %s306_s12, %s13_s12  }
   0x2   : > { %p138_p1 = scmp.lt.s32.totalorder %s284_s12, 3 }
   0x4   : > { %p139_p2 = pnand %p257_p0, %p138_p1 }
   0x5   : > { %s258_s14 = sshll.u32 (!%p139_p2), %s253_s13, 1 }
   0x6   : > { %142 = sbr.rel (%p139_p2) target bundleno = 27 (0x1b), region = 32  ;;  %p163_p3 = scmp.lt.s32.totalorder (!%p139_p2), %s258_s14, 3 }
   0xb   : > { %s334_s14 = smov (!%p163_p3, %s258_s14), 3  ;;  %v276_v0 = vld [vmem:[%s330_s1] ss:$0 sm:$0xff]  ;;  %vm194_vm0 = vcmask 257024  }
   0xc   : > { %s259_s15 = sshll.u32 %s334_s14, 2  ;;  %v277_v4 = vld [vmem:[%s331_s2] ss:$0 sm:$0xff] }
   0xd   : > { %s166_s18 = scalar_lea.vmem %s329_s0, %s259_s15  ;;  %s172_s25 = scalar_lea.vmem %s332_s3, %s259_s15 }
   0xe   : > { %v265_v1 = vld [vmem:[%s166_s18] sm:$0xff]  }
   0xf   : > { %v266_v2 = vunpack.c.l.bf16 %v265_v1  ;;  %v267_v3 = vunpack.c.h.bf16 %v265_v1 }
  0x11   : > { %v182_v5 = vmul.f32 %v276_v0, %v266_v2  ;;  %v183_v6 = vmul.f32 %v276_v0, %v267_v3 }
  0x13   : > { %v188_v7 = vadd.f32 %v277_v4, %v182_v5  ;;  %v189_v8 = vadd.f32 %v277_v4, %v183_v6 }
  0x15   : > { %v190_v9 = vmax.f32 %v188_v7, 0.0  ;;  %v191_v10 = vmax.f32 %v189_v8, 0.0 }
  0x17   : > { %v192_v11 = vpack.c.bf16 %v190_v9, %v190_v9  ;;  %v193_v12 = vpack.c.bf16 %v191_v10, %v191_v10 }
  0x19   : > { %195 = vst.msk [vmem:[%s172_s25] sm:$0xf] %vm194_vm0, %v192_v11 }
  0x1a   : > { %196 = vst.msk [vmem:[%s172_s25 + $0x4] sm:$0xf] %vm194_vm0, %v193_v12 }
  0x1b PF: > { %s13_s12 = sadd.s32 1, %s284_s12  }
  0x1c   : > { %p10_p4 = scmp.ge.s32.totalorder %s13_s12, 4  }
  0x1e   :  { %12 = sbr.rel (!%p10_p4) target bundleno = 1 (0x1), region = 62 }

// kernel: resnet_generator_forward.28
= control target key start
LH: loop header
LB: loop body
LE: loop exit
PB: predicated region body
PF: predicated region fallthrough
CT: control target
= control target key end

     0   :  { %s382_s15 = smov 0   ;;  %s408_s0 = inlined_call_operand.vmem [shape: bf16[32,32], index: 0, kind: input, shape index: {}]   ;;  %s409_s1 = inlined_call_operand.vmem [shape: f32[1,32], index: 1, kind: input, shape index: {}]   ;;  %s410_s2 = inlined_call_operand.vmem [shape: f32[1,32], index: 2, kind: input, shape index: {}]   ;;  %s411_s3 = inlined_call_operand.vmem [shape: bf16[32,32], index: 3, kind: input, shape index: {}]   ;;  %s412_s4 = inlined_call_operand.vmem [shape: bf16[32,32], index: 4, kind: output, shape index: {}]  }
   0x1 LB: > { %s318_s16 = sadd.s32 4294967295, %s355_s15   ;;  %p322_p0 = scmp.ge.s32.totalorder %s355_s15, 1  ;;  %s355_s15 = sphi %s382_s15, %s14_s15  }
   0x2   : > { %p174_p1 = scmp.lt.s32.totalorder %s355_s15, 3 }
   0x4   : > { %p175_p2 = pnand %p322_p0, %p174_p1 }
   0x5   : > { %s323_s17 = sshll.u32 (!%p175_p2), %s318_s16, 1 }
   0x6   : > { %178 = sbr.rel (%p175_p2) target bundleno = 27 (0x1b), region = 36  ;;  %p206_p3 = scmp.lt.s32.totalorder (!%p175_p2), %s323_s17, 3 }
   0xb   : > { %s414_s17 = smov (!%p206_p3, %s323_s17), 3  ;;  %v347_v0 = vld [vmem:[%s409_s1] ss:$0 sm:$0xff]  ;;  %vm247_vm0 = vcmask 257024  }
   0xc   : > { %s324_s18 = sshll.u32 %s414_s17, 2  ;;  %v348_v5 = vld [vmem:[%s410_s2] ss:$0 sm:$0xff] }
   0xd   : > { %s209_s21 = scalar_lea.vmem %s408_s0, %s324_s18  ;;  %s215_s24 = scalar_lea.vmem %s411_s3, %s324_s18 }
   0xe   : > { %v332_v1 = vld [vmem:[%s209_s21] sm:$0xff]   ;;  %s221_s5 = scalar_lea.vmem %s412_s4, %s324_s18 }
   0xf   : > { %v336_v2 = vld [vmem:[%s215_s24] sm:$0xff]   ;;  %v333_v3 = vunpack.c.l.bf16 %v332_v1  ;;  %v334_v4 = vunpack.c.h.bf16 %v332_v1 }
  0x10   : > { %v337_v8 = vunpack.c.l.bf16 %v336_v2  ;;  %v338_v9 = vunpack.c.h.bf16 %v336_v2 }
  0x11   : > { %v231_v6 = vmul.f32 %v347_v0, %v333_v3  ;;  %v232_v7 = vmul.f32 %v347_v0, %v334_v4 }
  0x13   : > { %v237_v10 = vadd.f32 %v348_v5, %v231_v6  ;;  %v238_v11 = vadd.f32 %v348_v5, %v232_v7 }
  0x15   : > { %v243_v12 = vadd.f32 %v337_v8, %v237_v10  ;;  %v244_v13 = vadd.f32 %v338_v9, %v238_v11 }
  0x17   : > { %v245_v14 = vpack.c.bf16 %v243_v12, %v243_v12  ;;  %v246_v15 = vpack.c.bf16 %v244_v13, %v244_v13 }
  0x19   : > { %248 = vst.msk [vmem:[%s221_s5] sm:$0xf] %vm247_vm0, %v245_v14 }
  0x1a   : > { %249 = vst.msk [vmem:[%s221_s5 + $0x4] sm:$0xf] %vm247_vm0, %v246_v15 }
  0x1b PF: > { %s14_s15 = sadd.s32 1, %s355_s15  }
  0x1c   : > { %p11_p4 = scmp.ge.s32.totalorder %s14_s15, 4  }
  0x1e   :  { %13 = sbr.rel (!%p11_p4) target bundleno = 1 (0x1), region = 69 }

// kernel: resnet_generator_forward.25
= control target key start
LH: loop header
LB: loop body
LE: loop exit
PB: predicated region body
PF: predicated region fallthrough
CT: control target
= control target key end

     0   :  { %s673_s12 = smov 0   ;;  %s762_s0 = inlined_call_operand.vmem [shape: bf16[32,288], index: 0, kind: input, shape index: {}]   ;;  %s763_s1 = inlined_call_operand.vmem [shape: bf16[288,32], index: 1, kind: input, shape index: {}]   ;;  %s764_s2 = inlined_call_operand.vmem [shape: bf16[32,32], index: 2, kind: output, shape index: {0}]   ;;  %s765_s3 = inlined_call_operand.vmem [shape: f32[16,32], index: 3, kind: output, shape index: {1}]  }
   0x1 LB: > { %s679_s13 = sadd.s32 4294967295, %s651_s12   ;;  %p522_p0 = scmp.ge.s32.totalorder %s651_s12, 1  ;;  %s651_s12 = sphi %s673_s12, %s14_s12  }
   0x2   : > { %p142_p1 = scmp.lt.s32.totalorder %s651_s12, 3 }
   0x4   : > { %p143_p2 = pnand %p522_p0, %p142_p1 }
   0x5   : > { %s523_s18 = sshll.u32 (!%p143_p2), %s679_s13, 1  ;;  %p184_p4 = scmp.lt.s32.totalorder (!%p143_p2), %s679_s13, 1 }
   0x6   : > { %146 = sbr.rel (%p143_p2) target bundleno = 203 (0xcb), region = 28  ;;  %p172_p3 = scmp.lt.s32.totalorder (!%p143_p2), %s523_s18, 3 }
   0xb   : > { %v625_v0 = vld [vmem:[%s763_s1 + $0x38] sm:$0xff]  ;;  %v624_v2 = vld [vmem:[%s763_s1 + $0x30] sm:$0xff]  ;;  %v635_v4 = vld [vmem:[%s763_s1 + $0x88] sm:$0xff]  ;;  %s767_s18 = smov (!%p172_p3, %s523_s18), 3  ;;  %vm352_vm0 = vcmask 261120   ;;  %vm400_vm1 = vcmask 257024   ;;  %v423_v50 = vlaneseq }
   0xc   : > { %v633_v1 = vld [vmem:[%s763_s1 + $0x78] sm:$0xff]  ;;  %356 = vmatpush.bf16.msra.mxu0 %v625_v0  ;;  %v632_v3 = vld [vmem:[%s763_s1 + $0x70] sm:$0xff]  ;;  %390 = vmatpush.bf16.msra.mxu2 %v635_v4  ;;  %v634_v5 = vld [vmem:[%s763_s1 + $0x80] sm:$0xff]  ;;  %s636_s27 = smul.u32 12, %s767_s18  ;;  %s526_s4 = sshll.u32 %s767_s18, 2 }
   0xd   : > { %370 = vmatpush.bf16.msra.mxu1 %v633_v1  ;;  %v623_v6 = vld [vmem:[%s763_s1 + $0x28] sm:$0xff]  ;;  %v622_v11 = vld [vmem:[%s763_s1 + $0x20] sm:$0xff]  ;;  %v621_v13 = vld [vmem:[%s763_s1 + $0x18] sm:$0xff]  ;;  %s182_s8 = scalar_lea.vmem %s764_s2, %s526_s4  ;;  %s769_s13 = smov (!%p184_p4, %s679_s13), 1  ;;  %v424_v55 = vshrl.u32 %v423_v50, 7 }
   0xe   : > { %v631_v7 = vld [vmem:[%s763_s1 + $0x68] sm:$0xff]  ;;  %s176_s7 = scalar_lea.vmem %s762_s0, %s636_s27  ;;  %v630_v12 = vld [vmem:[%s763_s1 + $0x60] sm:$0xff]  ;;  %v629_v14 = vld [vmem:[%s763_s1 + $0x58] sm:$0xff]  ;;  %s527_s18 = sshll.u32 %s769_s13, 3 }
   0xf   : > { %v538_v8 = vld [vmem:[%s176_s7 + $0x8] sm:$0xf]  ;;  %v617_v9 = vld [vmem:[%s176_s7 + $0x10] sm:$0xf0]  ;;  %v618_v19 = vld [vmem:[%s763_s1] sm:$0xff]  ;;  %vm425_vm2 = vcmp.eq.s32.totalorder %v424_v55, 0  ;;  %s187_s10 = scalar_lea.vmem %s765_s3, %s527_s18 }
  0x10   : > { %357 = vmatpush.bf16.msra.mxu0 %v624_v2  ;;  %391 = vmatpush.bf16.msra.mxu2 %v634_v5  ;;  %v539_v10 = vor.u32 %v617_v9, %v538_v8  ;;  %v620_v15 = vld [vmem:[%s763_s1 + $0x10] sm:$0xff]  ;;  %v619_v17 = vld [vmem:[%s763_s1 + $0x8] sm:$0xff]  ;;  %v626_v20 = vld [vmem:[%s763_s1 + $0x40] sm:$0xff]  ;;  %vm427_vm3 = vcmp.eq.s32.totalorder %v424_v55, 1 }
  0x11   : > { %371 = vmatpush.bf16.msra.mxu1 %v632_v3  ;;  %v628_v16 = vld [vmem:[%s763_s1 + $0x50] sm:$0xff]  ;;  %v627_v18 = vld [vmem:[%s763_s1 + $0x48] sm:$0xff]  ;;  %v530_v21 = vld [vmem:[%s176_s7] sm:$0xf] }
  0x12   : > { %v616_v22 = vld [vmem:[%s176_s7 + $0x8] sm:$0xf0]  ;;  %v615_v23 = vld [vmem:[%s176_s7 + $0x4] sm:$0xf]  ;;  %v532_v24 = vld [vmem:[%s176_s7 + $0xc] sm:$0xf0] }
  0x13   : > { %612 = vmatmul.msk.bf16.vlgmr.msra.gmra.mxu2 %vm352_vm0, %v539_v10  ;;  %v531_v25 = vor.u32 %v616_v22, %v530_v21  ;;  %v535_v26 = vor.u32 %v615_v23, %v532_v24 }
  0x14   : > { %358 = vmatpush.bf16.msra.mxu0 %v623_v6 }
  0x15   : > { %372 = vmatpush.bf16.msra.mxu1 %v631_v7 }
  0x18   : > { %359 = vmatpush.bf16.msra.mxu0 %v622_v11 }
  0x19   : > { %373 = vmatpush.bf16.msra.mxu1 %v630_v12 }
  0x1c   : > { %360 = vmatpush.bf16.msra.mxu0 %v621_v13 }
  0x1d   : > { %374 = vmatpush.bf16.msra.mxu1 %v629_v14 }
  0x20   : > { %361 = vmatpush.bf16.msra.mxu0 %v620_v15 }
  0x21   : > { %375 = vmatpush.bf16.msra.mxu1 %v628_v16 }
  0x24   : > { %362 = vmatpush.bf16.msra.mxu0 %v619_v17 }
  0x25   : > { %376 = vmatpush.bf16.msra.mxu1 %v627_v18 }
  0x28   : > { %363 = vmatpush.bf16.msra.mxu0 %v618_v19 }
  0x29   : > { %377 = vmatpush.bf16.msra.mxu1 %v626_v20 }
  0x2b   : > { %364 = vmatmul.bf16.vlgmr.msra.gmra.mxu0 %v531_v25 }
  0x2c   : > { %378 = vmatmul.bf16.vlgmr.msra.gmra.mxu1 %v535_v26 }
  0x96   : > { %v393_v27 = vpop.f32.mrf.mxu2 }
  0x9e   : > { %v395_v36 = vpop.f32.mrf.mxu2 }
  0xa8   : > { %v365_v28 = vpop.f32.mrf.mxu0 }
  0xa9   : > { %v379_v29 = vpop.f32.mrf.mxu1 }
  0xaa   : > { %v380_v30 = vadd.f32 %v379_v29, %v365_v28 }
  0xac   : > { %v394_v31 = vadd.f32 %v393_v27, %v380_v30 }
  0xae   : > { %v398_v32 = vpack.c.bf16 %v394_v31, %v394_v31  ;;  %v412_v37 = vmul.f32 %v394_v31, %v394_v31  ;;  %v403_v39 = vsel %vm352_vm0, %v394_v31, 0.0 }
  0xb0   : > { %401 = vst.msk [vmem:[%s182_s8] sm:$0xf] %vm400_vm1, %v398_v32  ;;  %v367_v33 = vpop.f32.mrf.mxu0  ;;  %v414_v44 = vsel %vm352_vm0, %v412_v37, 0.0 }
  0xb1   : > { %v381_v34 = vpop.f32.mrf.mxu1 }
  0xb2   : > { %v382_v35 = vadd.f32 %v381_v34, %v367_v33 }
  0xb4   : > { %v396_v38 = vadd.f32 %v395_v36, %v382_v35 }
  0xb6   : > { %v399_v40 = vpack.c.bf16 %v396_v38, %v396_v38  ;;  %v404_v41 = vsel %vm352_vm0, %v396_v38, 0.0  ;;  %v413_v42 = vmul.f32 %v396_v38, %v396_v38 }
  0xb7   : > { %v405_v43 = vadd.f32 %v404_v41, %v403_v39 }
  0xb8   : > { %402 = vst.msk [vmem:[%s182_s8 + $0x4] sm:$0xf] %vm400_vm1, %v399_v40  ;;  %v415_v45 = vsel %vm352_vm0, %v413_v42, 0.0 }
  0xb9   : > { %v406_v46 = vrot.slane %v405_v43, 4  ;;  %v416_v47 = vadd.f32 %v415_v45, %v414_v44 }
  0xbb   : > { %v407_v48 = vadd.f32 %v406_v46, %v405_v43  ;;  %v417_v49 = vrot.slane %v416_v47, 4 }
  0xbd   : > { %v408_v51 = vrot.slane %v407_v48, 2  ;;  %v418_v52 = vadd.f32 %v417_v49, %v416_v47 }
  0xbf   : > { %v409_v53 = vadd.f32 %v408_v51, %v407_v48  ;;  %v419_v54 = vrot.slane %v418_v52, 2 }
  0xc1   : > { %v410_v56 = vrot.slane %v409_v53, 1  ;;  %v420_v57 = vadd.f32 %v419_v54, %v418_v52 }
  0xc3   : > { %v411_v58 = vadd.f32 %v410_v56, %v409_v53  ;;  %v421_v59 = vrot.slane %v420_v57, 1 }
  0xc5   : > { %v422_v60 = vadd.f32 %v421_v59, %v420_v57  ;;  %v426_v61 = vsel %vm425_vm2, %v411_v58, 0.0 }
  0xc7   : > { %v428_v62 = vsel %vm427_vm3, %v422_v60, 0.0 }
  0xc8   : > { %v429_v63 = vadd.f32 %v428_v62, %v426_v61 }
  0xca   : > { %430 = vst.msk [vmem:[%s187_s10] sm:$0xff] %vm352_vm0, %v429_v63 }
  0xcb PF: > { %s14_s12 = sadd.s32 1, %s651_s12  }
  0xcc   : > { %p11_p5 = scmp.ge.s32.totalorder %s14_s12, 4  }
  0xce   :  { %13 = sbr.rel (!%p11_p5) target bundleno = 1 (0x1), region = 70 }

// kernel: tile.23
= control target key start
LH: loop header
LB: loop body
LE: loop exit
PB: predicated region body
PF: predicated region fallthrough
CT: control target
= control target key end

     0   :  { %s22_s0 = inlined_call_operand.vmem [shape: f32[16], index: 0, kind: input, shape index: {}]   ;;  %s23_s1 = inlined_call_operand.vmem [shape: f32[4,16], index: 1, kind: output, shape index: {}]  }
   0x1   :  { %v4_v0 = vld [vmem:[%s22_s0] ss:$0 sm:$0xff] }
   0x2   :  { %5 = vst [vmem:[%s23_s1] sm:$0xf] %v4_v0 }

// kernel: tile.28
= control target key start
LH: loop header
LB: loop body
LE: loop exit
PB: predicated region body
PF: predicated region fallthrough
CT: control target
= control target key end

     0   :  { %s37_s8 = smov 16   ;;  %s38_s9 = smov 32   ;;  %vm7_vm0 = vcmask 130048   ;;  %vm13_vm1 = vcmask 523648   ;;  %vm19_vm2 = vcmask 392448   ;;  %vm25_vm3 = vcmask 261248   ;;  %s55_s0 = inlined_call_operand.vmem [shape: f32[4,16], index: 0, kind: input, shape index: {}]   ;;  %s56_s1 = inlined_call_operand.vmem [shape: f32[1,64], index: 1, kind: output, shape index: {}]  }
   0x1   :  { %v4_v0 = vld [vmem:[%s55_s0] sm:$0xf]  ;;  %s36_s0 = smov 48  }
   0x2   :  { %5 = vst [vmem:[#allocation1] sm:$0xf] %v4_v0 }
   0x9   :  { %v10_v1 = vld [vmem:[#allocation1 + $0x3] sm:$0x1]   ;;  %v22_v2 = vld [vmem:[#allocation1 + $0x1] sm:$0x1]   ;;  %v16_v3 = vld [vmem:[#allocation1 + $0x2] sm:$0x1]  }
   0xa   :  { %11 = vrot.lane.b32.xlu0 %v10_v1, %s36_s0  ;;  %23 = vrot.lane.b32.xlu1 %v22_v2, %s37_s8  ;;  %v6_v4 = vld [vmem:[#allocation1] sm:$0x1]  }
   0xb   :  { %8 = vst.msk [vmem:[#allocation0] sm:$0x1] %vm7_vm0, %v6_v4  }
  0x12   :  { %17 = vrot.lane.b32.xlu0 %v16_v3, %s38_s9 }
  0x7c   :  { %v12_v5 = vpop.permute.xlu0 %11   ;;  %v24_v6 = vpop.permute.xlu1 %23  }
  0x7d   :  { %14 = vst.msk [vmem:[#allocation0] sm:$0x1] %vm13_vm1, %v12_v5  }
  0x84   :  { %v18_v7 = vpop.permute.xlu0 %17  }
  0x85   :  { %20 = vst.msk [vmem:[#allocation0] sm:$0x1] %vm19_vm2, %v18_v7  }
  0x86   :  { %26 = vst.msk [vmem:[#allocation0] sm:$0x1] %vm25_vm3, %v24_v6  }
  0x8d   :  { %v29_v8 = vld [vmem:[#allocation0] sm:$0x1] }
  0x8e   :  { %32 = vst [vmem:[%s56_s1] sm:$0x1] %v29_v8 }

// kernel: resnet_generator_forward.33
= control target key start
LH: loop header
LB: loop body
LE: loop exit
PB: predicated region body
PF: predicated region fallthrough
CT: control target
= control target key end

     0   :  { %s485_s12 = smov 0   ;;  %s539_s0 = inlined_call_operand.vmem [shape: bf16[32,128], index: 0, kind: input, shape index: {}]   ;;  %s540_s1 = inlined_call_operand.vmem [shape: bf16[128,64], index: 1, kind: input, shape index: {}]   ;;  %s541_s2 = inlined_call_operand.vmem [shape: bf16[32,64], index: 2, kind: output, shape index: {0}]   ;;  %s542_s3 = inlined_call_operand.vmem [shape: f32[16,64], index: 3, kind: output, shape index: {1}]  }
   0x1 LB: > { %s491_s13 = sadd.s32 4294967295, %s463_s12   ;;  %p396_p0 = scmp.ge.s32.totalorder %s463_s12, 1  ;;  %s463_s12 = sphi %s485_s12, %s14_s12  }
   0x2   : > { %p141_p1 = scmp.lt.s32.totalorder %s463_s12, 3 }
   0x4   : > { %p142_p2 = pnand %p396_p0, %p141_p1 }
   0x5   : > { %s397_s22 = sshll.u32 (!%p142_p2), %s491_s13, 1  ;;  %p181_p4 = scmp.lt.s32.totalorder (!%p142_p2), %s491_s13, 1 }
   0x6   : > { %145 = sbr.rel (%p142_p2) target bundleno = 198 (0xc6), region = 28  ;;  %p170_p3 = scmp.lt.s32.totalorder (!%p142_p2), %s397_s22, 3 }
   0xb   : > { %v448_v0 = vld [vmem:[%s540_s1 + $0x38] sm:$0xff]  ;;  %v447_v1 = vld [vmem:[%s540_s1 + $0x30] sm:$0xff]  ;;  %v446_v2 = vld [vmem:[%s540_s1 + $0x28] sm:$0xff]  ;;  %s544_s22 = smov (!%p170_p3, %s397_s22), 3  ;;  %vm273_vm0 = vcmask 519168   ;;  %vm276_vm1 = vcmask 523264   ;;  %v297_v24 = vlaneseq }
   0xc   : > { %257 = vmatpush.bf16.msra.mxu0 %v448_v0  ;;  %v445_v3 = vld [vmem:[%s540_s1 + $0x20] sm:$0xff]  ;;  %v444_v4 = vld [vmem:[%s540_s1 + $0x18] sm:$0xff]  ;;  %v443_v5 = vld [vmem:[%s540_s1 + $0x10] sm:$0xff]  ;;  %s398_s29 = sshll.u32 %s544_s22, 2  ;;  %s546_s13 = smov (!%p181_p4, %s491_s13), 1 }
   0xd   : > { %v442_v6 = vld [vmem:[%s540_s1 + $0x8] sm:$0xff]  ;;  %v441_v7 = vld [vmem:[%s540_s1] sm:$0xff]  ;;  %s173_s7 = scalar_lea.vmem %s539_s0, %s398_s29  ;;  %s179_s10 = scalar_lea.vmem %s541_s2, %s398_s29  ;;  %v298_v29 = vshrl.u32 %v297_v24, 7 }
   0xe   : > { %v440_v8 = vld [vmem:[%s173_s7] sm:$0xff]  ;;  %s401_s11 = sshll.u32 %s546_s13, 3 }
   0xf   : > { %vm299_vm2 = vcmp.eq.s32.totalorder %v298_v29, 0  ;;  %vm301_vm3 = vcmp.eq.s32.totalorder %v298_v29, 1  ;;  %s184_s16 = scalar_lea.vmem %s542_s3, %s401_s11 }
  0x10   : > { %258 = vmatpush.bf16.msra.mxu0 %v447_v1 }
  0x14   : > { %259 = vmatpush.bf16.msra.mxu0 %v446_v2 }
  0x18   : > { %260 = vmatpush.bf16.msra.mxu0 %v445_v3 }
  0x1c   : > { %261 = vmatpush.bf16.msra.mxu0 %v444_v4 }
  0x20   : > { %262 = vmatpush.bf16.msra.mxu0 %v443_v5 }
  0x24   : > { %263 = vmatpush.bf16.msra.mxu0 %v442_v6 }
  0x28   : > { %264 = vmatpush.bf16.msra.mxu0 %v441_v7 }
  0x2b   : > { %265 = vmatmul.bf16.vlgmr.msra.gmra.mxu0 %v440_v8 }
  0xa8   : > { %v266_v9 = vpop.f32.mrf.mxu0 }
  0xa9   : > { %v271_v10 = vpack.c.bf16 %v266_v9, %v266_v9  ;;  %v286_v11 = vmul.f32 %v266_v9, %v266_v9  ;;  %v277_v13 = vsel %vm276_vm1, %v266_v9, 0.0 }
  0xab   : > { %274 = vst.msk [vmem:[%s179_s10] sm:$0xf] %vm273_vm0, %v271_v10  ;;  %v288_v18 = vsel %vm276_vm1, %v286_v11, 0.0 }
  0xb0   : > { %v268_v12 = vpop.f32.mrf.mxu0 }
  0xb1   : > { %v272_v14 = vpack.c.bf16 %v268_v12, %v268_v12  ;;  %v278_v15 = vsel %vm276_vm1, %v268_v12, 0.0  ;;  %v287_v16 = vmul.f32 %v268_v12, %v268_v12 }
  0xb2   : > { %v279_v17 = vadd.f32 %v278_v15, %v277_v13 }
  0xb3   : > { %275 = vst.msk [vmem:[%s179_s10 + $0x4] sm:$0xf] %vm273_vm0, %v272_v14  ;;  %v289_v19 = vsel %vm276_vm1, %v287_v16, 0.0 }
  0xb4   : > { %v280_v20 = vrot.slane %v279_v17, 4  ;;  %v290_v21 = vadd.f32 %v289_v19, %v288_v18 }
  0xb6   : > { %v281_v22 = vadd.f32 %v280_v20, %v279_v17  ;;  %v291_v23 = vrot.slane %v290_v21, 4 }
  0xb8   : > { %v282_v25 = vrot.slane %v281_v22, 2  ;;  %v292_v26 = vadd.f32 %v291_v23, %v290_v21 }
  0xba   : > { %v283_v27 = vadd.f32 %v282_v25, %v281_v22  ;;  %v293_v28 = vrot.slane %v292_v26, 2 }
  0xbc   : > { %v284_v30 = vrot.slane %v283_v27, 1  ;;  %v294_v31 = vadd.f32 %v293_v28, %v292_v26 }
  0xbe   : > { %v285_v32 = vadd.f32 %v284_v30, %v283_v27  ;;  %v295_v33 = vrot.slane %v294_v31, 1 }
  0xc0   : > { %v296_v34 = vadd.f32 %v295_v33, %v294_v31  ;;  %v300_v35 = vsel %vm299_vm2, %v285_v32, 0.0 }
  0xc2   : > { %v302_v36 = vsel %vm301_vm3, %v296_v34, 0.0 }
  0xc3   : > { %v303_v37 = vadd.f32 %v302_v36, %v300_v35 }
  0xc5   : > { %304 = vst.msk [vmem:[%s184_s16] sm:$0xff] %vm276_vm1, %v303_v37 }
  0xc6 PF: > { %s14_s12 = sadd.s32 1, %s463_s12  }
  0xc7   : > { %p11_p5 = scmp.ge.s32.totalorder %s14_s12, 4  }
  0xc9   :  { %13 = sbr.rel (!%p11_p5) target bundleno = 1 (0x1), region = 70 }

// kernel: resnet_generator_forward.34
= control target key start
LH: loop header
LB: loop body
LE: loop exit
PB: predicated region body
PF: predicated region fallthrough
CT: control target
= control target key end

     0   :  { %s306_s12 = smov 0   ;;  %s329_s0 = inlined_call_operand.vmem [shape: bf16[32,64], index: 0, kind: input, shape index: {}]   ;;  %s330_s1 = inlined_call_operand.vmem [shape: f32[1,64], index: 1, kind: input, shape index: {}]   ;;  %s331_s2 = inlined_call_operand.vmem [shape: f32[1,64], index: 2, kind: input, shape index: {}]   ;;  %s332_s3 = inlined_call_operand.vmem [shape: bf16[32,64], index: 3, kind: output, shape index: {}]  }
   0x1 LB: > { %s253_s13 = sadd.s32 4294967295, %s284_s12   ;;  %p257_p0 = scmp.ge.s32.totalorder %s284_s12, 1  ;;  %s284_s12 = sphi %s306_s12, %s13_s12  }
   0x2   : > { %p138_p1 = scmp.lt.s32.totalorder %s284_s12, 3 }
   0x4   : > { %p139_p2 = pnand %p257_p0, %p138_p1 }
   0x5   : > { %s258_s14 = sshll.u32 (!%p139_p2), %s253_s13, 1 }
   0x6   : > { %142 = sbr.rel (%p139_p2) target bundleno = 27 (0x1b), region = 32  ;;  %p163_p3 = scmp.lt.s32.totalorder (!%p139_p2), %s258_s14, 3 }
   0xb   : > { %s334_s14 = smov (!%p163_p3, %s258_s14), 3  ;;  %v276_v0 = vld [vmem:[%s330_s1] ss:$0 sm:$0xff]  ;;  %vm194_vm0 = vcmask 519168  }
   0xc   : > { %s259_s15 = sshll.u32 %s334_s14, 2  ;;  %v277_v4 = vld [vmem:[%s331_s2] ss:$0 sm:$0xff] }
   0xd   : > { %s166_s18 = scalar_lea.vmem %s329_s0, %s259_s15  ;;  %s172_s25 = scalar_lea.vmem %s332_s3, %s259_s15 }
   0xe   : > { %v265_v1 = vld [vmem:[%s166_s18] sm:$0xff]  }
   0xf   : > { %v266_v2 = vunpack.c.l.bf16 %v265_v1  ;;  %v267_v3 = vunpack.c.h.bf16 %v265_v1 }
  0x11   : > { %v182_v5 = vmul.f32 %v276_v0, %v266_v2  ;;  %v183_v6 = vmul.f32 %v276_v0, %v267_v3 }
  0x13   : > { %v188_v7 = vadd.f32 %v277_v4, %v182_v5  ;;  %v189_v8 = vadd.f32 %v277_v4, %v183_v6 }
  0x15   : > { %v190_v9 = vmax.f32 %v188_v7, 0.0  ;;  %v191_v10 = vmax.f32 %v189_v8, 0.0 }
  0x17   : > { %v192_v11 = vpack.c.bf16 %v190_v9, %v190_v9  ;;  %v193_v12 = vpack.c.bf16 %v191_v10, %v191_v10 }
  0x19   : > { %195 = vst.msk [vmem:[%s172_s25] sm:$0xf] %vm194_vm0, %v192_v11 }
  0x1a   : > { %196 = vst.msk [vmem:[%s172_s25 + $0x4] sm:$0xf] %vm194_vm0, %v193_v12 }
  0x1b PF: > { %s13_s12 = sadd.s32 1, %s284_s12  }
  0x1c   : > { %p10_p4 = scmp.ge.s32.totalorder %s13_s12, 4  }
  0x1e   :  { %12 = sbr.rel (!%p10_p4) target bundleno = 1 (0x1), region = 62 }

// kernel: tile.33
= control target key start
LH: loop header
LB: loop body
LE: loop exit
PB: predicated region body
PF: predicated region fallthrough
CT: control target
= control target key end

     0   :  { %s22_s0 = inlined_call_operand.vmem [shape: f32[8], index: 0, kind: input, shape index: {}]   ;;  %s23_s1 = inlined_call_operand.vmem [shape: f32[4,8], index: 1, kind: output, shape index: {}]  }
   0x1   :  { %v4_v0 = vld [vmem:[%s22_s0] ss:$0 sm:$0xff] }
   0x2   :  { %5 = vst [vmem:[%s23_s1] sm:$0xf] %v4_v0 }

// kernel: tile.38
= control target key start
LH: loop header
LB: loop body
LE: loop exit
PB: predicated region body
PF: predicated region fallthrough
CT: control target
= control target key end

     0   :  { %s37_s8 = smov 8   ;;  %s38_s9 = smov 16   ;;  %vm7_vm0 = vcmask 64512   ;;  %vm13_vm1 = vcmask 261312   ;;  %vm19_vm2 = vcmask 195712   ;;  %vm25_vm3 = vcmask 130112   ;;  %s55_s0 = inlined_call_operand.vmem [shape: f32[4,8], index: 0, kind: input, shape index: {}]   ;;  %s56_s1 = inlined_call_operand.vmem [shape: f32[1,32], index: 1, kind: output, shape index: {}]  }
   0x1   :  { %v4_v0 = vld [vmem:[%s55_s0] sm:$0xf]  ;;  %s36_s0 = smov 24  }
   0x2   :  { %5 = vst [vmem:[#allocation1] sm:$0xf] %v4_v0 }
   0x9   :  { %v10_v1 = vld [vmem:[#allocation1 + $0x3] sm:$0x1]   ;;  %v22_v2 = vld [vmem:[#allocation1 + $0x1] sm:$0x1]   ;;  %v16_v3 = vld [vmem:[#allocation1 + $0x2] sm:$0x1]  }
   0xa   :  { %11 = vrot.lane.b32.xlu0 %v10_v1, %s36_s0  ;;  %23 = vrot.lane.b32.xlu1 %v22_v2, %s37_s8  ;;  %v6_v4 = vld [vmem:[#allocation1] sm:$0x1]  }
   0xb   :  { %8 = vst.msk [vmem:[#allocation0] sm:$0x1] %vm7_vm0, %v6_v4  }
  0x12   :  { %17 = vrot.lane.b32.xlu0 %v16_v3, %s38_s9 }
  0x7c   :  { %v12_v5 = vpop.permute.xlu0 %11   ;;  %v24_v6 = vpop.permute.xlu1 %23  }
  0x7d   :  { %14 = vst.msk [vmem:[#allocation0] sm:$0x1] %vm13_vm1, %v12_v5  }
  0x84   :  { %v18_v7 = vpop.permute.xlu0 %17  }
  0x85   :  { %20 = vst.msk [vmem:[#allocation0] sm:$0x1] %vm19_vm2, %v18_v7  }
  0x86   :  { %26 = vst.msk [vmem:[#allocation0] sm:$0x1] %vm25_vm3, %v24_v6  }
  0x8d   :  { %v29_v8 = vld [vmem:[#allocation0] sm:$0x1] }
  0x8e   :  { %32 = vst [vmem:[%s56_s1] sm:$0x1] %v29_v8 }

// kernel: resnet_generator_forward.36
= control target key start
LH: loop header
LB: loop body
LE: loop exit
PB: predicated region body
PF: predicated region fallthrough
CT: control target
= control target key end

     0   :  { %s363_s12 = smov 0   ;;  %s401_s0 = inlined_call_operand.vmem [shape: bf16[128,32], index: 0, kind: input, shape index: {}]   ;;  %s402_s1 = inlined_call_operand.vmem [shape: f32[1,32], index: 1, kind: input, shape index: {}]   ;;  %s403_s2 = inlined_call_operand.vmem [shape: f32[1,32], index: 2, kind: input, shape index: {}]   ;;  %s404_s3 = inlined_call_operand.vmem [shape: bf16[128,32], index: 3, kind: output, shape index: {}]  }
   0x1 LB: > { %s295_s13 = sadd.s32 4294967295, %s341_s12   ;;  %p299_p0 = scmp.ge.s32.totalorder %s341_s12, 1  ;;  %s341_s12 = sphi %s363_s12, %s13_s12  }
   0x2   : > { %p138_p1 = scmp.lt.s32.totalorder %s341_s12, 3 }
   0x4   : > { %p139_p2 = pnand %p299_p0, %p138_p1 }
   0x5   : > { %s300_s14 = sshll.u32 (!%p139_p2), %s295_s13, 3 }
   0x6   : > { %142 = sbr.rel (%p139_p2) target bundleno = 33 (0x21), region = 32  ;;  %p163_p3 = scmp.lt.s32.totalorder (!%p139_p2), %s300_s14, 15 }
   0xb   : > { %s406_s14 = smov (!%p163_p3, %s300_s14), 15  ;;  %v333_v0 = vld [vmem:[%s402_s1] ss:$0 sm:$0xff]  ;;  %vm230_vm0 = vcmask 257024  }
   0xc   : > { %s301_s15 = sshll.u32 %s406_s14, 2  ;;  %v334_v5 = vld [vmem:[%s403_s2] ss:$0 sm:$0xff] }
   0xd   : > { %s166_s18 = scalar_lea.vmem %s401_s0, %s301_s15  ;;  %s172_s25 = scalar_lea.vmem %s404_s3, %s301_s15 }
   0xe   : > { %v307_v1 = vld [vmem:[%s166_s18] sm:$0xff]   ;;  %v322_v2 = vld [vmem:[%s166_s18 + $0x8] sm:$0xff]   ;;  %v323_v3 = vld [vmem:[%s166_s18 + $0x10] sm:$0xff]  }
   0xf   : > { %v308_v4 = vunpack.c.l.bf16 %v307_v1  ;;  %v309_v6 = vunpack.c.h.bf16 %v307_v1  ;;  %v312_v7 = vunpack.c.l.bf16 %v322_v2  ;;  %v313_v8 = vunpack.c.h.bf16 %v322_v2  ;;  %v324_v9 = vld [vmem:[%s166_s18 + $0x18] sm:$0xff]  }
  0x10   : > { %v316_v10 = vunpack.c.l.bf16 %v323_v3  ;;  %v317_v11 = vunpack.c.h.bf16 %v323_v3  ;;  %v320_v12 = vunpack.c.l.bf16 %v324_v9  ;;  %v321_v13 = vunpack.c.h.bf16 %v324_v9 }
  0x11   : > { %v194_v14 = vmul.f32 %v333_v0, %v308_v4  ;;  %v195_v15 = vmul.f32 %v333_v0, %v309_v6  ;;  %v196_v16 = vmul.f32 %v333_v0, %v312_v7  ;;  %v197_v17 = vmul.f32 %v333_v0, %v313_v8 }
  0x12   : > { %v198_v18 = vmul.f32 %v333_v0, %v316_v10  ;;  %v199_v19 = vmul.f32 %v333_v0, %v317_v11  ;;  %v200_v20 = vmul.f32 %v333_v0, %v320_v12  ;;  %v201_v21 = vmul.f32 %v333_v0, %v321_v13 }
  0x13   : > { %v206_v22 = vadd.f32 %v334_v5, %v194_v14  ;;  %v207_v23 = vadd.f32 %v334_v5, %v195_v15  ;;  %v208_v24 = vadd.f32 %v334_v5, %v196_v16  ;;  %v209_v25 = vadd.f32 %v334_v5, %v197_v17 }
  0x14   : > { %v210_v26 = vadd.f32 %v334_v5, %v198_v18  ;;  %v211_v27 = vadd.f32 %v334_v5, %v199_v19  ;;  %v212_v28 = vadd.f32 %v334_v5, %v200_v20  ;;  %v213_v29 = vadd.f32 %v334_v5, %v201_v21 }
  0x15   : > { %v214_v30 = vmax.f32 %v206_v22, 0.0  ;;  %v215_v31 = vmax.f32 %v207_v23, 0.0  ;;  %v216_v32 = vmax.f32 %v208_v24, 0.0  ;;  %v217_v33 = vmax.f32 %v209_v25, 0.0 }
  0x16   : > { %v218_v34 = vmax.f32 %v210_v26, 0.0  ;;  %v219_v35 = vmax.f32 %v211_v27, 0.0  ;;  %v220_v39 = vmax.f32 %v212_v28, 0.0  ;;  %v221_v41 = vmax.f32 %v213_v29, 0.0 }
  0x17   : > { %v222_v36 = vpack.c.bf16 %v214_v30, %v214_v30  ;;  %v223_v37 = vpack.c.bf16 %v215_v31, %v215_v31  ;;  %v224_v38 = vpack.c.bf16 %v216_v32, %v216_v32  ;;  %v225_v40 = vpack.c.bf16 %v217_v33, %v217_v33 }
  0x18   : > { %v226_v42 = vpack.c.bf16 %v218_v34, %v218_v34  ;;  %v227_v43 = vpack.c.bf16 %v219_v35, %v219_v35  ;;  %v228_v44 = vpack.c.bf16 %v220_v39, %v220_v39  ;;  %v229_v45 = vpack.c.bf16 %v221_v41, %v221_v41 }
  0x19   : > { %231 = vst.msk [vmem:[%s172_s25] sm:$0xf] %vm230_vm0, %v222_v36 }
  0x1a   : > { %232 = vst.msk [vmem:[%s172_s25 + $0x4] sm:$0xf] %vm230_vm0, %v223_v37 }
  0x1b   : > { %233 = vst.msk [vmem:[%s172_s25 + $0x8] sm:$0xf] %vm230_vm0, %v224_v38 }
  0x1c   : > { %234 = vst.msk [vmem:[%s172_s25 + $0xc] sm:$0xf] %vm230_vm0, %v225_v40 }
  0x1d   : > { %235 = vst.msk [vmem:[%s172_s25 + $0x10] sm:$0xf] %vm230_vm0, %v226_v42 }
  0x1e   : > { %236 = vst.msk [vmem:[%s172_s25 + $0x14] sm:$0xf] %vm230_vm0, %v227_v43 }
  0x1f   : > { %237 = vst.msk [vmem:[%s172_s25 + $0x18] sm:$0xf] %vm230_vm0, %v228_v44 }
  0x20   : > { %238 = vst.msk [vmem:[%s172_s25 + $0x1c] sm:$0xf] %vm230_vm0, %v229_v45 }
  0x21 PF: > { %s13_s12 = sadd.s32 1, %s341_s12  }
  0x22   : > { %p10_p4 = scmp.ge.s32.totalorder %s13_s12, 4  }
  0x24   :  { %12 = sbr.rel (!%p10_p4) target bundleno = 1 (0x1), region = 62 }

// kernel: resnet_generator_forward.35
= control target key start
LH: loop header
LB: loop body
LE: loop exit
PB: predicated region body
PF: predicated region fallthrough
CT: control target
= control target key end

     0   :  { %s555_s12 = smov 0   ;;  %s627_s0 = inlined_call_operand.vmem [shape: bf16[128,64], index: 0, kind: input, shape index: {}]   ;;  %s628_s1 = inlined_call_operand.vmem [shape: bf16[64,32], index: 1, kind: input, shape index: {}]   ;;  %s629_s2 = inlined_call_operand.vmem [shape: bf16[128,32], index: 2, kind: output, shape index: {0}]   ;;  %s630_s3 = inlined_call_operand.vmem [shape: f32[16,32], index: 3, kind: output, shape index: {1}]  }
   0x1 LB: > { %s561_s13 = sadd.s32 4294967295, %s533_s12   ;;  %p455_p0 = scmp.ge.s32.totalorder %s533_s12, 1  ;;  %s533_s12 = sphi %s555_s12, %s14_s12  }
   0x2   : > { %p141_p1 = scmp.lt.s32.totalorder %s533_s12, 3 }
   0x4   : > { %p142_p2 = pnand %p455_p0, %p141_p1 }
   0x5   : > { %s456_s16 = sshll.u32 (!%p142_p2), %s561_s13, 3  ;;  %p181_p4 = scmp.lt.s32.totalorder (!%p142_p2), %s561_s13, 1 }
   0x6   : > { %145 = sbr.rel (%p142_p2) target bundleno = 194 (0xc2), region = 28  ;;  %p170_p3 = scmp.lt.s32.totalorder (!%p142_p2), %s456_s16, 15 }
   0xb   : > { %v506_v0 = vld [vmem:[%s628_s1 + $0x18] sm:$0xff]  ;;  %v505_v1 = vld [vmem:[%s628_s1 + $0x10] sm:$0xff]  ;;  %s632_s16 = smov (!%p170_p3, %s456_s16), 15  ;;  %v504_v2 = vld [vmem:[%s628_s1 + $0x8] sm:$0xff]  ;;  %vm246_vm0 = vcmask 523264   ;;  %vm296_vm1 = vcmask 257024  }
   0xc   : > { %263 = vmatpush.bf16.msra.mxu0 %v506_v0  ;;  %507 = vmatpush.bf16.msra.mxu1 %v506_v0  ;;  %s457_s21 = sshll.u32 %s632_s16, 2  ;;  %v503_v3 = vld [vmem:[%s628_s1] sm:$0xff]  ;;  %vm305_vm2 = vcmask 261120   ;;  %s634_s13 = smov (!%p181_p4, %s561_s13), 1 }
   0xd   : > { %508 = vmatpush.bf16.msra.mxu2 %v506_v0  ;;  %509 = vmatpush.bf16.msra.mxu3 %v506_v0  ;;  %s173_s26 = scalar_lea.vmem %s627_s0, %s457_s21  ;;  %s584_s29 = scalar_lea.vmem %s629_s2, %s457_s21 }
   0xe   : > { %v499_v4 = vld [vmem:[%s173_s26] sm:$0xff]  ;;  %v500_v5 = vld [vmem:[%s173_s26 + $0x8] sm:$0xff]  ;;  %v501_v6 = vld [vmem:[%s173_s26 + $0x10] sm:$0xff]  ;;  %s460_s30 = sshll.u32 %s634_s13, 3 }
   0xf   : > { %v502_v7 = vld [vmem:[%s173_s26 + $0x18] sm:$0xff]  ;;  %s184_s6 = scalar_lea.vmem %s630_s3, %s460_s30 }
  0x10   : > { %264 = vmatpush.bf16.msra.mxu0 %v505_v1  ;;  %510 = vmatpush.bf16.msra.mxu1 %v505_v1 }
  0x11   : > { %511 = vmatpush.bf16.msra.mxu2 %v505_v1  ;;  %512 = vmatpush.bf16.msra.mxu3 %v505_v1 }
  0x14   : > { %265 = vmatpush.bf16.msra.mxu0 %v504_v2  ;;  %513 = vmatpush.bf16.msra.mxu1 %v504_v2 }
  0x15   : > { %514 = vmatpush.bf16.msra.mxu2 %v504_v2  ;;  %515 = vmatpush.bf16.msra.mxu3 %v504_v2  ;;  %v356_v2 = vlaneseq }
  0x18   : > { %266 = vmatpush.bf16.msra.mxu0 %v503_v3  ;;  %516 = vmatpush.bf16.msra.mxu1 %v503_v3 }
  0x19   : > { %517 = vmatpush.bf16.msra.mxu2 %v503_v3  ;;  %518 = vmatpush.bf16.msra.mxu3 %v503_v3 }
  0x1b   : > { %493 = vmatmul.msk.bf16.vlgmr.msra.gmra.mxu0 %vm246_vm0, %v499_v4  ;;  %494 = vmatmul.msk.bf16.vlgmr.msra.gmra.mxu1 %vm246_vm0, %v500_v5 }
  0x1c   : > { %495 = vmatmul.msk.bf16.vlgmr.msra.gmra.mxu2 %vm246_vm0, %v501_v6  ;;  %496 = vmatmul.msk.bf16.vlgmr.msra.gmra.mxu3 %vm246_vm0, %v502_v7  ;;  %v357_v7 = vshrl.u32 %v356_v2, 7 }
  0x1e   : > { %vm358_vm3 = vcmp.eq.s32.totalorder %v357_v7, 0  ;;  %vm360_vm4 = vcmp.eq.s32.totalorder %v357_v7, 1 }
  0x98   : > { %v268_v8 = vpop.f32.mrf.mxu0  ;;  %v273_v9 = vpop.f32.mrf.mxu1 }
  0x99   : > { %v288_v10 = vpack.c.bf16 %v268_v8, %v268_v8  ;;  %v290_v11 = vpack.c.bf16 %v273_v9, %v273_v9  ;;  %v327_v14 = vmul.f32 %v268_v8, %v268_v8  ;;  %v306_v19 = vsel %vm305_vm2, %v268_v8, 0.0 }
  0x9a   : > { %v329_v22 = vmul.f32 %v273_v9, %v273_v9  ;;  %v309_v26 = vsel %vm305_vm2, %v273_v9, 0.0 }
  0x9b   : > { %297 = vst.msk [vmem:[%s584_s29] sm:$0xf] %vm296_vm1, %v288_v10  ;;  %v335_v27 = vsel %vm305_vm2, %v327_v14, 0.0 }
  0x9c   : > { %299 = vst.msk [vmem:[%s584_s29 + $0x8] sm:$0xf] %vm296_vm1, %v290_v11  ;;  %v338_v33 = vsel %vm305_vm2, %v329_v22, 0.0 }
  0x9f   : > { %v278_v12 = vpop.f32.mrf.mxu2  ;;  %v283_v13 = vpop.f32.mrf.mxu3 }
  0xa0   : > { %v292_v15 = vpack.c.bf16 %v278_v12, %v278_v12  ;;  %v294_v16 = vpack.c.bf16 %v283_v13, %v283_v13  ;;  %v270_v17 = vpop.f32.mrf.mxu0  ;;  %v275_v18 = vpop.f32.mrf.mxu1  ;;  %v331_v34 = vmul.f32 %v278_v12, %v278_v12  ;;  %v313_v36 = vsel %vm305_vm2, %v278_v12, 0.0 }
  0xa1   : > { %v289_v20 = vpack.c.bf16 %v270_v17, %v270_v17  ;;  %v307_v21 = vsel %vm305_vm2, %v270_v17, 0.0  ;;  %v328_v24 = vmul.f32 %v270_v17, %v270_v17  ;;  %v291_v25 = vpack.c.bf16 %v275_v18, %v275_v18 }
  0xa2   : > { %301 = vst.msk [vmem:[%s584_s29 + $0x10] sm:$0xf] %vm296_vm1, %v292_v15  ;;  %v308_v23 = vadd.f32 %v307_v21, %v306_v19  ;;  %v330_v30 = vmul.f32 %v275_v18, %v275_v18  ;;  %v311_v32 = vsel %vm305_vm2, %v275_v18, 0.0  ;;  %v342_v47 = vsel %vm305_vm2, %v331_v34, 0.0 }
  0xa3   : > { %303 = vst.msk [vmem:[%s584_s29 + $0x18] sm:$0xf] %vm296_vm1, %v294_v16  ;;  %v336_v28 = vsel %vm305_vm2, %v328_v24, 0.0  ;;  %v333_v48 = vmul.f32 %v283_v13, %v283_v13  ;;  %v317_v50 = vsel %vm305_vm2, %v283_v13, 0.0 }
  0xa4   : > { %298 = vst.msk [vmem:[%s584_s29 + $0x4] sm:$0xf] %vm296_vm1, %v289_v20  ;;  %v310_v29 = vadd.f32 %v309_v26, %v308_v23  ;;  %v337_v31 = vadd.f32 %v336_v28, %v335_v27  ;;  %v340_v40 = vsel %vm305_vm2, %v330_v30, 0.0 }
  0xa5   : > { %300 = vst.msk [vmem:[%s584_s29 + $0xc] sm:$0xf] %vm296_vm1, %v291_v25  ;;  %v346_v57 = vsel %vm305_vm2, %v333_v48, 0.0 }
  0xa6   : > { %v312_v35 = vadd.f32 %v311_v32, %v310_v29  ;;  %v339_v37 = vadd.f32 %v338_v33, %v337_v31 }
  0xa7   : > { %v280_v38 = vpop.f32.mrf.mxu2  ;;  %v285_v39 = vpop.f32.mrf.mxu3 }
  0xa8   : > { %v293_v41 = vpack.c.bf16 %v280_v38, %v280_v38  ;;  %v314_v42 = vadd.f32 %v313_v36, %v312_v35  ;;  %v332_v43 = vmul.f32 %v280_v38, %v280_v38  ;;  %v341_v44 = vadd.f32 %v340_v40, %v339_v37 }
  0xa9   : > { %v315_v45 = vsel %vm305_vm2, %v280_v38, 0.0  ;;  %v295_v46 = vpack.c.bf16 %v285_v39, %v285_v39  ;;  %v334_v54 = vmul.f32 %v285_v39, %v285_v39  ;;  %v319_v56 = vsel %vm305_vm2, %v285_v39, 0.0 }
  0xaa   : > { %302 = vst.msk [vmem:[%s584_s29 + $0x14] sm:$0xf] %vm296_vm1, %v293_v41  ;;  %v316_v49 = vadd.f32 %v315_v45, %v314_v42  ;;  %v343_v51 = vadd.f32 %v342_v47, %v341_v44  ;;  %v344_v52 = vsel %vm305_vm2, %v332_v43, 0.0 }
  0xab   : > { %304 = vst.msk [vmem:[%s584_s29 + $0x1c] sm:$0xf] %vm296_vm1, %v295_v46  ;;  %v348_v61 = vsel %vm305_vm2, %v334_v54, 0.0 }
  0xac   : > { %v318_v53 = vadd.f32 %v317_v50, %v316_v49  ;;  %v345_v55 = vadd.f32 %v344_v52, %v343_v51 }
  0xae   : > { %v320_v58 = vadd.f32 %v319_v56, %v318_v53  ;;  %v347_v59 = vadd.f32 %v346_v57, %v345_v55 }
  0xb0   : > { %v321_v60 = vrot.slane %v320_v58, 4  ;;  %v349_v62 = vadd.f32 %v348_v61, %v347_v59 }
  0xb2   : > { %v322_v63 = vadd.f32 %v321_v60, %v320_v58  ;;  %v350_v0 = vrot.slane %v349_v62, 4 }
  0xb4   : > { %v323_v1 = vrot.slane %v322_v63, 2  ;;  %v351_v3 = vadd.f32 %v350_v0, %v349_v62 }
  0xb6   : > { %v324_v4 = vadd.f32 %v323_v1, %v322_v63  ;;  %v352_v5 = vrot.slane %v351_v3, 2 }
  0xb8   : > { %v325_v6 = vrot.slane %v324_v4, 1  ;;  %v353_v8 = vadd.f32 %v352_v5, %v351_v3 }
  0xba   : > { %v326_v9 = vadd.f32 %v325_v6, %v324_v4  ;;  %v354_v10 = vrot.slane %v353_v8, 1 }
  0xbc   : > { %v355_v11 = vadd.f32 %v354_v10, %v353_v8  ;;  %v359_v12 = vsel %vm358_vm3, %v326_v9, 0.0 }
  0xbe   : > { %v361_v13 = vsel %vm360_vm4, %v355_v11, 0.0 }
  0xbf   : > { %v362_v14 = vadd.f32 %v361_v13, %v359_v12 }
  0xc1   : > { %363 = vst.msk [vmem:[%s184_s6] sm:$0xff] %vm305_vm2, %v362_v14 }
  0xc2 PF: > { %s14_s12 = sadd.s32 1, %s533_s12  }
  0xc3   : > { %p11_p5 = scmp.ge.s32.totalorder %s14_s12, 4  }
  0xc5   :  { %13 = sbr.rel (!%p11_p5) target bundleno = 1 (0x1), region = 70 }

// kernel: resnet_generator_forward.37
= control target key start
LH: loop header
LB: loop body
LE: loop exit
PB: predicated region body
PF: predicated region fallthrough
CT: control target
= control target key end

     0   :  { %s1846_s12 = smov 0   ;;  %s2191_s0 = inlined_call_operand.vmem [shape: bf16[512,392], index: 0, kind: input, shape index: {}]   ;;  %s2192_s1 = inlined_call_operand.vmem [shape: bf16[392,3], index: 1, kind: input, shape index: {}]   ;;  %s2193_s2 = inlined_call_operand.vmem [shape: f32[1,3], index: 2, kind: input, shape index: {}]   ;;  %s2194_s3 = inlined_call_operand.vmem [shape: f32[512,3], index: 3, kind: output, shape index: {}]  }
   0x1 LB: > { %s1276_s13 = sadd.s32 4294967295, %s1824_s12   ;;  %p1280_p0 = scmp.ge.s32.totalorder %s1824_s12, 1  ;;  %s1824_s12 = sphi %s1846_s12, %s13_s12  }
   0x2   : > { %p139_p1 = scmp.lt.s32.totalorder %s1824_s12, 3 }
   0x4   : > { %p140_p2 = pnand %p1280_p0, %p139_p1 }
   0x5   : > { %s1281_s20 = sshll.u32 (!%p140_p2), %s1276_s13, 5 }
   0x6   : > { %143 = sbr.rel (%p140_p2) target bundleno = 437 (0x1b5), region = 32  ;;  %p165_p3 = scmp.lt.s32.totalorder (!%p140_p2), %s1281_s20, 63 }
   0xb   : > { %v1728_v0 = vld [vmem:[%s2192_s1 + $0x38] sm:$0xff]  ;;  %v1727_v3 = vld [vmem:[%s2192_s1 + $0x30] sm:$0xff]  ;;  %s2196_s20 = smov (!%p165_p3, %s1281_s20), 63  ;;  %v1726_v6 = vld [vmem:[%s2192_s1 + $0x28] sm:$0xff]  ;;  %vm795_vm0 = vcmask 1043456   ;;  %vm746_vm1 = vcmask 64512  }
   0xc   : > { %v1736_v1 = vld [vmem:[%s2192_s1 + $0x78] sm:$0xff]  ;;  %799 = vmatpush.bf16.msra.mxu0 %v1728_v0  ;;  %v1735_v4 = vld [vmem:[%s2192_s1 + $0x70] sm:$0xff]  ;;  %s1656_s27 = sshll.u32 %s2196_s20, 4  ;;  %v1734_v7 = vld [vmem:[%s2192_s1 + $0x68] sm:$0xff]  ;;  %s1285_s22 = sshll.u32 %s2196_s20, 3  ;;  %vm1187_vm2 = vcmask 23552  }
   0xd   : > { %v1744_v2 = vld [vmem:[%s2192_s1 + $0xb8] sm:$0xff]  ;;  %888 = vmatpush.bf16.msra.mxu1 %v1736_v1  ;;  %v1743_v5 = vld [vmem:[%s2192_s1 + $0xb0] sm:$0xff]  ;;  %v290_v8 = vld [vmem:[%s2192_s1 + $0xc0] sm:$0xf]  ;;  %s1887_s9 = scalar_lea.vmem %s2191_s0, %s1656_s27  ;;  %s2040_s25 = scalar_lea.vmem %s2194_s3, %s1285_s22 }
   0xe   : > { %977 = vmatpush.bf16.msra.mxu2 %v1744_v2  ;;  %v1742_v9 = vld [vmem:[%s2192_s1 + $0xa8] sm:$0xff]  ;;  %v696_v10 = vunpack.c.l.b16 %v290_v8  ;;  %v1298_v12 = vld [vmem:[%s1887_s9 + $0x18] sm:$0xf0]  ;;  %v1725_v14 = vld [vmem:[%s2192_s1 + $0x20] sm:$0xff] }
   0xf   : > { %v1658_v11 = vld [vmem:[%s1887_s9 + $0xc] sm:$0xf]  ;;  %v1733_v15 = vld [vmem:[%s2192_s1 + $0x60] sm:$0xff]  ;;  %v1724_v19 = vld [vmem:[%s2192_s1 + $0x18] sm:$0xff] }
  0x10   : > { %800 = vmatpush.bf16.msra.mxu0 %v1727_v3  ;;  %v721_v13 = vpack.c.b16 %v696_v10, %v696_v10  ;;  %v1741_v16 = vld [vmem:[%s2192_s1 + $0xa0] sm:$0xff]  ;;  %v1301_v18 = vor.u32 %v1658_v11, %v1298_v12  ;;  %v1732_v20 = vld [vmem:[%s2192_s1 + $0x58] sm:$0xff]  ;;  %v1723_v22 = vld [vmem:[%s2192_s1 + $0x10] sm:$0xff] }
  0x11   : > { %889 = vmatpush.bf16.msra.mxu1 %v1735_v4  ;;  %v1740_v21 = vld [vmem:[%s2192_s1 + $0x98] sm:$0xff]  ;;  %v1731_v23 = vld [vmem:[%s2192_s1 + $0x50] sm:$0xff]  ;;  %v1722_v25 = vld [vmem:[%s2192_s1 + $0x8] sm:$0xff] }
  0x12   : > { %978 = vmatpush.bf16.msra.mxu2 %v1743_v5  ;;  %v797_v17 = vsel %vm795_vm0, %v721_v13, 0  ;;  %v1739_v24 = vld [vmem:[%s2192_s1 + $0x90] sm:$0xff]  ;;  %v1730_v26 = vld [vmem:[%s2192_s1 + $0x48] sm:$0xff]  ;;  %v1314_v29 = vld [vmem:[%s1887_s9 + $0x38] sm:$0xf0] }
  0x13   : > { %1073 = vmatpush.bf16.msra.mxu3 %v797_v17  ;;  %v1738_v27 = vld [vmem:[%s2192_s1 + $0x88] sm:$0xff]  ;;  %v1721_v30 = vld [vmem:[%s2192_s1] sm:$0xff]  ;;  %v1659_v33 = vld [vmem:[%s1887_s9 + $0xc] sm:$0xf0] }
  0x14   : > { %801 = vmatpush.bf16.msra.mxu0 %v1726_v6  ;;  %v1662_v28 = vld [vmem:[%s1887_s9 + $0x2c] sm:$0xf]  ;;  %v1729_v31 = vld [vmem:[%s2192_s1 + $0x40] sm:$0xff]  ;;  %v1290_v35 = vld [vmem:[%s1887_s9 + $0x10] sm:$0xf0] }
  0x15   : > { %890 = vmatpush.bf16.msra.mxu1 %v1734_v7  ;;  %v1288_v32 = vld [vmem:[%s1887_s9] sm:$0xf]  ;;  %v1657_v34 = vld [vmem:[%s1887_s9 + $0x4] sm:$0xf]  ;;  %v1296_v37 = vld [vmem:[%s1887_s9 + $0x8] sm:$0xf]  ;;  %v1317_v39 = vor.u32 %v1662_v28, %v1314_v29 }
  0x16   : > { %979 = vmatpush.bf16.msra.mxu2 %v1742_v9  ;;  %1638 = vmatmul.msk.bf16.vlgmr.msra.gmra.mxu3 %vm746_vm1, %v1301_v18  ;;  %v1737_v36 = vld [vmem:[%s2192_s1 + $0x80] sm:$0xff]  ;;  %v1660_v38 = vld [vmem:[%s1887_s9 + $0x14] sm:$0xf0]  ;;  %v1289_v40 = vor.u32 %v1659_v33, %v1288_v32  ;;  %v1293_v41 = vor.u32 %v1657_v34, %v1290_v35  ;;  %v1666_v43 = vld [vmem:[%s1887_s9 + $0x4c] sm:$0xf] }
  0x17   : > { %v1297_v42 = vor.u32 %v1660_v38, %v1296_v37  ;;  %v1330_v44 = vld [vmem:[%s1887_s9 + $0x58] sm:$0xf0]  ;;  %v1304_v45 = vld [vmem:[%s1887_s9 + $0x20] sm:$0xf]  ;;  %v1663_v46 = vld [vmem:[%s1887_s9 + $0x2c] sm:$0xf0] }
  0x18   : > { %802 = vmatpush.bf16.msra.mxu0 %v1725_v14  ;;  %v1661_v47 = vld [vmem:[%s1887_s9 + $0x24] sm:$0xf]  ;;  %v1306_v48 = vld [vmem:[%s1887_s9 + $0x30] sm:$0xf0]  ;;  %v1312_v49 = vld [vmem:[%s1887_s9 + $0x28] sm:$0xf]  ;;  %v1333_v51 = vor.u32 %v1666_v43, %v1330_v44  ;;  %v1305_v52 = vor.u32 %v1663_v46, %v1304_v45 }
  0x19   : > { %891 = vmatpush.bf16.msra.mxu1 %v1733_v15  ;;  %v1664_v50 = vld [vmem:[%s1887_s9 + $0x34] sm:$0xf0]  ;;  %v1309_v53 = vor.u32 %v1661_v47, %v1306_v48  ;;  %v1670_v55 = vld [vmem:[%s1887_s9 + $0x6c] sm:$0xf]  ;;  %v1346_v56 = vld [vmem:[%s1887_s9 + $0x78] sm:$0xf0] }
  0x1a   : > { %980 = vmatpush.bf16.msra.mxu2 %v1741_v16  ;;  %v1313_v54 = vor.u32 %v1664_v50, %v1312_v49  ;;  %v1320_v57 = vld [vmem:[%s1887_s9 + $0x40] sm:$0xf]  ;;  %v1667_v58 = vld [vmem:[%s1887_s9 + $0x4c] sm:$0xf0]  ;;  %v1665_v59 = vld [vmem:[%s1887_s9 + $0x44] sm:$0xf]  ;;  %v1349_v63 = vor.u32 %v1670_v55, %v1346_v56 }
  0x1b   : > { %v1322_v60 = vld [vmem:[%s1887_s9 + $0x50] sm:$0xf0]  ;;  %v1328_v61 = vld [vmem:[%s1887_s9 + $0x48] sm:$0xf]  ;;  %v1668_v62 = vld [vmem:[%s1887_s9 + $0x54] sm:$0xf0]  ;;  %v1321_v0 = vor.u32 %v1667_v58, %v1320_v57 }
  0x1c   : > { %803 = vmatpush.bf16.msra.mxu0 %v1724_v19  ;;  %v1325_v1 = vor.u32 %v1665_v59, %v1322_v60  ;;  %v1329_v2 = vor.u32 %v1668_v62, %v1328_v61  ;;  %v1674_v3 = vld [vmem:[%s1887_s9 + $0x8c] sm:$0xf]  ;;  %v1362_v4 = vld [vmem:[%s1887_s9 + $0x98] sm:$0xf0]  ;;  %v1336_v5 = vld [vmem:[%s1887_s9 + $0x60] sm:$0xf] }
  0x1d   : > { %892 = vmatpush.bf16.msra.mxu1 %v1732_v20  ;;  %v1671_v6 = vld [vmem:[%s1887_s9 + $0x6c] sm:$0xf0]  ;;  %v1669_v7 = vld [vmem:[%s1887_s9 + $0x64] sm:$0xf]  ;;  %v1338_v8 = vld [vmem:[%s1887_s9 + $0x70] sm:$0xf0]  ;;  %v1365_v11 = vor.u32 %v1674_v3, %v1362_v4 }
  0x1e   : > { %981 = vmatpush.bf16.msra.mxu2 %v1740_v21  ;;  %v1344_v9 = vld [vmem:[%s1887_s9 + $0x68] sm:$0xf]  ;;  %v1672_v10 = vld [vmem:[%s1887_s9 + $0x74] sm:$0xf0]  ;;  %v1337_v12 = vor.u32 %v1671_v6, %v1336_v5  ;;  %v1341_v13 = vor.u32 %v1669_v7, %v1338_v8  ;;  %v1678_v15 = vld [vmem:[%s1887_s9 + $0xac] sm:$0xf] }
  0x1f   : > { %v1345_v14 = vor.u32 %v1672_v10, %v1344_v9  ;;  %v1378_v16 = vld [vmem:[%s1887_s9 + $0xb8] sm:$0xf0]  ;;  %v1352_v17 = vld [vmem:[%s1887_s9 + $0x80] sm:$0xf]  ;;  %v1675_v18 = vld [vmem:[%s1887_s9 + $0x8c] sm:$0xf0] }
  0x20   : > { %804 = vmatpush.bf16.msra.mxu0 %v1723_v22  ;;  %v1673_v19 = vld [vmem:[%s1887_s9 + $0x84] sm:$0xf]  ;;  %v1354_v20 = vld [vmem:[%s1887_s9 + $0x90] sm:$0xf0]  ;;  %v1360_v21 = vld [vmem:[%s1887_s9 + $0x88] sm:$0xf] }
  0x21   : > { %893 = vmatpush.bf16.msra.mxu1 %v1731_v23  ;;  %v1676_v22 = vld [vmem:[%s1887_s9 + $0x94] sm:$0xf0]  ;;  %v1381_v23 = vor.u32 %v1678_v15, %v1378_v16  ;;  %v1394_v28 = vld [vmem:[%s1887_s9 + $0xd8] sm:$0xf0]  ;;  %v1368_v29 = vld [vmem:[%s1887_s9 + $0xa0] sm:$0xf] }
  0x22   : > { %982 = vmatpush.bf16.msra.mxu2 %v1739_v24  ;;  %v1353_v24 = vor.u32 %v1675_v18, %v1352_v17  ;;  %v1370_v32 = vld [vmem:[%s1887_s9 + $0xb0] sm:$0xf0]  ;;  %v1376_v33 = vld [vmem:[%s1887_s9 + $0xa8] sm:$0xf]  ;;  %v1680_v34 = vld [vmem:[%s1887_s9 + $0xb4] sm:$0xf0] }
  0x23   : > { %v1377_v38 = vor.u32 %v1680_v34, %v1376_v33  ;;  %v1681_v43 = vld [vmem:[%s1887_s9 + $0xc4] sm:$0xf]  ;;  %v1386_v44 = vld [vmem:[%s1887_s9 + $0xd0] sm:$0xf0]  ;;  %v1392_v45 = vld [vmem:[%s1887_s9 + $0xc8] sm:$0xf] }
  0x24   : > { %805 = vmatpush.bf16.msra.mxu0 %v1722_v25  ;;  %v1357_v25 = vor.u32 %v1673_v19, %v1354_v20  ;;  %v1684_v46 = vld [vmem:[%s1887_s9 + $0xd4] sm:$0xf0]  ;;  %v1389_v49 = vor.u32 %v1681_v43, %v1386_v44  ;;  %v1685_v55 = vld [vmem:[%s1887_s9 + $0xe4] sm:$0xf]  ;;  %v1402_v56 = vld [vmem:[%s1887_s9 + $0xf0] sm:$0xf0] }
  0x25   : > { %894 = vmatpush.bf16.msra.mxu1 %v1730_v26  ;;  %v1361_v26 = vor.u32 %v1676_v22, %v1360_v21  ;;  %v1393_v50 = vor.u32 %v1684_v46, %v1392_v45  ;;  %v1408_v57 = vld [vmem:[%s1887_s9 + $0xe8] sm:$0xf]  ;;  %v1688_v58 = vld [vmem:[%s1887_s9 + $0xf4] sm:$0xf0]  ;;  %v1405_v61 = vor.u32 %v1685_v55, %v1402_v56  ;;  %v1691_v3 = vld [vmem:[%s1887_s9 + $0x10c] sm:$0xf0] }
  0x26   : > { %983 = vmatpush.bf16.msra.mxu2 %v1738_v27  ;;  %1639 = vmatmul.msk.bf16.gmra.mxu3 %vm746_vm1, %v1317_v39  ;;  %v1682_v27 = vld [vmem:[%s1887_s9 + $0xcc] sm:$0xf]  ;;  %v1409_v62 = vor.u32 %v1688_v58, %v1408_v57  ;;  %v1689_v4 = vld [vmem:[%s1887_s9 + $0x104] sm:$0xf]  ;;  %v1418_v5 = vld [vmem:[%s1887_s9 + $0x110] sm:$0xf0] }
  0x27   : > { %v1397_v35 = vor.u32 %v1682_v27, %v1394_v28  ;;  %v1686_v39 = vld [vmem:[%s1887_s9 + $0xec] sm:$0xf]  ;;  %v2021_v7 = vld [vmem:[%s2193_s2] ss:$0 sm:$0xff]  ;;  %v1424_v8 = vld [vmem:[%s1887_s9 + $0x108] sm:$0xf] }
  0x28   : > { %806 = vmatpush.bf16.msra.mxu0 %v1721_v30  ;;  %v1679_v30 = vld [vmem:[%s1887_s9 + $0xac] sm:$0xf0]  ;;  %v1692_v9 = vld [vmem:[%s1887_s9 + $0x114] sm:$0xf0]  ;;  %v1432_v27 = vld [vmem:[%s1887_s9 + $0x120] sm:$0xf] }
  0x29   : > { %895 = vmatpush.bf16.msra.mxu1 %v1729_v31  ;;  %v1677_v31 = vld [vmem:[%s1887_s9 + $0xa4] sm:$0xf]  ;;  %v1425_v15 = vor.u32 %v1692_v9, %v1424_v8  ;;  %v1695_v28 = vld [vmem:[%s1887_s9 + $0x12c] sm:$0xf0]  ;;  %v1696_v33 = vld [vmem:[%s1887_s9 + $0x134] sm:$0xf0] }
  0x2a   : > { %984 = vmatpush.bf16.msra.mxu2 %v1737_v36  ;;  %v1369_v36 = vor.u32 %v1679_v30, %v1368_v29  ;;  %v1373_v37 = vor.u32 %v1677_v31, %v1370_v32  ;;  %v1693_v29 = vld [vmem:[%s1887_s9 + $0x124] sm:$0xf]  ;;  %v1434_v30 = vld [vmem:[%s1887_s9 + $0x130] sm:$0xf0]  ;;  %v1440_v32 = vld [vmem:[%s1887_s9 + $0x128] sm:$0xf] }
  0x2b   : > { %807 = vmatmul.bf16.vlgmr.msra.gmra.mxu0 %v1289_v40  ;;  %v1410_v40 = vld [vmem:[%s1887_s9 + $0xf8] sm:$0xf0]  ;;  %v1702_v55 = vld [vmem:[%s1887_s9 + $0x16c] sm:$0xf]  ;;  %v1448_v57 = vld [vmem:[%s1887_s9 + $0x140] sm:$0xf] }
  0x2c   : > { %896 = vmatmul.bf16.vlgmr.msra.gmra.mxu1 %v1293_v41  ;;  %v1384_v41 = vld [vmem:[%s1887_s9 + $0xc0] sm:$0xf]  ;;  %v1413_v47 = vor.u32 %v1686_v39, %v1410_v40  ;;  %v1474_v56 = vld [vmem:[%s1887_s9 + $0x178] sm:$0xf0]  ;;  %v1699_v58 = vld [vmem:[%s1887_s9 + $0x14c] sm:$0xf0] }
  0x2d   : > { %985 = vmatmul.bf16.vlgmr.msra.gmra.mxu2 %v1297_v42  ;;  %v1683_v42 = vld [vmem:[%s1887_s9 + $0xcc] sm:$0xf0] }
  0x2e   : > { %v1385_v48 = vor.u32 %v1683_v42, %v1384_v41  ;;  %v1441_v42 = vor.u32 %v1696_v33, %v1440_v32 }
  0x36   : > { %1640 = vmatmul.msk.bf16.gmra.mxu3 %vm746_vm1, %v1333_v51  ;;  %v1690_v51 = vld [vmem:[%s1887_s9 + $0x10c] sm:$0xf] }
  0x3b   : > { %812 = vmatmul.bf16.gmra.mxu0 %v1305_v52  ;;  %v1426_v52 = vld [vmem:[%s1887_s9 + $0x118] sm:$0xf0] }
  0x3c   : > { %901 = vmatmul.bf16.gmra.mxu1 %v1309_v53  ;;  %v1400_v53 = vld [vmem:[%s1887_s9 + $0xe0] sm:$0xf]  ;;  %v1429_v59 = vor.u32 %v1690_v51, %v1426_v52 }
  0x3d   : > { %990 = vmatmul.bf16.gmra.mxu2 %v1313_v54  ;;  %v1687_v54 = vld [vmem:[%s1887_s9 + $0xec] sm:$0xf0] }
  0x3e   : > { %v1401_v60 = vor.u32 %v1687_v54, %v1400_v53 }
  0x46   : > { %1641 = vmatmul.msk.bf16.gmra.mxu3 %vm746_vm1, %v1349_v63 }
  0x4b   : > { %817 = vmatmul.bf16.gmra.mxu0 %v1321_v0  ;;  %v1694_v0 = vld [vmem:[%s1887_s9 + $0x12c] sm:$0xf] }
  0x4c   : > { %906 = vmatmul.bf16.gmra.mxu1 %v1325_v1  ;;  %v1442_v1 = vld [vmem:[%s1887_s9 + $0x138] sm:$0xf0] }
  0x4d   : > { %995 = vmatmul.bf16.gmra.mxu2 %v1329_v2  ;;  %v1416_v2 = vld [vmem:[%s1887_s9 + $0x100] sm:$0xf]  ;;  %v1445_v10 = vor.u32 %v1694_v0, %v1442_v1  ;;  %v1477_v0 = vor.u32 %v1702_v55, %v1474_v56  ;;  %v1707_v55 = vld [vmem:[%s1887_s9 + $0x18c] sm:$0xf0]  ;;  %v1705_v56 = vld [vmem:[%s1887_s9 + $0x184] sm:$0xf] }
  0x56   : > { %1642 = vmatmul.msk.bf16.gmra.mxu3 %vm746_vm1, %v1365_v11  ;;  %v1417_v11 = vor.u32 %v1691_v3, %v1416_v2  ;;  %v1449_v3 = vor.u32 %v1699_v58, %v1448_v57  ;;  %v1482_v57 = vld [vmem:[%s1887_s9 + $0x190] sm:$0xf0] }
  0x5b   : > { %822 = vmatmul.bf16.gmra.mxu0 %v1337_v12  ;;  %v1421_v12 = vor.u32 %v1689_v4, %v1418_v5 }
  0x5c   : > { %911 = vmatmul.bf16.gmra.mxu1 %v1341_v13 }
  0x5d   : > { %1000 = vmatmul.bf16.gmra.mxu2 %v1345_v14 }
  0x66   : > { %1643 = vmatmul.msk.bf16.gmra.mxu3 %vm746_vm1, %v1381_v23 }
  0x6b   : > { %827 = vmatmul.bf16.gmra.mxu0 %v1353_v24 }
  0x6c   : > { %916 = vmatmul.bf16.gmra.mxu1 %v1357_v25  ;;  %v1698_v25 = vld [vmem:[%s1887_s9 + $0x14c] sm:$0xf] }
  0x6d   : > { %1005 = vmatmul.bf16.gmra.mxu2 %v1361_v26  ;;  %v1458_v26 = vld [vmem:[%s1887_s9 + $0x158] sm:$0xf0] }
  0x6e   : > { %v1461_v34 = vor.u32 %v1698_v25, %v1458_v26  ;;  %v1703_v25 = vld [vmem:[%s1887_s9 + $0x16c] sm:$0xf0]  ;;  %v1701_v26 = vld [vmem:[%s1887_s9 + $0x164] sm:$0xf] }
  0x76   : > { %1644 = vmatmul.msk.bf16.gmra.mxu3 %vm746_vm1, %v1397_v35 }
  0x7b   : > { %832 = vmatmul.bf16.gmra.mxu0 %v1369_v36 }
  0x7c   : > { %921 = vmatmul.bf16.gmra.mxu1 %v1373_v37  ;;  %v1433_v37 = vor.u32 %v1695_v28, %v1432_v27  ;;  %v1466_v27 = vld [vmem:[%s1887_s9 + $0x170] sm:$0xf0] }
  0x7d   : > { %1010 = vmatmul.bf16.gmra.mxu2 %v1377_v38  ;;  %v1437_v38 = vor.u32 %v1693_v29, %v1434_v30  ;;  %v1472_v29 = vld [vmem:[%s1887_s9 + $0x168] sm:$0xf]  ;;  %v1704_v30 = vld [vmem:[%s1887_s9 + $0x174] sm:$0xf0] }
  0x86   : > { %1645 = vmatmul.msk.bf16.gmra.mxu3 %vm746_vm1, %v1413_v47 }
  0x8b   : > { %837 = vmatmul.bf16.gmra.mxu0 %v1385_v48 }
  0x8c   : > { %926 = vmatmul.bf16.gmra.mxu1 %v1389_v49 }
  0x8d   : > { %1015 = vmatmul.bf16.gmra.mxu2 %v1393_v50 }
  0x96   : > { %1646 = vmatmul.msk.bf16.gmra.mxu3 %vm746_vm1, %v1429_v59  ;;  %v1697_v59 = vld [vmem:[%s1887_s9 + $0x144] sm:$0xf] }
  0x99   : > { %v1075_v63 = vpop.f32.mrf.mxu3 }
  0x9b   : > { %842 = vmatmul.bf16.gmra.mxu0 %v1401_v60  ;;  %v1450_v60 = vld [vmem:[%s1887_s9 + $0x150] sm:$0xf0] }
  0x9c   : > { %931 = vmatmul.bf16.gmra.mxu1 %v1405_v61  ;;  %v1453_v4 = vor.u32 %v1697_v59, %v1450_v60  ;;  %v1488_v59 = vld [vmem:[%s1887_s9 + $0x188] sm:$0xf]  ;;  %v1708_v60 = vld [vmem:[%s1887_s9 + $0x194] sm:$0xf0] }
  0x9d   : > { %1020 = vmatmul.bf16.gmra.mxu2 %v1409_v62  ;;  %v1456_v62 = vld [vmem:[%s1887_s9 + $0x148] sm:$0xf] }
  0xa1   : > { %v1077_v6 = vpop.f32.mrf.mxu3 }
  0xa6   : > { %1647 = vmatmul.msk.bf16.gmra.mxu3 %vm746_vm1, %v1445_v10 }
  0xa8   : > { %v808_v13 = vpop.f32.mrf.mxu0 }
  0xa9   : > { %v897_v14 = vpop.f32.mrf.mxu1  ;;  %v809_v16 = vadd.f32 %v2021_v7, %v808_v13  ;;  %v1080_v18 = vpop.f32.mrf.mxu3 }
  0xab   : > { %847 = vmatmul.bf16.gmra.mxu0 %v1417_v11  ;;  %v898_v17 = vadd.f32 %v897_v14, %v809_v16 }
  0xac   : > { %936 = vmatmul.bf16.gmra.mxu1 %v1421_v12 }
  0xad   : > { %1025 = vmatmul.bf16.gmra.mxu2 %v1425_v15 }
  0xb0   : > { %v986_v19 = vpop.f32.mrf.mxu2  ;;  %v810_v21 = vpop.f32.mrf.mxu0 }
  0xb1   : > { %v987_v20 = vadd.f32 %v986_v19, %v898_v17  ;;  %v899_v22 = vpop.f32.mrf.mxu1  ;;  %v811_v24 = vadd.f32 %v2021_v7, %v810_v21  ;;  %v1082_v31 = vpop.f32.mrf.mxu3 }
  0xb3   : > { %v1076_v23 = vadd.f32 %v1075_v63, %v987_v20  ;;  %v900_v35 = vadd.f32 %v899_v22, %v811_v24  ;;  %v1700_v63 = vld [vmem:[%s1887_s9 + $0x154] sm:$0xf0]  ;;  %v1706_v22 = vld [vmem:[%s1887_s9 + $0x18c] sm:$0xf]  ;;  %v1464_v24 = vld [vmem:[%s1887_s9 + $0x160] sm:$0xf] }
  0xb4   : > { %v1457_v9 = vor.u32 %v1700_v63, %v1456_v62 }
  0xb5   : > { %1754 = vtanh.f32 %v1076_v23  ;;  %v1490_v23 = vld [vmem:[%s1887_s9 + $0x198] sm:$0xf0] }
  0xb6   : > { %1648 = vmatmul.msk.bf16.gmra.mxu3 %vm746_vm1, %v1461_v34  ;;  %v1465_v34 = vor.u32 %v1703_v25, %v1464_v24  ;;  %v1498_v24 = vld [vmem:[%s1887_s9 + $0x1b0] sm:$0xf0] }
  0xb8   : > { %v988_v36 = vpop.f32.mrf.mxu2  ;;  %v813_v40 = vpop.f32.mrf.mxu0 }
  0xb9   : > { %v989_v39 = vadd.f32 %v988_v36, %v900_v35  ;;  %v902_v41 = vpop.f32.mrf.mxu1  ;;  %v814_v43 = vadd.f32 %v2021_v7, %v813_v40  ;;  %v1085_v47 = vpop.f32.mrf.mxu3  ;;  %v1469_v35 = vor.u32 %v1701_v26, %v1466_v27  ;;  %v1504_v26 = vld [vmem:[%s1887_s9 + $0x1a8] sm:$0xf]  ;;  %v1712_v27 = vld [vmem:[%s1887_s9 + $0x1b4] sm:$0xf0] }
  0xbb   : > { %v1755_v44 = vpop.eup %1754  ;;  %v1078_v45 = vadd.f32 %v1077_v6, %v989_v39  ;;  %852 = vmatmul.bf16.gmra.mxu0 %v1433_v37  ;;  %v903_v46 = vadd.f32 %v902_v41, %v814_v43  ;;  %v1473_v39 = vor.u32 %v1704_v30, %v1472_v29 }
  0xbc   : > { %1188 = vst.msk [vmem:[%s2040_s25] sm:$0xff] %vm1187_vm2, %v1755_v44  ;;  %941 = vmatmul.bf16.gmra.mxu1 %v1437_v38 }
  0xbd   : > { %1756 = vtanh.f32 %v1078_v45  ;;  %1030 = vmatmul.bf16.gmra.mxu2 %v1441_v42 }
  0xc0   : > { %v991_v48 = vpop.f32.mrf.mxu2  ;;  %v815_v50 = vpop.f32.mrf.mxu0 }
  0xc1   : > { %v992_v49 = vadd.f32 %v991_v48, %v903_v46  ;;  %v904_v51 = vpop.f32.mrf.mxu1  ;;  %v816_v54 = vadd.f32 %v2021_v7, %v815_v50  ;;  %v1087_v61 = vpop.f32.mrf.mxu3 }
  0xc3   : > { %v1757_v52 = vpop.eup %1756  ;;  %v1081_v53 = vadd.f32 %v1080_v18, %v992_v49  ;;  %v905_v1 = vadd.f32 %v904_v51, %v816_v54  ;;  %v1480_v54 = vld [vmem:[%s1887_s9 + $0x180] sm:$0xf] }
  0xc4   : > { %1189 = vst.msk [vmem:[%s2040_s25 + $0x8] sm:$0xff] %vm1187_vm2, %v1757_v52  ;;  %v1710_v52 = vld [vmem:[%s1887_s9 + $0x1ac] sm:$0xf] }
  0xc5   : > { %1758 = vtanh.f32 %v1081_v53  ;;  %v1506_v53 = vld [vmem:[%s1887_s9 + $0x1b8] sm:$0xf0] }
  0xc6   : > { %1649 = vmatmul.msk.bf16.gmra.mxu3 %vm746_vm1, %v1477_v0  ;;  %v1481_v0 = vor.u32 %v1707_v55, %v1480_v54  ;;  %v1514_v54 = vld [vmem:[%s1887_s9 + $0x1d0] sm:$0xf0] }
  0xc8   : > { %v993_v2 = vpop.f32.mrf.mxu2  ;;  %v818_v6 = vpop.f32.mrf.mxu0 }
  0xc9   : > { %v994_v5 = vadd.f32 %v993_v2, %v905_v1  ;;  %v907_v8 = vpop.f32.mrf.mxu1  ;;  %v819_v10 = vadd.f32 %v2021_v7, %v818_v6  ;;  %v1090_v14 = vpop.f32.mrf.mxu3  ;;  %v1485_v1 = vor.u32 %v1705_v56, %v1482_v57  ;;  %v1520_v56 = vld [vmem:[%s1887_s9 + $0x1c8] sm:$0xf]  ;;  %v1716_v57 = vld [vmem:[%s1887_s9 + $0x1d4] sm:$0xf0] }
  0xcb   : > { %v1759_v11 = vpop.eup %1758  ;;  %v1083_v12 = vadd.f32 %v1082_v31, %v994_v5  ;;  %857 = vmatmul.bf16.gmra.mxu0 %v1449_v3  ;;  %v908_v13 = vadd.f32 %v907_v8, %v819_v10  ;;  %v1493_v31 = vor.u32 %v1706_v22, %v1490_v23  ;;  %v1489_v5 = vor.u32 %v1708_v60, %v1488_v59  ;;  %v1711_v22 = vld [vmem:[%s1887_s9 + $0x1ac] sm:$0xf0]  ;;  %v1709_v23 = vld [vmem:[%s1887_s9 + $0x1a4] sm:$0xf] }
  0xcc   : > { %1190 = vst.msk [vmem:[%s2040_s25 + $0x10] sm:$0xff] %vm1187_vm2, %v1759_v11  ;;  %946 = vmatmul.bf16.gmra.mxu1 %v1453_v4 }
  0xcd   : > { %1760 = vtanh.f32 %v1083_v12  ;;  %1035 = vmatmul.bf16.gmra.mxu2 %v1457_v9 }
  0xd0   : > { %v996_v15 = vpop.f32.mrf.mxu2  ;;  %v820_v17 = vpop.f32.mrf.mxu0 }
  0xd1   : > { %v997_v16 = vadd.f32 %v996_v15, %v908_v13  ;;  %v909_v18 = vpop.f32.mrf.mxu1  ;;  %v821_v21 = vadd.f32 %v2021_v7, %v820_v17  ;;  %v1092_v28 = vpop.f32.mrf.mxu3 }
  0xd3   : > { %v1761_v19 = vpop.eup %1760  ;;  %v1086_v20 = vadd.f32 %v1085_v47, %v997_v16  ;;  %v910_v32 = vadd.f32 %v909_v18, %v821_v21  ;;  %v1496_v21 = vld [vmem:[%s1887_s9 + $0x1a0] sm:$0xf] }
  0xd4   : > { %1191 = vst.msk [vmem:[%s2040_s25 + $0x18] sm:$0xff] %vm1187_vm2, %v1761_v19  ;;  %v1714_v19 = vld [vmem:[%s1887_s9 + $0x1cc] sm:$0xf] }
  0xd5   : > { %1762 = vtanh.f32 %v1086_v20  ;;  %v1522_v20 = vld [vmem:[%s1887_s9 + $0x1d8] sm:$0xf0] }
  0xd6   : > { %1650 = vmatmul.msk.bf16.gmra.mxu3 %vm746_vm1, %v1493_v31  ;;  %v1497_v31 = vor.u32 %v1711_v22, %v1496_v21  ;;  %v1536_v21 = vld [vmem:[%s1887_s9 + $0x1e8] sm:$0xf]  ;;  %v1720_v22 = vld [vmem:[%s1887_s9 + $0x1f4] sm:$0xf0] }
  0xd8   : > { %v998_v33 = vpop.f32.mrf.mxu2  ;;  %v823_v37 = vpop.f32.mrf.mxu0 }
  0xd9   : > { %v999_v36 = vadd.f32 %v998_v33, %v910_v32  ;;  %v912_v38 = vpop.f32.mrf.mxu1  ;;  %v824_v40 = vadd.f32 %v2021_v7, %v823_v37  ;;  %v1095_v44 = vpop.f32.mrf.mxu3  ;;  %v1501_v32 = vor.u32 %v1709_v23, %v1498_v24 }
  0xdb   : > { %v1763_v41 = vpop.eup %1762  ;;  %v1088_v42 = vadd.f32 %v1087_v61, %v999_v36  ;;  %862 = vmatmul.bf16.gmra.mxu0 %v1465_v34  ;;  %v913_v43 = vadd.f32 %v912_v38, %v824_v40  ;;  %v1509_v61 = vor.u32 %v1710_v52, %v1506_v53  ;;  %v1505_v36 = vor.u32 %v1712_v27, %v1504_v26  ;;  %v1715_v52 = vld [vmem:[%s1887_s9 + $0x1cc] sm:$0xf0]  ;;  %v1713_v53 = vld [vmem:[%s1887_s9 + $0x1c4] sm:$0xf] }
  0xdc   : > { %1192 = vst.msk [vmem:[%s2040_s25 + $0x20] sm:$0xff] %vm1187_vm2, %v1763_v41  ;;  %951 = vmatmul.bf16.gmra.mxu1 %v1469_v35 }
  0xdd   : > { %1764 = vtanh.f32 %v1088_v42  ;;  %1040 = vmatmul.bf16.gmra.mxu2 %v1473_v39 }
  0xe0   : > { %v1001_v45 = vpop.f32.mrf.mxu2  ;;  %v825_v47 = vpop.f32.mrf.mxu0 }
  0xe1   : > { %v1002_v46 = vadd.f32 %v1001_v45, %v913_v43  ;;  %v914_v48 = vpop.f32.mrf.mxu1  ;;  %v826_v51 = vadd.f32 %v2021_v7, %v825_v47  ;;  %v1097_v58 = vpop.f32.mrf.mxu3 }
  0xe3   : > { %v1765_v49 = vpop.eup %1764  ;;  %v1091_v50 = vadd.f32 %v1090_v14, %v1002_v46  ;;  %v915_v62 = vadd.f32 %v914_v48, %v826_v51  ;;  %v1512_v51 = vld [vmem:[%s1887_s9 + $0x1c0] sm:$0xf] }
  0xe4   : > { %1193 = vst.msk [vmem:[%s2040_s25 + $0x28] sm:$0xff] %vm1187_vm2, %v1765_v49  ;;  %v1718_v49 = vld [vmem:[%s1887_s9 + $0x1ec] sm:$0xf] }
  0xe5   : > { %1766 = vtanh.f32 %v1091_v50  ;;  %v1538_v50 = vld [vmem:[%s1887_s9 + $0x1f8] sm:$0xf0] }
  0xe6   : > { %1651 = vmatmul.msk.bf16.gmra.mxu3 %vm746_vm1, %v1509_v61  ;;  %v1513_v61 = vor.u32 %v1715_v52, %v1512_v51 }
  0xe8   : > { %v1003_v63 = vpop.f32.mrf.mxu2  ;;  %v828_v3 = vpop.f32.mrf.mxu0 }
  0xe9   : > { %v1004_v2 = vadd.f32 %v1003_v63, %v915_v62  ;;  %v917_v4 = vpop.f32.mrf.mxu1  ;;  %v829_v6 = vadd.f32 %v2021_v7, %v828_v3  ;;  %v1100_v11 = vpop.f32.mrf.mxu3  ;;  %v1517_v62 = vor.u32 %v1713_v53, %v1514_v54 }
  0xeb   : > { %v1767_v8 = vpop.eup %1766  ;;  %v1093_v9 = vadd.f32 %v1092_v28, %v1004_v2  ;;  %867 = vmatmul.bf16.gmra.mxu0 %v1481_v0  ;;  %v918_v10 = vadd.f32 %v917_v4, %v829_v6  ;;  %v1525_v28 = vor.u32 %v1714_v19, %v1522_v20  ;;  %v1521_v2 = vor.u32 %v1716_v57, %v1520_v56  ;;  %v1530_v19 = vld [vmem:[%s1887_s9 + $0x1f0] sm:$0xf0] }
  0xec   : > { %1194 = vst.msk [vmem:[%s2040_s25 + $0x30] sm:$0xff] %vm1187_vm2, %v1767_v8  ;;  %956 = vmatmul.bf16.gmra.mxu1 %v1485_v1 }
  0xed   : > { %1768 = vtanh.f32 %v1093_v9  ;;  %1045 = vmatmul.bf16.gmra.mxu2 %v1489_v5 }
  0xf0   : > { %v1006_v12 = vpop.f32.mrf.mxu2  ;;  %v830_v14 = vpop.f32.mrf.mxu0 }
  0xf1   : > { %v1007_v13 = vadd.f32 %v1006_v12, %v918_v10  ;;  %v919_v15 = vpop.f32.mrf.mxu1  ;;  %v831_v18 = vadd.f32 %v2021_v7, %v830_v14  ;;  %v1102_v25 = vpop.f32.mrf.mxu3 }
  0xf3   : > { %v1769_v16 = vpop.eup %1768  ;;  %v1096_v17 = vadd.f32 %v1095_v44, %v1007_v13  ;;  %v920_v29 = vadd.f32 %v919_v15, %v831_v18  ;;  %v1717_v18 = vld [vmem:[%s1887_s9 + $0x1e4] sm:$0xf] }
  0xf4   : > { %1195 = vst.msk [vmem:[%s2040_s25 + $0x38] sm:$0xff] %vm1187_vm2, %v1769_v16  ;;  %v1528_v16 = vld [vmem:[%s1887_s9 + $0x1e0] sm:$0xf]  ;;  %v1533_v26 = vor.u32 %v1717_v18, %v1530_v19 }
  0xf5   : > { %1770 = vtanh.f32 %v1096_v17  ;;  %v1719_v17 = vld [vmem:[%s1887_s9 + $0x1ec] sm:$0xf0] }
  0xf6   : > { %1652 = vmatmul.msk.bf16.gmra.mxu3 %vm746_vm1, %v1525_v28 }
  0xf8   : > { %v1008_v30 = vpop.f32.mrf.mxu2  ;;  %v833_v34 = vpop.f32.mrf.mxu0 }
  0xf9   : > { %v1009_v33 = vadd.f32 %v1008_v30, %v920_v29  ;;  %v922_v35 = vpop.f32.mrf.mxu1  ;;  %v834_v37 = vadd.f32 %v2021_v7, %v833_v34  ;;  %v1105_v41 = vpop.f32.mrf.mxu3  ;;  %v1537_v30 = vor.u32 %v1720_v22, %v1536_v21 }
  0xfb   : > { %v1771_v38 = vpop.eup %1770  ;;  %v1098_v39 = vadd.f32 %v1097_v58, %v1009_v33  ;;  %872 = vmatmul.bf16.gmra.mxu0 %v1497_v31  ;;  %v923_v40 = vadd.f32 %v922_v35, %v834_v37  ;;  %v1541_v58 = vor.u32 %v1718_v49, %v1538_v50 }
  0xfc   : > { %1196 = vst.msk [vmem:[%s2040_s25 + $0x40] sm:$0xff] %vm1187_vm2, %v1771_v38  ;;  %961 = vmatmul.bf16.gmra.mxu1 %v1501_v32 }
  0xfd   : > { %1772 = vtanh.f32 %v1098_v39  ;;  %1050 = vmatmul.bf16.gmra.mxu2 %v1505_v36 }
 0x100   : > { %v1011_v42 = vpop.f32.mrf.mxu2  ;;  %v835_v44 = vpop.f32.mrf.mxu0 }
 0x101   : > { %v1012_v43 = vadd.f32 %v1011_v42, %v923_v40  ;;  %v924_v45 = vpop.f32.mrf.mxu1  ;;  %v836_v48 = vadd.f32 %v2021_v7, %v835_v44  ;;  %v1107_v55 = vpop.f32.mrf.mxu3 }
 0x103   : > { %v1773_v46 = vpop.eup %1772  ;;  %v1101_v47 = vadd.f32 %v1100_v11, %v1012_v43  ;;  %v925_v59 = vadd.f32 %v924_v45, %v836_v48 }
 0x104   : > { %1197 = vst.msk [vmem:[%s2040_s25 + $0x48] sm:$0xff] %vm1187_vm2, %v1773_v46 }
 0x105   : > { %1774 = vtanh.f32 %v1101_v47 }
 0x106   : > { %1653 = vmatmul.msk.bf16.gmra.mxu3 %vm746_vm1, %v1541_v58 }
 0x108   : > { %v1013_v60 = vpop.f32.mrf.mxu2  ;;  %v838_v0 = vpop.f32.mrf.mxu0 }
 0x109   : > { %v1014_v63 = vadd.f32 %v1013_v60, %v925_v59  ;;  %v927_v1 = vpop.f32.mrf.mxu1  ;;  %v839_v3 = vadd.f32 %v2021_v7, %v838_v0  ;;  %v1110_v8 = vpop.f32.mrf.mxu3 }
 0x10b   : > { %v1775_v4 = vpop.eup %1774  ;;  %v1103_v5 = vadd.f32 %v1102_v25, %v1014_v63  ;;  %877 = vmatmul.bf16.gmra.mxu0 %v1513_v61  ;;  %v928_v6 = vadd.f32 %v927_v1, %v839_v3  ;;  %v1529_v25 = vor.u32 %v1719_v17, %v1528_v16 }
 0x10c   : > { %1198 = vst.msk [vmem:[%s2040_s25 + $0x50] sm:$0xff] %vm1187_vm2, %v1775_v4  ;;  %966 = vmatmul.bf16.gmra.mxu1 %v1517_v62 }
 0x10d   : > { %1776 = vtanh.f32 %v1103_v5  ;;  %1055 = vmatmul.bf16.gmra.mxu2 %v1521_v2 }
 0x110   : > { %v1016_v9 = vpop.f32.mrf.mxu2  ;;  %v840_v11 = vpop.f32.mrf.mxu0 }
 0x111   : > { %v1017_v10 = vadd.f32 %v1016_v9, %v928_v6  ;;  %v929_v12 = vpop.f32.mrf.mxu1  ;;  %v841_v15 = vadd.f32 %v2021_v7, %v840_v11  ;;  %v1112_v20 = vpop.f32.mrf.mxu3 }
 0x113   : > { %v1777_v13 = vpop.eup %1776  ;;  %v1106_v14 = vadd.f32 %v1105_v41, %v1017_v10  ;;  %v930_v23 = vadd.f32 %v929_v12, %v841_v15 }
 0x114   : > { %1199 = vst.msk [vmem:[%s2040_s25 + $0x58] sm:$0xff] %vm1187_vm2, %v1777_v13 }
 0x115   : > { %1778 = vtanh.f32 %v1106_v14 }
 0x118   : > { %v1018_v24 = vpop.f32.mrf.mxu2  ;;  %v843_v28 = vpop.f32.mrf.mxu0 }
 0x119   : > { %v1019_v27 = vadd.f32 %v1018_v24, %v930_v23  ;;  %v932_v29 = vpop.f32.mrf.mxu1  ;;  %v844_v31 = vadd.f32 %v2021_v7, %v843_v28  ;;  %v1115_v35 = vpop.f32.mrf.mxu3 }
 0x11b   : > { %v1779_v32 = vpop.eup %1778  ;;  %v1108_v33 = vadd.f32 %v1107_v55, %v1019_v27  ;;  %882 = vmatmul.bf16.gmra.mxu0 %v1529_v25  ;;  %v933_v34 = vadd.f32 %v932_v29, %v844_v31 }
 0x11c   : > { %1200 = vst.msk [vmem:[%s2040_s25 + $0x60] sm:$0xff] %vm1187_vm2, %v1779_v32  ;;  %971 = vmatmul.bf16.gmra.mxu1 %v1533_v26 }
 0x11d   : > { %1780 = vtanh.f32 %v1108_v33  ;;  %1060 = vmatmul.bf16.gmra.mxu2 %v1537_v30 }
 0x120   : > { %v1021_v36 = vpop.f32.mrf.mxu2  ;;  %v845_v38 = vpop.f32.mrf.mxu0 }
 0x121   : > { %v1022_v37 = vadd.f32 %v1021_v36, %v933_v34  ;;  %v934_v39 = vpop.f32.mrf.mxu1  ;;  %v846_v42 = vadd.f32 %v2021_v7, %v845_v38  ;;  %v1117_v43 = vpop.f32.mrf.mxu3 }
 0x123   : > { %v1781_v40 = vpop.eup %1780  ;;  %v1111_v41 = vadd.f32 %v1110_v8, %v1022_v37  ;;  %v935_v44 = vadd.f32 %v934_v39, %v846_v42 }
 0x124   : > { %1201 = vst.msk [vmem:[%s2040_s25 + $0x68] sm:$0xff] %vm1187_vm2, %v1781_v40 }
 0x125   : > { %1782 = vtanh.f32 %v1111_v41 }
 0x128   : > { %v1023_v45 = vpop.f32.mrf.mxu2  ;;  %v848_v47 = vpop.f32.mrf.mxu0 }
 0x129   : > { %v1024_v46 = vadd.f32 %v1023_v45, %v935_v44  ;;  %v937_v48 = vpop.f32.mrf.mxu1  ;;  %v849_v49 = vadd.f32 %v2021_v7, %v848_v47  ;;  %v1120_v53 = vpop.f32.mrf.mxu3 }
 0x12b   : > { %v1783_v50 = vpop.eup %1782  ;;  %v1113_v51 = vadd.f32 %v1112_v20, %v1024_v46  ;;  %v938_v52 = vadd.f32 %v937_v48, %v849_v49 }
 0x12c   : > { %1202 = vst.msk [vmem:[%s2040_s25 + $0x70] sm:$0xff] %vm1187_vm2, %v1783_v50 }
 0x12d   : > { %1784 = vtanh.f32 %v1113_v51 }
 0x130   : > { %v1026_v54 = vpop.f32.mrf.mxu2  ;;  %v850_v56 = vpop.f32.mrf.mxu0 }
 0x131   : > { %v1027_v55 = vadd.f32 %v1026_v54, %v938_v52  ;;  %v939_v57 = vpop.f32.mrf.mxu1  ;;  %v851_v60 = vadd.f32 %v2021_v7, %v850_v56  ;;  %v1122_v61 = vpop.f32.mrf.mxu3 }
 0x133   : > { %v1785_v58 = vpop.eup %1784  ;;  %v1116_v59 = vadd.f32 %v1115_v35, %v1027_v55  ;;  %v940_v62 = vadd.f32 %v939_v57, %v851_v60 }
 0x134   : > { %1203 = vst.msk [vmem:[%s2040_s25 + $0x78] sm:$0xff] %vm1187_vm2, %v1785_v58 }
 0x135   : > { %1786 = vtanh.f32 %v1116_v59 }
 0x138   : > { %v1028_v63 = vpop.f32.mrf.mxu2  ;;  %v853_v1 = vpop.f32.mrf.mxu0 }
 0x139   : > { %v1029_v0 = vadd.f32 %v1028_v63, %v940_v62  ;;  %v942_v2 = vpop.f32.mrf.mxu1  ;;  %v854_v3 = vadd.f32 %v2021_v7, %v853_v1  ;;  %v1125_v8 = vpop.f32.mrf.mxu3 }
 0x13b   : > { %v1787_v4 = vpop.eup %1786  ;;  %v1118_v5 = vadd.f32 %v1117_v43, %v1029_v0  ;;  %v943_v6 = vadd.f32 %v942_v2, %v854_v3 }
 0x13c   : > { %1204 = vst.msk [vmem:[%s2040_s25 + $0x80] sm:$0xff] %vm1187_vm2, %v1787_v4 }
 0x13d   : > { %1788 = vtanh.f32 %v1118_v5 }
 0x140   : > { %v1031_v9 = vpop.f32.mrf.mxu2  ;;  %v855_v11 = vpop.f32.mrf.mxu0 }
 0x141   : > { %v1032_v10 = vadd.f32 %v1031_v9, %v943_v6  ;;  %v944_v12 = vpop.f32.mrf.mxu1  ;;  %v856_v15 = vadd.f32 %v2021_v7, %v855_v11  ;;  %v1127_v16 = vpop.f32.mrf.mxu3 }
 0x143   : > { %v1789_v13 = vpop.eup %1788  ;;  %v1121_v14 = vadd.f32 %v1120_v53, %v1032_v10  ;;  %v945_v17 = vadd.f32 %v944_v12, %v856_v15 }
 0x144   : > { %1205 = vst.msk [vmem:[%s2040_s25 + $0x88] sm:$0xff] %vm1187_vm2, %v1789_v13 }
 0x145   : > { %1790 = vtanh.f32 %v1121_v14 }
 0x148   : > { %v1033_v18 = vpop.f32.mrf.mxu2  ;;  %v858_v20 = vpop.f32.mrf.mxu0 }
 0x149   : > { %v1034_v19 = vadd.f32 %v1033_v18, %v945_v17  ;;  %v947_v21 = vpop.f32.mrf.mxu1  ;;  %v859_v22 = vadd.f32 %v2021_v7, %v858_v20  ;;  %v1130_v27 = vpop.f32.mrf.mxu3 }
 0x14b   : > { %v1791_v23 = vpop.eup %1790  ;;  %v1123_v24 = vadd.f32 %v1122_v61, %v1034_v19  ;;  %v948_v25 = vadd.f32 %v947_v21, %v859_v22 }
 0x14c   : > { %1206 = vst.msk [vmem:[%s2040_s25 + $0x90] sm:$0xff] %vm1187_vm2, %v1791_v23 }
 0x14d   : > { %1792 = vtanh.f32 %v1123_v24 }
 0x150   : > { %v1036_v26 = vpop.f32.mrf.mxu2  ;;  %v860_v29 = vpop.f32.mrf.mxu0 }
 0x151   : > { %v1037_v28 = vadd.f32 %v1036_v26, %v948_v25  ;;  %v949_v30 = vpop.f32.mrf.mxu1  ;;  %v861_v33 = vadd.f32 %v2021_v7, %v860_v29  ;;  %v1132_v40 = vpop.f32.mrf.mxu3 }
 0x153   : > { %v1793_v31 = vpop.eup %1792  ;;  %v1126_v32 = vadd.f32 %v1125_v8, %v1037_v28  ;;  %v950_v34 = vadd.f32 %v949_v30, %v861_v33 }
 0x154   : > { %1207 = vst.msk [vmem:[%s2040_s25 + $0x98] sm:$0xff] %vm1187_vm2, %v1793_v31 }
 0x155   : > { %1794 = vtanh.f32 %v1126_v32 }
 0x158   : > { %v1038_v35 = vpop.f32.mrf.mxu2  ;;  %v863_v37 = vpop.f32.mrf.mxu0 }
 0x159   : > { %v1039_v36 = vadd.f32 %v1038_v35, %v950_v34  ;;  %v952_v38 = vpop.f32.mrf.mxu1  ;;  %v864_v39 = vadd.f32 %v2021_v7, %v863_v37  ;;  %v1135_v51 = vpop.f32.mrf.mxu3 }
 0x15b   : > { %v1795_v41 = vpop.eup %1794  ;;  %v1128_v42 = vadd.f32 %v1127_v16, %v1039_v36  ;;  %v953_v43 = vadd.f32 %v952_v38, %v864_v39 }
 0x15c   : > { %1208 = vst.msk [vmem:[%s2040_s25 + $0xa0] sm:$0xff] %vm1187_vm2, %v1795_v41 }
 0x15d   : > { %1796 = vtanh.f32 %v1128_v42 }
 0x160   : > { %v1041_v44 = vpop.f32.mrf.mxu2  ;;  %v865_v46 = vpop.f32.mrf.mxu0 }
 0x161   : > { %v1042_v45 = vadd.f32 %v1041_v44, %v953_v43  ;;  %v954_v47 = vpop.f32.mrf.mxu1  ;;  %v866_v50 = vadd.f32 %v2021_v7, %v865_v46  ;;  %v1137_v61 = vpop.f32.mrf.mxu3 }
 0x163   : > { %v1797_v48 = vpop.eup %1796  ;;  %v1131_v49 = vadd.f32 %v1130_v27, %v1042_v45  ;;  %v955_v52 = vadd.f32 %v954_v47, %v866_v50 }
 0x164   : > { %1209 = vst.msk [vmem:[%s2040_s25 + $0xa8] sm:$0xff] %vm1187_vm2, %v1797_v48 }
 0x165   : > { %1798 = vtanh.f32 %v1131_v49 }
 0x168   : > { %v1043_v53 = vpop.f32.mrf.mxu2  ;;  %v868_v55 = vpop.f32.mrf.mxu0 }
 0x169   : > { %v1044_v54 = vadd.f32 %v1043_v53, %v955_v52  ;;  %v957_v56 = vpop.f32.mrf.mxu1  ;;  %v869_v57 = vadd.f32 %v2021_v7, %v868_v55  ;;  %v1140_v8 = vpop.f32.mrf.mxu3 }
 0x16b   : > { %v1799_v58 = vpop.eup %1798  ;;  %v1133_v59 = vadd.f32 %v1132_v40, %v1044_v54  ;;  %v958_v60 = vadd.f32 %v957_v56, %v869_v57 }
 0x16c   : > { %1210 = vst.msk [vmem:[%s2040_s25 + $0xb0] sm:$0xff] %vm1187_vm2, %v1799_v58 }
 0x16d   : > { %1800 = vtanh.f32 %v1133_v59 }
 0x170   : > { %v1046_v62 = vpop.f32.mrf.mxu2  ;;  %v870_v0 = vpop.f32.mrf.mxu0 }
 0x171   : > { %v1047_v63 = vadd.f32 %v1046_v62, %v958_v60  ;;  %v959_v1 = vpop.f32.mrf.mxu1  ;;  %v871_v4 = vadd.f32 %v2021_v7, %v870_v0  ;;  %v1142_v20 = vpop.f32.mrf.mxu3 }
 0x173   : > { %v1801_v2 = vpop.eup %1800  ;;  %v1136_v3 = vadd.f32 %v1135_v51, %v1047_v63  ;;  %v960_v5 = vadd.f32 %v959_v1, %v871_v4 }
 0x174   : > { %1211 = vst.msk [vmem:[%s2040_s25 + $0xb8] sm:$0xff] %vm1187_vm2, %v1801_v2 }
 0x175   : > { %1802 = vtanh.f32 %v1136_v3 }
 0x178   : > { %v1048_v6 = vpop.f32.mrf.mxu2  ;;  %v873_v10 = vpop.f32.mrf.mxu0 }
 0x179   : > { %v1049_v9 = vadd.f32 %v1048_v6, %v960_v5  ;;  %v962_v11 = vpop.f32.mrf.mxu1  ;;  %v874_v12 = vadd.f32 %v2021_v7, %v873_v10  ;;  %v1145_v32 = vpop.f32.mrf.mxu3 }
 0x17b   : > { %v1803_v13 = vpop.eup %1802  ;;  %v1138_v14 = vadd.f32 %v1137_v61, %v1049_v9  ;;  %v963_v15 = vadd.f32 %v962_v11, %v874_v12 }
 0x17c   : > { %1212 = vst.msk [vmem:[%s2040_s25 + $0xc0] sm:$0xff] %vm1187_vm2, %v1803_v13 }
 0x17d   : > { %1804 = vtanh.f32 %v1138_v14 }
 0x180   : > { %v1051_v16 = vpop.f32.mrf.mxu2  ;;  %v875_v18 = vpop.f32.mrf.mxu0 }
 0x181   : > { %v1052_v17 = vadd.f32 %v1051_v16, %v963_v15  ;;  %v964_v19 = vpop.f32.mrf.mxu1  ;;  %v876_v23 = vadd.f32 %v2021_v7, %v875_v18  ;;  %v1147_v41 = vpop.f32.mrf.mxu3 }
 0x183   : > { %v1805_v21 = vpop.eup %1804  ;;  %v1141_v22 = vadd.f32 %v1140_v8, %v1052_v17  ;;  %v965_v24 = vadd.f32 %v964_v19, %v876_v23 }
 0x184   : > { %1213 = vst.msk [vmem:[%s2040_s25 + $0xc8] sm:$0xff] %vm1187_vm2, %v1805_v21 }
 0x185   : > { %1806 = vtanh.f32 %v1141_v22 }
 0x188   : > { %v1053_v25 = vpop.f32.mrf.mxu2  ;;  %v878_v27 = vpop.f32.mrf.mxu0 }
 0x189   : > { %v1054_v26 = vadd.f32 %v1053_v25, %v965_v24  ;;  %v967_v28 = vpop.f32.mrf.mxu1  ;;  %v879_v29 = vadd.f32 %v2021_v7, %v878_v27  ;;  %v1150_v51 = vpop.f32.mrf.mxu3 }
 0x18b   : > { %v1807_v30 = vpop.eup %1806  ;;  %v1143_v31 = vadd.f32 %v1142_v20, %v1054_v26  ;;  %v968_v33 = vadd.f32 %v967_v28, %v879_v29 }
 0x18c   : > { %1214 = vst.msk [vmem:[%s2040_s25 + $0xd0] sm:$0xff] %vm1187_vm2, %v1807_v30 }
 0x18d   : > { %1808 = vtanh.f32 %v1143_v31 }
 0x190   : > { %v1056_v34 = vpop.f32.mrf.mxu2  ;;  %v880_v36 = vpop.f32.mrf.mxu0 }
 0x191   : > { %v1057_v35 = vadd.f32 %v1056_v34, %v968_v33  ;;  %v969_v37 = vpop.f32.mrf.mxu1  ;;  %v881_v40 = vadd.f32 %v2021_v7, %v880_v36  ;;  %v1152_v62 = vpop.f32.mrf.mxu3 }
 0x193   : > { %v1809_v38 = vpop.eup %1808  ;;  %v1146_v39 = vadd.f32 %v1145_v32, %v1057_v35  ;;  %v970_v42 = vadd.f32 %v969_v37, %v881_v40 }
 0x194   : > { %1215 = vst.msk [vmem:[%s2040_s25 + $0xd8] sm:$0xff] %vm1187_vm2, %v1809_v38 }
 0x195   : > { %1810 = vtanh.f32 %v1146_v39 }
 0x198   : > { %v1058_v43 = vpop.f32.mrf.mxu2  ;;  %v883_v45 = vpop.f32.mrf.mxu0 }
 0x199   : > { %v1059_v44 = vadd.f32 %v1058_v43, %v970_v42  ;;  %v884_v46 = vadd.f32 %v2021_v7, %v883_v45  ;;  %v972_v49 = vpop.f32.mrf.mxu1 }
 0x19b   : > { %v1811_v47 = vpop.eup %1810  ;;  %v1148_v48 = vadd.f32 %v1147_v41, %v1059_v44  ;;  %v973_v50 = vadd.f32 %v972_v49, %v884_v46 }
 0x19c   : > { %1216 = vst.msk [vmem:[%s2040_s25 + $0xe0] sm:$0xff] %vm1187_vm2, %v1811_v47 }
 0x19d   : > { %1812 = vtanh.f32 %v1148_v48 }
 0x1a0   : > { %v1061_v52 = vpop.f32.mrf.mxu2  ;;  %v885_v54 = vpop.f32.mrf.mxu0 }
 0x1a1   : > { %v1062_v53 = vadd.f32 %v1061_v52, %v973_v50  ;;  %v886_v57 = vadd.f32 %v2021_v7, %v885_v54  ;;  %v974_v58 = vpop.f32.mrf.mxu1 }
 0x1a3   : > { %v1813_v55 = vpop.eup %1812  ;;  %v1151_v56 = vadd.f32 %v1150_v51, %v1062_v53  ;;  %v975_v59 = vadd.f32 %v974_v58, %v886_v57 }
 0x1a4   : > { %1217 = vst.msk [vmem:[%s2040_s25 + $0xe8] sm:$0xff] %vm1187_vm2, %v1813_v55 }
 0x1a5   : > { %1814 = vtanh.f32 %v1151_v56 }
 0x1a8   : > { %v1063_v60 = vpop.f32.mrf.mxu2 }
 0x1a9   : > { %v1064_v61 = vadd.f32 %v1063_v60, %v975_v59 }
 0x1ab   : > { %v1815_v63 = vpop.eup %1814  ;;  %v1153_v0 = vadd.f32 %v1152_v62, %v1064_v61 }
 0x1ac   : > { %1218 = vst.msk [vmem:[%s2040_s25 + $0xf0] sm:$0xff] %vm1187_vm2, %v1815_v63 }
 0x1ad   : > { %1816 = vtanh.f32 %v1153_v0 }
 0x1b3   : > { %v1817_v1 = vpop.eup %1816 }
 0x1b4   : > { %1219 = vst.msk [vmem:[%s2040_s25 + $0xf8] sm:$0xff] %vm1187_vm2, %v1817_v1 }
 0x1b5 PF: > { %s13_s12 = sadd.s32 1, %s1824_s12  }
 0x1b6   : > { %p10_p4 = scmp.ge.s32.totalorder %s13_s12, 4  }
 0x1b8   :  { %12 = sbr.rel (!%p10_p4) target bundleno = 1 (0x1), region = 62 }

</bundles_post_ra>
